<compile_context>
chip_gen: v7x
topology: tpu7x:2x2x1
jax: 0.10.0
libtpu: 0.0.40
codegen_flags: <defaults>
</compile_context>

<pallas_src>
import math
import jax
import jax.numpy as jnp
from jax import lax
from jax.experimental import pallas as pl
from jax.experimental.pallas import tpu as pltpu


# ----------------------------------------------------------------------------
# In-kernel helpers
# ----------------------------------------------------------------------------

def _run_gru_direction(x_flat, w_ih, w_hh, b_ih, b_hh, T, B, H, reverse):
    """One GRU direction, fully unrolled over time.

    x_flat: (T*B, D_in) time-major rows (row block t*B:(t+1)*B is timestep t).
    Returns (list of T (B, H) hidden states in ORIGINAL time order,
             final hidden state (B, H)).
    """
    # Hoisted input projection: one MXU-friendly matmul for all timesteps.
    gx_all = jnp.dot(x_flat, w_ih, preferred_element_type=jnp.float32) + b_ih

    h = jnp.zeros((B, H), dtype=jnp.float32)
    outs = [None] * T
    time_order = range(T - 1, -1, -1) if reverse else range(T)
    for t in time_order:                                   # static unroll
        gx = gx_all[t * B:(t + 1) * B, :]                  # (B, 3H) static slice
        gh = jnp.dot(h, w_hh, preferred_element_type=jnp.float32) + b_hh
        r = jax.nn.sigmoid(gx[:, 0:H] + gh[:, 0:H])
        z = jax.nn.sigmoid(gx[:, H:2 * H] + gh[:, H:2 * H])
        n = jnp.tanh(gx[:, 2 * H:3 * H] + r * gh[:, 2 * H:3 * H])
        h = (1.0 - z) * n + z * h
        outs[t] = h
    return outs, h


def _make_fused_kernel(num_layers, T, B, H):
    """Single fused kernel: all GRU layers (both directions) + LayerNorm + MLP."""

    def kernel(*refs):
        x_ref = refs[0]
        idx = 1
        layer_params = []
        for _ in range(num_layers):
            layer_params.append(refs[idx:idx + 8])
            idx += 8
        (ln_g_ref, ln_b_ref,
         w1_ref, b1_ref, w2_ref, b2_ref, w3_ref, b3_ref) = refs[idx:idx + 8]
        o_ref = refs[idx + 8]

        layer_in = x_ref[...].astype(jnp.float32)          # (T*B, D_in)
        h_f = h_b = None
        for l in range(num_layers):
            (wihf, whhf, bihf, bhhf,
             wihb, whhb, bihb, bhhb) = layer_params[l]
            seq_f, h_f = _run_gru_direction(
                layer_in, wihf[...], whhf[...], bihf[...], bhhf[...],
                T, B, H, reverse=False)
            seq_b, h_b = _run_gru_direction(
                layer_in, wihb[...], whhb[...], bihb[...], bhhb[...],
                T, B, H, reverse=True)
            if l + 1 < num_layers:
                # Next layer input: (T*B, 2H), time-major, fwd||bwd per step.
                rows = [jnp.concatenate([seq_f[t], seq_b[t]], axis=-1)
                        for t in range(T)]
                layer_in = jnp.concatenate(rows, axis=0)
            # nn.GRU inter-layer dropout is identity in eval mode.

        # torch.cat((h_n[-2], h_n[-1]), dim=1)
        last_hidden = jnp.concatenate([h_f, h_b], axis=-1)  # (B, 2H)

        # LayerNorm(2H), eps=1e-5, biased variance.
        mean = jnp.mean(last_hidden, axis=-1, keepdims=True)
        var = jnp.mean((last_hidden - mean) * (last_hidden - mean),
                       axis=-1, keepdims=True)
        y = (last_hidden - mean) * lax.rsqrt(var + 1e-5)
        y = y * ln_g_ref[...] + ln_b_ref[...]
        # dropout = identity (eval mode)

        # MLP: Linear(2H,H)+ReLU -> Linear(H,H//2)+ReLU -> Linear(H//2,C)
        y = jnp.maximum(jnp.dot(y, w1_ref[...],
                                preferred_element_type=jnp.float32)
                        + b1_ref[...], 0.0)
        y = jnp.maximum(jnp.dot(y, w2_ref[...],
                                preferred_element_type=jnp.float32)
                        + b2_ref[...], 0.0)
        o_ref[...] = jnp.dot(y, w3_ref[...],
                             preferred_element_type=jnp.float32) + b3_ref[...]

    return kernel


# ----------------------------------------------------------------------------
# Forward: one fused pallas_call
# ----------------------------------------------------------------------------

def sign_gru_classifier_forward(x, params, num_layers):
    """x: (B, T, I) -> logits (B, num_classes). Bidirectional multi-layer GRU."""
    B, T, I = x.shape
    H = params["gru"][0]["w_hh_f"].shape[0]
    C = params["w3"].shape[1]

    # Time-major, flattened to (T*B, I) so the in-kernel per-step slice is a
    # static row-block and the hoisted projection is a single 2-D matmul.
    x_flat = jnp.transpose(x, (1, 0, 2)).astype(jnp.float32).reshape(T * B, I)

    flat_inputs = [x_flat]
    for l in range(num_layers):
        p = params["gru"][l]
        flat_inputs += [p["w_ih_f"], p["w_hh_f"], p["b_ih_f"], p["b_hh_f"],
                        p["w_ih_b"], p["w_hh_b"], p["b_ih_b"], p["b_hh_b"]]
    flat_inputs += [params["ln_g"], params["ln_b"],
                    params["w1"], params["b1"],
                    params["w2"], params["b2"],
                    params["w3"], params["b3"]]

    kernel = _make_fused_kernel(num_layers, T, B, H)
    vmem_spec = pl.BlockSpec(memory_space=pltpu.MemorySpace.VMEM)

    return pl.pallas_call(
        kernel,
        out_shape=jax.ShapeDtypeStruct((B, C), jnp.float32),
        in_specs=[vmem_spec] * len(flat_inputs),
        out_specs=vmem_spec,
    )(*flat_inputs)


# ----------------------------------------------------------------------------
# Parameter init (PyTorch-style uniform init, weights stored pre-transposed)
# ----------------------------------------------------------------------------

def init_params(key, input_size, hidden_size, num_layers, num_classes,
                bidirectional=True):
    assert bidirectional, "this synthetic instantiation uses bidirectional=True"
    H = hidden_size
    out_dim = 2 * H
    k_gru = 1.0 / math.sqrt(H)

    def u(k, shape, bound):
        return jax.random.uniform(k, shape, jnp.float32, -bound, bound)

    params = {"gru": []}
    keys = jax.random.split(key, num_layers * 8 + 8)
    ki = 0
    for l in range(num_layers):
        d_in = input_size if l == 0 else 2 * H
        layer = {
            # stored pre-transposed: (D_in, 3H) / (H, 3H), gate order [r|z|n]
            "w_ih_f": u(keys[ki + 0], (d_in, 3 * H), k_gru),
            "w_hh_f": u(keys[ki + 1], (H, 3 * H), k_gru),
            "b_ih_f": u(keys[ki + 2], (1, 3 * H), k_gru),
            "b_hh_f": u(keys[ki + 3], (1, 3 * H), k_gru),
            "w_ih_b": u(keys[ki + 4], (d_in, 3 * H), k_gru),
            "w_hh_b": u(keys[ki + 5], (H, 3 * H), k_gru),
            "b_ih_b": u(keys[ki + 6], (1, 3 * H), k_gru),
            "b_hh_b": u(keys[ki + 7], (1, 3 * H), k_gru),
        }
        params["gru"].append(layer)
        ki += 8

    params["ln_g"] = jnp.ones((1, out_dim), jnp.float32)
    params["ln_b"] = jnp.zeros((1, out_dim), jnp.float32)

    k1 = 1.0 / math.sqrt(out_dim)
    k2 = 1.0 / math.sqrt(H)
    k3 = 1.0 / math.sqrt(H // 2)
    params["w1"] = u(keys[ki + 0], (out_dim, H), k1)
    params["b1"] = u(keys[ki + 1], (1, H), k1)
    params["w2"] = u(keys[ki + 2], (H, H // 2), k2)
    params["b2"] = u(keys[ki + 3], (1, H // 2), k2)
    params["w3"] = u(keys[ki + 4], (H // 2, num_classes), k3)
    params["b3"] = u(keys[ki + 5], (1, num_classes), k3)
    return params


# ----------------------------------------------------------------------------
# Pure-JAX reference (for correctness check)
# ----------------------------------------------------------------------------

def _forward_ref(x, params, num_layers):
    B, T, I = x.shape
    H = params["gru"][0]["w_hh_f"].shape[0]
    layer_in = jnp.transpose(x, (1, 0, 2)).astype(jnp.float32)   # (T, B, I)
    hf = hb = None
    for l in range(num_layers):
        p = params["gru"][l]

        def run(seq, wih, whh, bih, bhh):
            def step(h, xt):
                gx = xt @ wih + bih
                gh = h @ whh + bhh
                r = jax.nn.sigmoid(gx[:, :H] + gh[:, :H])
                z = jax.nn.sigmoid(gx[:, H:2 * H] + gh[:, H:2 * H])
                n = jnp.tanh(gx[:, 2 * H:] + r * gh[:, 2 * H:])
                hn = (1.0 - z) * n + z * h
                return hn, hn
            h0 = jnp.zeros((B, H), jnp.float32)
            h_last, seq_out = lax.scan(step, h0, seq)
            return seq_out, h_last

        seq_f, hf = run(layer_in, p["w_ih_f"], p["w_hh_f"],
                        p["b_ih_f"], p["b_hh_f"])
        seq_b_rev, hb = run(layer_in[::-1], p["w_ih_b"], p["w_hh_b"],
                            p["b_ih_b"], p["b_hh_b"])
        layer_in = jnp.concatenate([seq_f, seq_b_rev[::-1]], axis=-1)

    last = jnp.concatenate([hf, hb], axis=-1)
    mean = last.mean(-1, keepdims=True)
    var = ((last - mean) ** 2).mean(-1, keepdims=True)
    y = (last - mean) * lax.rsqrt(var + 1e-5) * params["ln_g"] + params["ln_b"]
    y = jnp.maximum(y @ params["w1"] + params["b1"], 0.0)
    y = jnp.maximum(y @ params["w2"] + params["b2"], 0.0)
    return y @ params["w3"] + params["b3"]


# ----------------------------------------------------------------------------
# Demo
# ----------------------------------------------------------------------------

if __name__ == "__main__":
    B, T = 2, 8
    input_size, hidden_size, num_layers, num_classes = 16, 32, 2, 5

    key = jax.random.PRNGKey(0)
    kx, kp = jax.random.split(key)
    x = jax.random.normal(kx, (B, T, input_size), jnp.float32)
    params = init_params(kp, input_size, hidden_size, num_layers, num_classes,
                         bidirectional=True)

    logits = sign_gru_classifier_forward(x, params, num_layers)
    logits = jax.block_until_ready(logits)

    assert logits.shape == (B, num_classes)
    assert bool(jnp.all(jnp.isfinite(logits)))

    ref = jax.block_until_ready(_forward_ref(x, params, num_layers))
    assert bool(jnp.allclose(logits, ref, rtol=5e-2, atol=5e-2)), (logits, ref)

    print("KERNEL_OK")
</pallas_src>

<mosaic_0001>
module attributes {stable_mosaic.version = 11 : i64} {
  func.func @kernel(%arg0: memref<16x16xf32, #tpu.memory_space<vmem>>, %arg1: memref<16x96xf32, #tpu.memory_space<vmem>>, %arg2: memref<32x96xf32, #tpu.memory_space<vmem>>, %arg3: memref<1x96xf32, #tpu.memory_space<vmem>>, %arg4: memref<1x96xf32, #tpu.memory_space<vmem>>, %arg5: memref<16x96xf32, #tpu.memory_space<vmem>>, %arg6: memref<32x96xf32, #tpu.memory_space<vmem>>, %arg7: memref<1x96xf32, #tpu.memory_space<vmem>>, %arg8: memref<1x96xf32, #tpu.memory_space<vmem>>, %arg9: memref<64x96xf32, #tpu.memory_space<vmem>>, %arg10: memref<32x96xf32, #tpu.memory_space<vmem>>, %arg11: memref<1x96xf32, #tpu.memory_space<vmem>>, %arg12: memref<1x96xf32, #tpu.memory_space<vmem>>, %arg13: memref<64x96xf32, #tpu.memory_space<vmem>>, %arg14: memref<32x96xf32, #tpu.memory_space<vmem>>, %arg15: memref<1x96xf32, #tpu.memory_space<vmem>>, %arg16: memref<1x96xf32, #tpu.memory_space<vmem>>, %arg17: memref<1x64xf32, #tpu.memory_space<vmem>>, %arg18: memref<1x64xf32, #tpu.memory_space<vmem>>, %arg19: memref<64x32xf32, #tpu.memory_space<vmem>>, %arg20: memref<1x32xf32, #tpu.memory_space<vmem>>, %arg21: memref<32x16xf32, #tpu.memory_space<vmem>>, %arg22: memref<1x16xf32, #tpu.memory_space<vmem>>, %arg23: memref<16x5xf32, #tpu.memory_space<vmem>>, %arg24: memref<1x5xf32, #tpu.memory_space<vmem>>, %arg25: memref<2x5xf32, #tpu.memory_space<vmem>>) attributes {dimension_semantics = [], scalar_prefetch = 0 : i64, scratch_operands = 0 : i64, tpu.core_type = #tpu.core_type<tc>} {
    %c0 = arith.constant 0 : index
    %c0_0 = arith.constant 0 : index
    %0 = vector.load %arg0[%c0, %c0_0] : memref<16x16xf32, #tpu.memory_space<vmem>>, vector<16x16xf32>
    %c0_1 = arith.constant 0 : index
    %c0_2 = arith.constant 0 : index
    %1 = vector.load %arg1[%c0_1, %c0_2] : memref<16x96xf32, #tpu.memory_space<vmem>>, vector<16x96xf32>
    %c0_3 = arith.constant 0 : index
    %c0_4 = arith.constant 0 : index
    %2 = vector.load %arg2[%c0_3, %c0_4] : memref<32x96xf32, #tpu.memory_space<vmem>>, vector<32x96xf32>
    %c0_5 = arith.constant 0 : index
    %c0_6 = arith.constant 0 : index
    %3 = vector.load %arg3[%c0_5, %c0_6] : memref<1x96xf32, #tpu.memory_space<vmem>>, vector<1x96xf32>
    %c0_7 = arith.constant 0 : index
    %c0_8 = arith.constant 0 : index
    %4 = vector.load %arg4[%c0_7, %c0_8] : memref<1x96xf32, #tpu.memory_space<vmem>>, vector<1x96xf32>
    %cst = arith.constant dense<0.000000e+00> : vector<16x96xf32>
    %5 = tpu.matmul %0, %1, %cst {dimension_numbers = #tpu.dot_dimension_numbers<[1], [0], [0], [1], [0, 0, 1, 1], [], []>} : vector<16x16xf32>, vector<16x96xf32>, vector<16x96xf32> -> vector<16x96xf32>
    %6 = vector.broadcast %3 : vector<1x96xf32> to vector<16x96xf32>
    %7 = arith.addf %5, %6 : vector<16x96xf32>
    %cst_9 = arith.constant 0.000000e+00 : f32
    %8 = vector.broadcast %cst_9 : f32 to vector<2x32xf32>
    %9 = vector.extract_strided_slice %7 {offsets = [0, 0], sizes = [2, 96], strides = [1, 1]} : vector<16x96xf32> to vector<2x96xf32>
    %cst_10 = arith.constant dense<0.000000e+00> : vector<2x96xf32>
    %10 = tpu.matmul %8, %2, %cst_10 {dimension_numbers = #tpu.dot_dimension_numbers<[1], [0], [0], [1], [0, 0, 1, 1], [], []>} : vector<2x32xf32>, vector<32x96xf32>, vector<2x96xf32> -> vector<2x96xf32>
    %11 = vector.broadcast %4 : vector<1x96xf32> to vector<2x96xf32>
    %12 = arith.addf %10, %11 : vector<2x96xf32>
    %13 = vector.extract_strided_slice %9 {offsets = [0, 0], sizes = [2, 32], strides = [1, 1]} : vector<2x96xf32> to vector<2x32xf32>
    %14 = vector.extract_strided_slice %12 {offsets = [0, 0], sizes = [2, 32], strides = [1, 1]} : vector<2x96xf32> to vector<2x32xf32>
    %15 = arith.addf %13, %14 : vector<2x32xf32>
    %16 = arith.negf %15 : vector<2x32xf32>
    %17 = math.exp %16 : vector<2x32xf32>
    %cst_11 = arith.constant 1.000000e+00 : f32
    %18 = vector.broadcast %cst_11 : f32 to vector<2x32xf32>
    %19 = arith.addf %18, %17 : vector<2x32xf32>
    %20 = arith.divf %18, %19 : vector<2x32xf32>
    %21 = vector.extract_strided_slice %9 {offsets = [0, 32], sizes = [2, 32], strides = [1, 1]} : vector<2x96xf32> to vector<2x32xf32>
    %22 = vector.extract_strided_slice %12 {offsets = [0, 32], sizes = [2, 32], strides = [1, 1]} : vector<2x96xf32> to vector<2x32xf32>
    %23 = arith.addf %21, %22 : vector<2x32xf32>
    %24 = arith.negf %23 : vector<2x32xf32>
    %25 = math.exp %24 : vector<2x32xf32>
    %cst_12 = arith.constant 1.000000e+00 : f32
    %26 = vector.broadcast %cst_12 : f32 to vector<2x32xf32>
    %27 = arith.addf %26, %25 : vector<2x32xf32>
    %28 = arith.divf %26, %27 : vector<2x32xf32>
    %29 = vector.extract_strided_slice %9 {offsets = [0, 64], sizes = [2, 32], strides = [1, 1]} : vector<2x96xf32> to vector<2x32xf32>
    %30 = vector.extract_strided_slice %12 {offsets = [0, 64], sizes = [2, 32], strides = [1, 1]} : vector<2x96xf32> to vector<2x32xf32>
    %31 = arith.mulf %20, %30 : vector<2x32xf32>
    %32 = arith.addf %29, %31 : vector<2x32xf32>
    %33 = math.tanh %32 : vector<2x32xf32>
    %cst_13 = arith.constant 1.000000e+00 : f32
    %34 = vector.broadcast %cst_13 : f32 to vector<2x32xf32>
    %35 = arith.subf %34, %28 : vector<2x32xf32>
    %36 = arith.mulf %35, %33 : vector<2x32xf32>
    %37 = arith.mulf %28, %8 : vector<2x32xf32>
    %38 = arith.addf %36, %37 : vector<2x32xf32>
    %39 = vector.extract_strided_slice %7 {offsets = [2, 0], sizes = [2, 96], strides = [1, 1]} : vector<16x96xf32> to vector<2x96xf32>
    %cst_14 = arith.constant dense<0.000000e+00> : vector<2x96xf32>
    %40 = tpu.matmul %38, %2, %cst_14 {dimension_numbers = #tpu.dot_dimension_numbers<[1], [0], [0], [1], [0, 0, 1, 1], [], []>} : vector<2x32xf32>, vector<32x96xf32>, vector<2x96xf32> -> vector<2x96xf32>
    %41 = vector.broadcast %4 : vector<1x96xf32> to vector<2x96xf32>
    %42 = arith.addf %40, %41 : vector<2x96xf32>
    %43 = vector.extract_strided_slice %39 {offsets = [0, 0], sizes = [2, 32], strides = [1, 1]} : vector<2x96xf32> to vector<2x32xf32>
    %44 = vector.extract_strided_slice %42 {offsets = [0, 0], sizes = [2, 32], strides = [1, 1]} : vector<2x96xf32> to vector<2x32xf32>
    %45 = arith.addf %43, %44 : vector<2x32xf32>
    %46 = arith.negf %45 : vector<2x32xf32>
    %47 = math.exp %46 : vector<2x32xf32>
    %cst_15 = arith.constant 1.000000e+00 : f32
    %48 = vector.broadcast %cst_15 : f32 to vector<2x32xf32>
    %49 = arith.addf %48, %47 : vector<2x32xf32>
    %50 = arith.divf %48, %49 : vector<2x32xf32>
    %51 = vector.extract_strided_slice %39 {offsets = [0, 32], sizes = [2, 32], strides = [1, 1]} : vector<2x96xf32> to vector<2x32xf32>
    %52 = vector.extract_strided_slice %42 {offsets = [0, 32], sizes = [2, 32], strides = [1, 1]} : vector<2x96xf32> to vector<2x32xf32>
    %53 = arith.addf %51, %52 : vector<2x32xf32>
    %54 = arith.negf %53 : vector<2x32xf32>
    %55 = math.exp %54 : vector<2x32xf32>
    %cst_16 = arith.constant 1.000000e+00 : f32
    %56 = vector.broadcast %cst_16 : f32 to vector<2x32xf32>
    %57 = arith.addf %56, %55 : vector<2x32xf32>
    %58 = arith.divf %56, %57 : vector<2x32xf32>
    %59 = vector.extract_strided_slice %39 {offsets = [0, 64], sizes = [2, 32], strides = [1, 1]} : vector<2x96xf32> to vector<2x32xf32>
    %60 = vector.extract_strided_slice %42 {offsets = [0, 64], sizes = [2, 32], strides = [1, 1]} : vector<2x96xf32> to vector<2x32xf32>
    %61 = arith.mulf %50, %60 : vector<2x32xf32>
    %62 = arith.addf %59, %61 : vector<2x32xf32>
    %63 = math.tanh %62 : vector<2x32xf32>
    %cst_17 = arith.constant 1.000000e+00 : f32
    %64 = vector.broadcast %cst_17 : f32 to vector<2x32xf32>
    %65 = arith.subf %64, %58 : vector<2x32xf32>
    %66 = arith.mulf %65, %63 : vector<2x32xf32>
    %67 = arith.mulf %58, %38 : vector<2x32xf32>
    %68 = arith.addf %66, %67 : vector<2x32xf32>
    %69 = vector.extract_strided_slice %7 {offsets = [4, 0], sizes = [2, 96], strides = [1, 1]} : vector<16x96xf32> to vector<2x96xf32>
    %cst_18 = arith.constant dense<0.000000e+00> : vector<2x96xf32>
    %70 = tpu.matmul %68, %2, %cst_18 {dimension_numbers = #tpu.dot_dimension_numbers<[1], [0], [0], [1], [0, 0, 1, 1], [], []>} : vector<2x32xf32>, vector<32x96xf32>, vector<2x96xf32> -> vector<2x96xf32>
    %71 = vector.broadcast %4 : vector<1x96xf32> to vector<2x96xf32>
    %72 = arith.addf %70, %71 : vector<2x96xf32>
    %73 = vector.extract_strided_slice %69 {offsets = [0, 0], sizes = [2, 32], strides = [1, 1]} : vector<2x96xf32> to vector<2x32xf32>
    %74 = vector.extract_strided_slice %72 {offsets = [0, 0], sizes = [2, 32], strides = [1, 1]} : vector<2x96xf32> to vector<2x32xf32>
    %75 = arith.addf %73, %74 : vector<2x32xf32>
    %76 = arith.negf %75 : vector<2x32xf32>
    %77 = math.exp %76 : vector<2x32xf32>
    %cst_19 = arith.constant 1.000000e+00 : f32
    %78 = vector.broadcast %cst_19 : f32 to vector<2x32xf32>
    %79 = arith.addf %78, %77 : vector<2x32xf32>
    %80 = arith.divf %78, %79 : vector<2x32xf32>
    %81 = vector.extract_strided_slice %69 {offsets = [0, 32], sizes = [2, 32], strides = [1, 1]} : vector<2x96xf32> to vector<2x32xf32>
    %82 = vector.extract_strided_slice %72 {offsets = [0, 32], sizes = [2, 32], strides = [1, 1]} : vector<2x96xf32> to vector<2x32xf32>
    %83 = arith.addf %81, %82 : vector<2x32xf32>
    %84 = arith.negf %83 : vector<2x32xf32>
    %85 = math.exp %84 : vector<2x32xf32>
    %cst_20 = arith.constant 1.000000e+00 : f32
    %86 = vector.broadcast %cst_20 : f32 to vector<2x32xf32>
    %87 = arith.addf %86, %85 : vector<2x32xf32>
    %88 = arith.divf %86, %87 : vector<2x32xf32>
    %89 = vector.extract_strided_slice %69 {offsets = [0, 64], sizes = [2, 32], strides = [1, 1]} : vector<2x96xf32> to vector<2x32xf32>
    %90 = vector.extract_strided_slice %72 {offsets = [0, 64], sizes = [2, 32], strides = [1, 1]} : vector<2x96xf32> to vector<2x32xf32>
    %91 = arith.mulf %80, %90 : vector<2x32xf32>
    %92 = arith.addf %89, %91 : vector<2x32xf32>
    %93 = math.tanh %92 : vector<2x32xf32>
    %cst_21 = arith.constant 1.000000e+00 : f32
    %94 = vector.broadcast %cst_21 : f32 to vector<2x32xf32>
    %95 = arith.subf %94, %88 : vector<2x32xf32>
    %96 = arith.mulf %95, %93 : vector<2x32xf32>
    %97 = arith.mulf %88, %68 : vector<2x32xf32>
    %98 = arith.addf %96, %97 : vector<2x32xf32>
    %99 = vector.extract_strided_slice %7 {offsets = [6, 0], sizes = [2, 96], strides = [1, 1]} : vector<16x96xf32> to vector<2x96xf32>
    %cst_22 = arith.constant dense<0.000000e+00> : vector<2x96xf32>
    %100 = tpu.matmul %98, %2, %cst_22 {dimension_numbers = #tpu.dot_dimension_numbers<[1], [0], [0], [1], [0, 0, 1, 1], [], []>} : vector<2x32xf32>, vector<32x96xf32>, vector<2x96xf32> -> vector<2x96xf32>
    %101 = vector.broadcast %4 : vector<1x96xf32> to vector<2x96xf32>
    %102 = arith.addf %100, %101 : vector<2x96xf32>
    %103 = vector.extract_strided_slice %99 {offsets = [0, 0], sizes = [2, 32], strides = [1, 1]} : vector<2x96xf32> to vector<2x32xf32>
    %104 = vector.extract_strided_slice %102 {offsets = [0, 0], sizes = [2, 32], strides = [1, 1]} : vector<2x96xf32> to vector<2x32xf32>
    %105 = arith.addf %103, %104 : vector<2x32xf32>
    %106 = arith.negf %105 : vector<2x32xf32>
    %107 = math.exp %106 : vector<2x32xf32>
    %cst_23 = arith.constant 1.000000e+00 : f32
    %108 = vector.broadcast %cst_23 : f32 to vector<2x32xf32>
    %109 = arith.addf %108, %107 : vector<2x32xf32>
    %110 = arith.divf %108, %109 : vector<2x32xf32>
    %111 = vector.extract_strided_slice %99 {offsets = [0, 32], sizes = [2, 32], strides = [1, 1]} : vector<2x96xf32> to vector<2x32xf32>
    %112 = vector.extract_strided_slice %102 {offsets = [0, 32], sizes = [2, 32], strides = [1, 1]} : vector<2x96xf32> to vector<2x32xf32>
    %113 = arith.addf %111, %112 : vector<2x32xf32>
    %114 = arith.negf %113 : vector<2x32xf32>
    %115 = math.exp %114 : vector<2x32xf32>
    %cst_24 = arith.constant 1.000000e+00 : f32
    %116 = vector.broadcast %cst_24 : f32 to vector<2x32xf32>
    %117 = arith.addf %116, %115 : vector<2x32xf32>
    %118 = arith.divf %116, %117 : vector<2x32xf32>
    %119 = vector.extract_strided_slice %99 {offsets = [0, 64], sizes = [2, 32], strides = [1, 1]} : vector<2x96xf32> to vector<2x32xf32>
    %120 = vector.extract_strided_slice %102 {offsets = [0, 64], sizes = [2, 32], strides = [1, 1]} : vector<2x96xf32> to vector<2x32xf32>
    %121 = arith.mulf %110, %120 : vector<2x32xf32>
    %122 = arith.addf %119, %121 : vector<2x32xf32>
    %123 = math.tanh %122 : vector<2x32xf32>
    %cst_25 = arith.constant 1.000000e+00 : f32
    %124 = vector.broadcast %cst_25 : f32 to vector<2x32xf32>
    %125 = arith.subf %124, %118 : vector<2x32xf32>
    %126 = arith.mulf %125, %123 : vector<2x32xf32>
    %127 = arith.mulf %118, %98 : vector<2x32xf32>
    %128 = arith.addf %126, %127 : vector<2x32xf32>
    %129 = vector.extract_strided_slice %7 {offsets = [8, 0], sizes = [2, 96], strides = [1, 1]} : vector<16x96xf32> to vector<2x96xf32>
    %cst_26 = arith.constant dense<0.000000e+00> : vector<2x96xf32>
    %130 = tpu.matmul %128, %2, %cst_26 {dimension_numbers = #tpu.dot_dimension_numbers<[1], [0], [0], [1], [0, 0, 1, 1], [], []>} : vector<2x32xf32>, vector<32x96xf32>, vector<2x96xf32> -> vector<2x96xf32>
    %131 = vector.broadcast %4 : vector<1x96xf32> to vector<2x96xf32>
    %132 = arith.addf %130, %131 : vector<2x96xf32>
    %133 = vector.extract_strided_slice %129 {offsets = [0, 0], sizes = [2, 32], strides = [1, 1]} : vector<2x96xf32> to vector<2x32xf32>
    %134 = vector.extract_strided_slice %132 {offsets = [0, 0], sizes = [2, 32], strides = [1, 1]} : vector<2x96xf32> to vector<2x32xf32>
    %135 = arith.addf %133, %134 : vector<2x32xf32>
    %136 = arith.negf %135 : vector<2x32xf32>
    %137 = math.exp %136 : vector<2x32xf32>
    %cst_27 = arith.constant 1.000000e+00 : f32
    %138 = vector.broadcast %cst_27 : f32 to vector<2x32xf32>
    %139 = arith.addf %138, %137 : vector<2x32xf32>
    %140 = arith.divf %138, %139 : vector<2x32xf32>
    %141 = vector.extract_strided_slice %129 {offsets = [0, 32], sizes = [2, 32], strides = [1, 1]} : vector<2x96xf32> to vector<2x32xf32>
    %142 = vector.extract_strided_slice %132 {offsets = [0, 32], sizes = [2, 32], strides = [1, 1]} : vector<2x96xf32> to vector<2x32xf32>
    %143 = arith.addf %141, %142 : vector<2x32xf32>
    %144 = arith.negf %143 : vector<2x32xf32>
    %145 = math.exp %144 : vector<2x32xf32>
    %cst_28 = arith.constant 1.000000e+00 : f32
    %146 = vector.broadcast %cst_28 : f32 to vector<2x32xf32>
    %147 = arith.addf %146, %145 : vector<2x32xf32>
    %148 = arith.divf %146, %147 : vector<2x32xf32>
    %149 = vector.extract_strided_slice %129 {offsets = [0, 64], sizes = [2, 32], strides = [1, 1]} : vector<2x96xf32> to vector<2x32xf32>
    %150 = vector.extract_strided_slice %132 {offsets = [0, 64], sizes = [2, 32], strides = [1, 1]} : vector<2x96xf32> to vector<2x32xf32>
    %151 = arith.mulf %140, %150 : vector<2x32xf32>
    %152 = arith.addf %149, %151 : vector<2x32xf32>
    %153 = math.tanh %152 : vector<2x32xf32>
    %cst_29 = arith.constant 1.000000e+00 : f32
    %154 = vector.broadcast %cst_29 : f32 to vector<2x32xf32>
    %155 = arith.subf %154, %148 : vector<2x32xf32>
    %156 = arith.mulf %155, %153 : vector<2x32xf32>
    %157 = arith.mulf %148, %128 : vector<2x32xf32>
    %158 = arith.addf %156, %157 : vector<2x32xf32>
    %159 = vector.extract_strided_slice %7 {offsets = [10, 0], sizes = [2, 96], strides = [1, 1]} : vector<16x96xf32> to vector<2x96xf32>
    %cst_30 = arith.constant dense<0.000000e+00> : vector<2x96xf32>
    %160 = tpu.matmul %158, %2, %cst_30 {dimension_numbers = #tpu.dot_dimension_numbers<[1], [0], [0], [1], [0, 0, 1, 1], [], []>} : vector<2x32xf32>, vector<32x96xf32>, vector<2x96xf32> -> vector<2x96xf32>
    %161 = vector.broadcast %4 : vector<1x96xf32> to vector<2x96xf32>
    %162 = arith.addf %160, %161 : vector<2x96xf32>
    %163 = vector.extract_strided_slice %159 {offsets = [0, 0], sizes = [2, 32], strides = [1, 1]} : vector<2x96xf32> to vector<2x32xf32>
    %164 = vector.extract_strided_slice %162 {offsets = [0, 0], sizes = [2, 32], strides = [1, 1]} : vector<2x96xf32> to vector<2x32xf32>
    %165 = arith.addf %163, %164 : vector<2x32xf32>
    %166 = arith.negf %165 : vector<2x32xf32>
    %167 = math.exp %166 : vector<2x32xf32>
    %cst_31 = arith.constant 1.000000e+00 : f32
    %168 = vector.broadcast %cst_31 : f32 to vector<2x32xf32>
    %169 = arith.addf %168, %167 : vector<2x32xf32>
    %170 = arith.divf %168, %169 : vector<2x32xf32>
    %171 = vector.extract_strided_slice %159 {offsets = [0, 32], sizes = [2, 32], strides = [1, 1]} : vector<2x96xf32> to vector<2x32xf32>
    %172 = vector.extract_strided_slice %162 {offsets = [0, 32], sizes = [2, 32], strides = [1, 1]} : vector<2x96xf32> to vector<2x32xf32>
    %173 = arith.addf %171, %172 : vector<2x32xf32>
    %174 = arith.negf %173 : vector<2x32xf32>
    %175 = math.exp %174 : vector<2x32xf32>
    %cst_32 = arith.constant 1.000000e+00 : f32
    %176 = vector.broadcast %cst_32 : f32 to vector<2x32xf32>
    %177 = arith.addf %176, %175 : vector<2x32xf32>
    %178 = arith.divf %176, %177 : vector<2x32xf32>
    %179 = vector.extract_strided_slice %159 {offsets = [0, 64], sizes = [2, 32], strides = [1, 1]} : vector<2x96xf32> to vector<2x32xf32>
    %180 = vector.extract_strided_slice %162 {offsets = [0, 64], sizes = [2, 32], strides = [1, 1]} : vector<2x96xf32> to vector<2x32xf32>
    %181 = arith.mulf %170, %180 : vector<2x32xf32>
    %182 = arith.addf %179, %181 : vector<2x32xf32>
    %183 = math.tanh %182 : vector<2x32xf32>
    %cst_33 = arith.constant 1.000000e+00 : f32
    %184 = vector.broadcast %cst_33 : f32 to vector<2x32xf32>
    %185 = arith.subf %184, %178 : vector<2x32xf32>
    %186 = arith.mulf %185, %183 : vector<2x32xf32>
    %187 = arith.mulf %178, %158 : vector<2x32xf32>
    %188 = arith.addf %186, %187 : vector<2x32xf32>
    %189 = vector.extract_strided_slice %7 {offsets = [12, 0], sizes = [2, 96], strides = [1, 1]} : vector<16x96xf32> to vector<2x96xf32>
    %cst_34 = arith.constant dense<0.000000e+00> : vector<2x96xf32>
    %190 = tpu.matmul %188, %2, %cst_34 {dimension_numbers = #tpu.dot_dimension_numbers<[1], [0], [0], [1], [0, 0, 1, 1], [], []>} : vector<2x32xf32>, vector<32x96xf32>, vector<2x96xf32> -> vector<2x96xf32>
    %191 = vector.broadcast %4 : vector<1x96xf32> to vector<2x96xf32>
    %192 = arith.addf %190, %191 : vector<2x96xf32>
    %193 = vector.extract_strided_slice %189 {offsets = [0, 0], sizes = [2, 32], strides = [1, 1]} : vector<2x96xf32> to vector<2x32xf32>
    %194 = vector.extract_strided_slice %192 {offsets = [0, 0], sizes = [2, 32], strides = [1, 1]} : vector<2x96xf32> to vector<2x32xf32>
    %195 = arith.addf %193, %194 : vector<2x32xf32>
    %196 = arith.negf %195 : vector<2x32xf32>
    %197 = math.exp %196 : vector<2x32xf32>
    %cst_35 = arith.constant 1.000000e+00 : f32
    %198 = vector.broadcast %cst_35 : f32 to vector<2x32xf32>
    %199 = arith.addf %198, %197 : vector<2x32xf32>
    %200 = arith.divf %198, %199 : vector<2x32xf32>
    %201 = vector.extract_strided_slice %189 {offsets = [0, 32], sizes = [2, 32], strides = [1, 1]} : vector<2x96xf32> to vector<2x32xf32>
    %202 = vector.extract_strided_slice %192 {offsets = [0, 32], sizes = [2, 32], strides = [1, 1]} : vector<2x96xf32> to vector<2x32xf32>
    %203 = arith.addf %201, %202 : vector<2x32xf32>
    %204 = arith.negf %203 : vector<2x32xf32>
    %205 = math.exp %204 : vector<2x32xf32>
    %cst_36 = arith.constant 1.000000e+00 : f32
    %206 = vector.broadcast %cst_36 : f32 to vector<2x32xf32>
    %207 = arith.addf %206, %205 : vector<2x32xf32>
    %208 = arith.divf %206, %207 : vector<2x32xf32>
    %209 = vector.extract_strided_slice %189 {offsets = [0, 64], sizes = [2, 32], strides = [1, 1]} : vector<2x96xf32> to vector<2x32xf32>
    %210 = vector.extract_strided_slice %192 {offsets = [0, 64], sizes = [2, 32], strides = [1, 1]} : vector<2x96xf32> to vector<2x32xf32>
    %211 = arith.mulf %200, %210 : vector<2x32xf32>
    %212 = arith.addf %209, %211 : vector<2x32xf32>
    %213 = math.tanh %212 : vector<2x32xf32>
    %cst_37 = arith.constant 1.000000e+00 : f32
    %214 = vector.broadcast %cst_37 : f32 to vector<2x32xf32>
    %215 = arith.subf %214, %208 : vector<2x32xf32>
    %216 = arith.mulf %215, %213 : vector<2x32xf32>
    %217 = arith.mulf %208, %188 : vector<2x32xf32>
    %218 = arith.addf %216, %217 : vector<2x32xf32>
    %219 = vector.extract_strided_slice %7 {offsets = [14, 0], sizes = [2, 96], strides = [1, 1]} : vector<16x96xf32> to vector<2x96xf32>
    %cst_38 = arith.constant dense<0.000000e+00> : vector<2x96xf32>
    %220 = tpu.matmul %218, %2, %cst_38 {dimension_numbers = #tpu.dot_dimension_numbers<[1], [0], [0], [1], [0, 0, 1, 1], [], []>} : vector<2x32xf32>, vector<32x96xf32>, vector<2x96xf32> -> vector<2x96xf32>
    %221 = vector.broadcast %4 : vector<1x96xf32> to vector<2x96xf32>
    %222 = arith.addf %220, %221 : vector<2x96xf32>
    %223 = vector.extract_strided_slice %219 {offsets = [0, 0], sizes = [2, 32], strides = [1, 1]} : vector<2x96xf32> to vector<2x32xf32>
    %224 = vector.extract_strided_slice %222 {offsets = [0, 0], sizes = [2, 32], strides = [1, 1]} : vector<2x96xf32> to vector<2x32xf32>
    %225 = arith.addf %223, %224 : vector<2x32xf32>
    %226 = arith.negf %225 : vector<2x32xf32>
    %227 = math.exp %226 : vector<2x32xf32>
    %cst_39 = arith.constant 1.000000e+00 : f32
    %228 = vector.broadcast %cst_39 : f32 to vector<2x32xf32>
    %229 = arith.addf %228, %227 : vector<2x32xf32>
    %230 = arith.divf %228, %229 : vector<2x32xf32>
    %231 = vector.extract_strided_slice %219 {offsets = [0, 32], sizes = [2, 32], strides = [1, 1]} : vector<2x96xf32> to vector<2x32xf32>
    %232 = vector.extract_strided_slice %222 {offsets = [0, 32], sizes = [2, 32], strides = [1, 1]} : vector<2x96xf32> to vector<2x32xf32>
    %233 = arith.addf %231, %232 : vector<2x32xf32>
    %234 = arith.negf %233 : vector<2x32xf32>
    %235 = math.exp %234 : vector<2x32xf32>
    %cst_40 = arith.constant 1.000000e+00 : f32
    %236 = vector.broadcast %cst_40 : f32 to vector<2x32xf32>
    %237 = arith.addf %236, %235 : vector<2x32xf32>
    %238 = arith.divf %236, %237 : vector<2x32xf32>
    %239 = vector.extract_strided_slice %219 {offsets = [0, 64], sizes = [2, 32], strides = [1, 1]} : vector<2x96xf32> to vector<2x32xf32>
    %240 = vector.extract_strided_slice %222 {offsets = [0, 64], sizes = [2, 32], strides = [1, 1]} : vector<2x96xf32> to vector<2x32xf32>
    %241 = arith.mulf %230, %240 : vector<2x32xf32>
    %242 = arith.addf %239, %241 : vector<2x32xf32>
    %243 = math.tanh %242 : vector<2x32xf32>
    %cst_41 = arith.constant 1.000000e+00 : f32
    %244 = vector.broadcast %cst_41 : f32 to vector<2x32xf32>
    %245 = arith.subf %244, %238 : vector<2x32xf32>
    %246 = arith.mulf %245, %243 : vector<2x32xf32>
    %247 = arith.mulf %238, %218 : vector<2x32xf32>
    %248 = arith.addf %246, %247 : vector<2x32xf32>
    %c0_42 = arith.constant 0 : index
    %c0_43 = arith.constant 0 : index
    %249 = vector.load %arg5[%c0_42, %c0_43] : memref<16x96xf32, #tpu.memory_space<vmem>>, vector<16x96xf32>
    %c0_44 = arith.constant 0 : index
    %c0_45 = arith.constant 0 : index
    %250 = vector.load %arg6[%c0_44, %c0_45] : memref<32x96xf32, #tpu.memory_space<vmem>>, vector<32x96xf32>
    %c0_46 = arith.constant 0 : index
    %c0_47 = arith.constant 0 : index
    %251 = vector.load %arg7[%c0_46, %c0_47] : memref<1x96xf32, #tpu.memory_space<vmem>>, vector<1x96xf32>
    %c0_48 = arith.constant 0 : index
    %c0_49 = arith.constant 0 : index
    %252 = vector.load %arg8[%c0_48, %c0_49] : memref<1x96xf32, #tpu.memory_space<vmem>>, vector<1x96xf32>
    %cst_50 = arith.constant dense<0.000000e+00> : vector<16x96xf32>
    %253 = tpu.matmul %0, %249, %cst_50 {dimension_numbers = #tpu.dot_dimension_numbers<[1], [0], [0], [1], [0, 0, 1, 1], [], []>} : vector<16x16xf32>, vector<16x96xf32>, vector<16x96xf32> -> vector<16x96xf32>
    %254 = vector.broadcast %251 : vector<1x96xf32> to vector<16x96xf32>
    %255 = arith.addf %253, %254 : vector<16x96xf32>
    %cst_51 = arith.constant 0.000000e+00 : f32
    %256 = vector.broadcast %cst_51 : f32 to vector<2x32xf32>
    %257 = vector.extract_strided_slice %255 {offsets = [14, 0], sizes = [2, 96], strides = [1, 1]} : vector<16x96xf32> to vector<2x96xf32>
    %cst_52 = arith.constant dense<0.000000e+00> : vector<2x96xf32>
    %258 = tpu.matmul %256, %250, %cst_52 {dimension_numbers = #tpu.dot_dimension_numbers<[1], [0], [0], [1], [0, 0, 1, 1], [], []>} : vector<2x32xf32>, vector<32x96xf32>, vector<2x96xf32> -> vector<2x96xf32>
    %259 = vector.broadcast %252 : vector<1x96xf32> to vector<2x96xf32>
    %260 = arith.addf %258, %259 : vector<2x96xf32>
    %261 = vector.extract_strided_slice %257 {offsets = [0, 0], sizes = [2, 32], strides = [1, 1]} : vector<2x96xf32> to vector<2x32xf32>
    %262 = vector.extract_strided_slice %260 {offsets = [0, 0], sizes = [2, 32], strides = [1, 1]} : vector<2x96xf32> to vector<2x32xf32>
    %263 = arith.addf %261, %262 : vector<2x32xf32>
    %264 = arith.negf %263 : vector<2x32xf32>
    %265 = math.exp %264 : vector<2x32xf32>
    %cst_53 = arith.constant 1.000000e+00 : f32
    %266 = vector.broadcast %cst_53 : f32 to vector<2x32xf32>
    %267 = arith.addf %266, %265 : vector<2x32xf32>
    %268 = arith.divf %266, %267 : vector<2x32xf32>
    %269 = vector.extract_strided_slice %257 {offsets = [0, 32], sizes = [2, 32], strides = [1, 1]} : vector<2x96xf32> to vector<2x32xf32>
    %270 = vector.extract_strided_slice %260 {offsets = [0, 32], sizes = [2, 32], strides = [1, 1]} : vector<2x96xf32> to vector<2x32xf32>
    %271 = arith.addf %269, %270 : vector<2x32xf32>
    %272 = arith.negf %271 : vector<2x32xf32>
    %273 = math.exp %272 : vector<2x32xf32>
    %cst_54 = arith.constant 1.000000e+00 : f32
    %274 = vector.broadcast %cst_54 : f32 to vector<2x32xf32>
    %275 = arith.addf %274, %273 : vector<2x32xf32>
    %276 = arith.divf %274, %275 : vector<2x32xf32>
    %277 = vector.extract_strided_slice %257 {offsets = [0, 64], sizes = [2, 32], strides = [1, 1]} : vector<2x96xf32> to vector<2x32xf32>
    %278 = vector.extract_strided_slice %260 {offsets = [0, 64], sizes = [2, 32], strides = [1, 1]} : vector<2x96xf32> to vector<2x32xf32>
    %279 = arith.mulf %268, %278 : vector<2x32xf32>
    %280 = arith.addf %277, %279 : vector<2x32xf32>
    %281 = math.tanh %280 : vector<2x32xf32>
    %cst_55 = arith.constant 1.000000e+00 : f32
    %282 = vector.broadcast %cst_55 : f32 to vector<2x32xf32>
    %283 = arith.subf %282, %276 : vector<2x32xf32>
    %284 = arith.mulf %283, %281 : vector<2x32xf32>
    %285 = arith.mulf %276, %256 : vector<2x32xf32>
    %286 = arith.addf %284, %285 : vector<2x32xf32>
    %287 = vector.extract_strided_slice %255 {offsets = [12, 0], sizes = [2, 96], strides = [1, 1]} : vector<16x96xf32> to vector<2x96xf32>
    %cst_56 = arith.constant dense<0.000000e+00> : vector<2x96xf32>
    %288 = tpu.matmul %286, %250, %cst_56 {dimension_numbers = #tpu.dot_dimension_numbers<[1], [0], [0], [1], [0, 0, 1, 1], [], []>} : vector<2x32xf32>, vector<32x96xf32>, vector<2x96xf32> -> vector<2x96xf32>
    %289 = vector.broadcast %252 : vector<1x96xf32> to vector<2x96xf32>
    %290 = arith.addf %288, %289 : vector<2x96xf32>
    %291 = vector.extract_strided_slice %287 {offsets = [0, 0], sizes = [2, 32], strides = [1, 1]} : vector<2x96xf32> to vector<2x32xf32>
    %292 = vector.extract_strided_slice %290 {offsets = [0, 0], sizes = [2, 32], strides = [1, 1]} : vector<2x96xf32> to vector<2x32xf32>
    %293 = arith.addf %291, %292 : vector<2x32xf32>
    %294 = arith.negf %293 : vector<2x32xf32>
    %295 = math.exp %294 : vector<2x32xf32>
    %cst_57 = arith.constant 1.000000e+00 : f32
    %296 = vector.broadcast %cst_57 : f32 to vector<2x32xf32>
    %297 = arith.addf %296, %295 : vector<2x32xf32>
    %298 = arith.divf %296, %297 : vector<2x32xf32>
    %299 = vector.extract_strided_slice %287 {offsets = [0, 32], sizes = [2, 32], strides = [1, 1]} : vector<2x96xf32> to vector<2x32xf32>
    %300 = vector.extract_strided_slice %290 {offsets = [0, 32], sizes = [2, 32], strides = [1, 1]} : vector<2x96xf32> to vector<2x32xf32>
    %301 = arith.addf %299, %300 : vector<2x32xf32>
    %302 = arith.negf %301 : vector<2x32xf32>
    %303 = math.exp %302 : vector<2x32xf32>
    %cst_58 = arith.constant 1.000000e+00 : f32
    %304 = vector.broadcast %cst_58 : f32 to vector<2x32xf32>
    %305 = arith.addf %304, %303 : vector<2x32xf32>
    %306 = arith.divf %304, %305 : vector<2x32xf32>
    %307 = vector.extract_strided_slice %287 {offsets = [0, 64], sizes = [2, 32], strides = [1, 1]} : vector<2x96xf32> to vector<2x32xf32>
    %308 = vector.extract_strided_slice %290 {offsets = [0, 64], sizes = [2, 32], strides = [1, 1]} : vector<2x96xf32> to vector<2x32xf32>
    %309 = arith.mulf %298, %308 : vector<2x32xf32>
    %310 = arith.addf %307, %309 : vector<2x32xf32>
    %311 = math.tanh %310 : vector<2x32xf32>
    %cst_59 = arith.constant 1.000000e+00 : f32
    %312 = vector.broadcast %cst_59 : f32 to vector<2x32xf32>
    %313 = arith.subf %312, %306 : vector<2x32xf32>
    %314 = arith.mulf %313, %311 : vector<2x32xf32>
    %315 = arith.mulf %306, %286 : vector<2x32xf32>
    %316 = arith.addf %314, %315 : vector<2x32xf32>
    %317 = vector.extract_strided_slice %255 {offsets = [10, 0], sizes = [2, 96], strides = [1, 1]} : vector<16x96xf32> to vector<2x96xf32>
    %cst_60 = arith.constant dense<0.000000e+00> : vector<2x96xf32>
    %318 = tpu.matmul %316, %250, %cst_60 {dimension_numbers = #tpu.dot_dimension_numbers<[1], [0], [0], [1], [0, 0, 1, 1], [], []>} : vector<2x32xf32>, vector<32x96xf32>, vector<2x96xf32> -> vector<2x96xf32>
    %319 = vector.broadcast %252 : vector<1x96xf32> to vector<2x96xf32>
    %320 = arith.addf %318, %319 : vector<2x96xf32>
    %321 = vector.extract_strided_slice %317 {offsets = [0, 0], sizes = [2, 32], strides = [1, 1]} : vector<2x96xf32> to vector<2x32xf32>
    %322 = vector.extract_strided_slice %320 {offsets = [0, 0], sizes = [2, 32], strides = [1, 1]} : vector<2x96xf32> to vector<2x32xf32>
    %323 = arith.addf %321, %322 : vector<2x32xf32>
    %324 = arith.negf %323 : vector<2x32xf32>
    %325 = math.exp %324 : vector<2x32xf32>
    %cst_61 = arith.constant 1.000000e+00 : f32
    %326 = vector.broadcast %cst_61 : f32 to vector<2x32xf32>
    %327 = arith.addf %326, %325 : vector<2x32xf32>
    %328 = arith.divf %326, %327 : vector<2x32xf32>
    %329 = vector.extract_strided_slice %317 {offsets = [0, 32], sizes = [2, 32], strides = [1, 1]} : vector<2x96xf32> to vector<2x32xf32>
    %330 = vector.extract_strided_slice %320 {offsets = [0, 32], sizes = [2, 32], strides = [1, 1]} : vector<2x96xf32> to vector<2x32xf32>
    %331 = arith.addf %329, %330 : vector<2x32xf32>
    %332 = arith.negf %331 : vector<2x32xf32>
    %333 = math.exp %332 : vector<2x32xf32>
    %cst_62 = arith.constant 1.000000e+00 : f32
    %334 = vector.broadcast %cst_62 : f32 to vector<2x32xf32>
    %335 = arith.addf %334, %333 : vector<2x32xf32>
    %336 = arith.divf %334, %335 : vector<2x32xf32>
    %337 = vector.extract_strided_slice %317 {offsets = [0, 64], sizes = [2, 32], strides = [1, 1]} : vector<2x96xf32> to vector<2x32xf32>
    %338 = vector.extract_strided_slice %320 {offsets = [0, 64], sizes = [2, 32], strides = [1, 1]} : vector<2x96xf32> to vector<2x32xf32>
    %339 = arith.mulf %328, %338 : vector<2x32xf32>
    %340 = arith.addf %337, %339 : vector<2x32xf32>
    %341 = math.tanh %340 : vector<2x32xf32>
    %cst_63 = arith.constant 1.000000e+00 : f32
    %342 = vector.broadcast %cst_63 : f32 to vector<2x32xf32>
    %343 = arith.subf %342, %336 : vector<2x32xf32>
    %344 = arith.mulf %343, %341 : vector<2x32xf32>
    %345 = arith.mulf %336, %316 : vector<2x32xf32>
    %346 = arith.addf %344, %345 : vector<2x32xf32>
    %347 = vector.extract_strided_slice %255 {offsets = [8, 0], sizes = [2, 96], strides = [1, 1]} : vector<16x96xf32> to vector<2x96xf32>
    %cst_64 = arith.constant dense<0.000000e+00> : vector<2x96xf32>
    %348 = tpu.matmul %346, %250, %cst_64 {dimension_numbers = #tpu.dot_dimension_numbers<[1], [0], [0], [1], [0, 0, 1, 1], [], []>} : vector<2x32xf32>, vector<32x96xf32>, vector<2x96xf32> -> vector<2x96xf32>
    %349 = vector.broadcast %252 : vector<1x96xf32> to vector<2x96xf32>
    %350 = arith.addf %348, %349 : vector<2x96xf32>
    %351 = vector.extract_strided_slice %347 {offsets = [0, 0], sizes = [2, 32], strides = [1, 1]} : vector<2x96xf32> to vector<2x32xf32>
    %352 = vector.extract_strided_slice %350 {offsets = [0, 0], sizes = [2, 32], strides = [1, 1]} : vector<2x96xf32> to vector<2x32xf32>
    %353 = arith.addf %351, %352 : vector<2x32xf32>
    %354 = arith.negf %353 : vector<2x32xf32>
    %355 = math.exp %354 : vector<2x32xf32>
    %cst_65 = arith.constant 1.000000e+00 : f32
    %356 = vector.broadcast %cst_65 : f32 to vector<2x32xf32>
    %357 = arith.addf %356, %355 : vector<2x32xf32>
    %358 = arith.divf %356, %357 : vector<2x32xf32>
    %359 = vector.extract_strided_slice %347 {offsets = [0, 32], sizes = [2, 32], strides = [1, 1]} : vector<2x96xf32> to vector<2x32xf32>
    %360 = vector.extract_strided_slice %350 {offsets = [0, 32], sizes = [2, 32], strides = [1, 1]} : vector<2x96xf32> to vector<2x32xf32>
    %361 = arith.addf %359, %360 : vector<2x32xf32>
    %362 = arith.negf %361 : vector<2x32xf32>
    %363 = math.exp %362 : vector<2x32xf32>
    %cst_66 = arith.constant 1.000000e+00 : f32
    %364 = vector.broadcast %cst_66 : f32 to vector<2x32xf32>
    %365 = arith.addf %364, %363 : vector<2x32xf32>
    %366 = arith.divf %364, %365 : vector<2x32xf32>
    %367 = vector.extract_strided_slice %347 {offsets = [0, 64], sizes = [2, 32], strides = [1, 1]} : vector<2x96xf32> to vector<2x32xf32>
    %368 = vector.extract_strided_slice %350 {offsets = [0, 64], sizes = [2, 32], strides = [1, 1]} : vector<2x96xf32> to vector<2x32xf32>
    %369 = arith.mulf %358, %368 : vector<2x32xf32>
    %370 = arith.addf %367, %369 : vector<2x32xf32>
    %371 = math.tanh %370 : vector<2x32xf32>
    %cst_67 = arith.constant 1.000000e+00 : f32
    %372 = vector.broadcast %cst_67 : f32 to vector<2x32xf32>
    %373 = arith.subf %372, %366 : vector<2x32xf32>
    %374 = arith.mulf %373, %371 : vector<2x32xf32>
    %375 = arith.mulf %366, %346 : vector<2x32xf32>
    %376 = arith.addf %374, %375 : vector<2x32xf32>
    %377 = vector.extract_strided_slice %255 {offsets = [6, 0], sizes = [2, 96], strides = [1, 1]} : vector<16x96xf32> to vector<2x96xf32>
    %cst_68 = arith.constant dense<0.000000e+00> : vector<2x96xf32>
    %378 = tpu.matmul %376, %250, %cst_68 {dimension_numbers = #tpu.dot_dimension_numbers<[1], [0], [0], [1], [0, 0, 1, 1], [], []>} : vector<2x32xf32>, vector<32x96xf32>, vector<2x96xf32> -> vector<2x96xf32>
    %379 = vector.broadcast %252 : vector<1x96xf32> to vector<2x96xf32>
    %380 = arith.addf %378, %379 : vector<2x96xf32>
    %381 = vector.extract_strided_slice %377 {offsets = [0, 0], sizes = [2, 32], strides = [1, 1]} : vector<2x96xf32> to vector<2x32xf32>
    %382 = vector.extract_strided_slice %380 {offsets = [0, 0], sizes = [2, 32], strides = [1, 1]} : vector<2x96xf32> to vector<2x32xf32>
    %383 = arith.addf %381, %382 : vector<2x32xf32>
    %384 = arith.negf %383 : vector<2x32xf32>
    %385 = math.exp %384 : vector<2x32xf32>
    %cst_69 = arith.constant 1.000000e+00 : f32
    %386 = vector.broadcast %cst_69 : f32 to vector<2x32xf32>
    %387 = arith.addf %386, %385 : vector<2x32xf32>
    %388 = arith.divf %386, %387 : vector<2x32xf32>
    %389 = vector.extract_strided_slice %377 {offsets = [0, 32], sizes = [2, 32], strides = [1, 1]} : vector<2x96xf32> to vector<2x32xf32>
    %390 = vector.extract_strided_slice %380 {offsets = [0, 32], sizes = [2, 32], strides = [1, 1]} : vector<2x96xf32> to vector<2x32xf32>
    %391 = arith.addf %389, %390 : vector<2x32xf32>
    %392 = arith.negf %391 : vector<2x32xf32>
    %393 = math.exp %392 : vector<2x32xf32>
    %cst_70 = arith.constant 1.000000e+00 : f32
    %394 = vector.broadcast %cst_70 : f32 to vector<2x32xf32>
    %395 = arith.addf %394, %393 : vector<2x32xf32>
    %396 = arith.divf %394, %395 : vector<2x32xf32>
    %397 = vector.extract_strided_slice %377 {offsets = [0, 64], sizes = [2, 32], strides = [1, 1]} : vector<2x96xf32> to vector<2x32xf32>
    %398 = vector.extract_strided_slice %380 {offsets = [0, 64], sizes = [2, 32], strides = [1, 1]} : vector<2x96xf32> to vector<2x32xf32>
    %399 = arith.mulf %388, %398 : vector<2x32xf32>
    %400 = arith.addf %397, %399 : vector<2x32xf32>
    %401 = math.tanh %400 : vector<2x32xf32>
    %cst_71 = arith.constant 1.000000e+00 : f32
    %402 = vector.broadcast %cst_71 : f32 to vector<2x32xf32>
    %403 = arith.subf %402, %396 : vector<2x32xf32>
    %404 = arith.mulf %403, %401 : vector<2x32xf32>
    %405 = arith.mulf %396, %376 : vector<2x32xf32>
    %406 = arith.addf %404, %405 : vector<2x32xf32>
    %407 = vector.extract_strided_slice %255 {offsets = [4, 0], sizes = [2, 96], strides = [1, 1]} : vector<16x96xf32> to vector<2x96xf32>
    %cst_72 = arith.constant dense<0.000000e+00> : vector<2x96xf32>
    %408 = tpu.matmul %406, %250, %cst_72 {dimension_numbers = #tpu.dot_dimension_numbers<[1], [0], [0], [1], [0, 0, 1, 1], [], []>} : vector<2x32xf32>, vector<32x96xf32>, vector<2x96xf32> -> vector<2x96xf32>
    %409 = vector.broadcast %252 : vector<1x96xf32> to vector<2x96xf32>
    %410 = arith.addf %408, %409 : vector<2x96xf32>
    %411 = vector.extract_strided_slice %407 {offsets = [0, 0], sizes = [2, 32], strides = [1, 1]} : vector<2x96xf32> to vector<2x32xf32>
    %412 = vector.extract_strided_slice %410 {offsets = [0, 0], sizes = [2, 32], strides = [1, 1]} : vector<2x96xf32> to vector<2x32xf32>
    %413 = arith.addf %411, %412 : vector<2x32xf32>
    %414 = arith.negf %413 : vector<2x32xf32>
    %415 = math.exp %414 : vector<2x32xf32>
    %cst_73 = arith.constant 1.000000e+00 : f32
    %416 = vector.broadcast %cst_73 : f32 to vector<2x32xf32>
    %417 = arith.addf %416, %415 : vector<2x32xf32>
    %418 = arith.divf %416, %417 : vector<2x32xf32>
    %419 = vector.extract_strided_slice %407 {offsets = [0, 32], sizes = [2, 32], strides = [1, 1]} : vector<2x96xf32> to vector<2x32xf32>
    %420 = vector.extract_strided_slice %410 {offsets = [0, 32], sizes = [2, 32], strides = [1, 1]} : vector<2x96xf32> to vector<2x32xf32>
    %421 = arith.addf %419, %420 : vector<2x32xf32>
    %422 = arith.negf %421 : vector<2x32xf32>
    %423 = math.exp %422 : vector<2x32xf32>
    %cst_74 = arith.constant 1.000000e+00 : f32
    %424 = vector.broadcast %cst_74 : f32 to vector<2x32xf32>
    %425 = arith.addf %424, %423 : vector<2x32xf32>
    %426 = arith.divf %424, %425 : vector<2x32xf32>
    %427 = vector.extract_strided_slice %407 {offsets = [0, 64], sizes = [2, 32], strides = [1, 1]} : vector<2x96xf32> to vector<2x32xf32>
    %428 = vector.extract_strided_slice %410 {offsets = [0, 64], sizes = [2, 32], strides = [1, 1]} : vector<2x96xf32> to vector<2x32xf32>
    %429 = arith.mulf %418, %428 : vector<2x32xf32>
    %430 = arith.addf %427, %429 : vector<2x32xf32>
    %431 = math.tanh %430 : vector<2x32xf32>
    %cst_75 = arith.constant 1.000000e+00 : f32
    %432 = vector.broadcast %cst_75 : f32 to vector<2x32xf32>
    %433 = arith.subf %432, %426 : vector<2x32xf32>
    %434 = arith.mulf %433, %431 : vector<2x32xf32>
    %435 = arith.mulf %426, %406 : vector<2x32xf32>
    %436 = arith.addf %434, %435 : vector<2x32xf32>
    %437 = vector.extract_strided_slice %255 {offsets = [2, 0], sizes = [2, 96], strides = [1, 1]} : vector<16x96xf32> to vector<2x96xf32>
    %cst_76 = arith.constant dense<0.000000e+00> : vector<2x96xf32>
    %438 = tpu.matmul %436, %250, %cst_76 {dimension_numbers = #tpu.dot_dimension_numbers<[1], [0], [0], [1], [0, 0, 1, 1], [], []>} : vector<2x32xf32>, vector<32x96xf32>, vector<2x96xf32> -> vector<2x96xf32>
    %439 = vector.broadcast %252 : vector<1x96xf32> to vector<2x96xf32>
    %440 = arith.addf %438, %439 : vector<2x96xf32>
    %441 = vector.extract_strided_slice %437 {offsets = [0, 0], sizes = [2, 32], strides = [1, 1]} : vector<2x96xf32> to vector<2x32xf32>
    %442 = vector.extract_strided_slice %440 {offsets = [0, 0], sizes = [2, 32], strides = [1, 1]} : vector<2x96xf32> to vector<2x32xf32>
    %443 = arith.addf %441, %442 : vector<2x32xf32>
    %444 = arith.negf %443 : vector<2x32xf32>
    %445 = math.exp %444 : vector<2x32xf32>
    %cst_77 = arith.constant 1.000000e+00 : f32
    %446 = vector.broadcast %cst_77 : f32 to vector<2x32xf32>
    %447 = arith.addf %446, %445 : vector<2x32xf32>
    %448 = arith.divf %446, %447 : vector<2x32xf32>
    %449 = vector.extract_strided_slice %437 {offsets = [0, 32], sizes = [2, 32], strides = [1, 1]} : vector<2x96xf32> to vector<2x32xf32>
    %450 = vector.extract_strided_slice %440 {offsets = [0, 32], sizes = [2, 32], strides = [1, 1]} : vector<2x96xf32> to vector<2x32xf32>
    %451 = arith.addf %449, %450 : vector<2x32xf32>
    %452 = arith.negf %451 : vector<2x32xf32>
    %453 = math.exp %452 : vector<2x32xf32>
    %cst_78 = arith.constant 1.000000e+00 : f32
    %454 = vector.broadcast %cst_78 : f32 to vector<2x32xf32>
    %455 = arith.addf %454, %453 : vector<2x32xf32>
    %456 = arith.divf %454, %455 : vector<2x32xf32>
    %457 = vector.extract_strided_slice %437 {offsets = [0, 64], sizes = [2, 32], strides = [1, 1]} : vector<2x96xf32> to vector<2x32xf32>
    %458 = vector.extract_strided_slice %440 {offsets = [0, 64], sizes = [2, 32], strides = [1, 1]} : vector<2x96xf32> to vector<2x32xf32>
    %459 = arith.mulf %448, %458 : vector<2x32xf32>
    %460 = arith.addf %457, %459 : vector<2x32xf32>
    %461 = math.tanh %460 : vector<2x32xf32>
    %cst_79 = arith.constant 1.000000e+00 : f32
    %462 = vector.broadcast %cst_79 : f32 to vector<2x32xf32>
    %463 = arith.subf %462, %456 : vector<2x32xf32>
    %464 = arith.mulf %463, %461 : vector<2x32xf32>
    %465 = arith.mulf %456, %436 : vector<2x32xf32>
    %466 = arith.addf %464, %465 : vector<2x32xf32>
    %467 = vector.extract_strided_slice %255 {offsets = [0, 0], sizes = [2, 96], strides = [1, 1]} : vector<16x96xf32> to vector<2x96xf32>
    %cst_80 = arith.constant dense<0.000000e+00> : vector<2x96xf32>
    %468 = tpu.matmul %466, %250, %cst_80 {dimension_numbers = #tpu.dot_dimension_numbers<[1], [0], [0], [1], [0, 0, 1, 1], [], []>} : vector<2x32xf32>, vector<32x96xf32>, vector<2x96xf32> -> vector<2x96xf32>
    %469 = vector.broadcast %252 : vector<1x96xf32> to vector<2x96xf32>
    %470 = arith.addf %468, %469 : vector<2x96xf32>
    %471 = vector.extract_strided_slice %467 {offsets = [0, 0], sizes = [2, 32], strides = [1, 1]} : vector<2x96xf32> to vector<2x32xf32>
    %472 = vector.extract_strided_slice %470 {offsets = [0, 0], sizes = [2, 32], strides = [1, 1]} : vector<2x96xf32> to vector<2x32xf32>
    %473 = arith.addf %471, %472 : vector<2x32xf32>
    %474 = arith.negf %473 : vector<2x32xf32>
    %475 = math.exp %474 : vector<2x32xf32>
    %cst_81 = arith.constant 1.000000e+00 : f32
    %476 = vector.broadcast %cst_81 : f32 to vector<2x32xf32>
    %477 = arith.addf %476, %475 : vector<2x32xf32>
    %478 = arith.divf %476, %477 : vector<2x32xf32>
    %479 = vector.extract_strided_slice %467 {offsets = [0, 32], sizes = [2, 32], strides = [1, 1]} : vector<2x96xf32> to vector<2x32xf32>
    %480 = vector.extract_strided_slice %470 {offsets = [0, 32], sizes = [2, 32], strides = [1, 1]} : vector<2x96xf32> to vector<2x32xf32>
    %481 = arith.addf %479, %480 : vector<2x32xf32>
    %482 = arith.negf %481 : vector<2x32xf32>
    %483 = math.exp %482 : vector<2x32xf32>
    %cst_82 = arith.constant 1.000000e+00 : f32
    %484 = vector.broadcast %cst_82 : f32 to vector<2x32xf32>
    %485 = arith.addf %484, %483 : vector<2x32xf32>
    %486 = arith.divf %484, %485 : vector<2x32xf32>
    %487 = vector.extract_strided_slice %467 {offsets = [0, 64], sizes = [2, 32], strides = [1, 1]} : vector<2x96xf32> to vector<2x32xf32>
    %488 = vector.extract_strided_slice %470 {offsets = [0, 64], sizes = [2, 32], strides = [1, 1]} : vector<2x96xf32> to vector<2x32xf32>
    %489 = arith.mulf %478, %488 : vector<2x32xf32>
    %490 = arith.addf %487, %489 : vector<2x32xf32>
    %491 = math.tanh %490 : vector<2x32xf32>
    %cst_83 = arith.constant 1.000000e+00 : f32
    %492 = vector.broadcast %cst_83 : f32 to vector<2x32xf32>
    %493 = arith.subf %492, %486 : vector<2x32xf32>
    %494 = arith.mulf %493, %491 : vector<2x32xf32>
    %495 = arith.mulf %486, %466 : vector<2x32xf32>
    %496 = arith.addf %494, %495 : vector<2x32xf32>
    %497 = tpu.concatenate %38, %496 in 1 : vector<2x32xf32>, vector<2x32xf32> -> vector<2x64xf32>
    %498 = tpu.concatenate %68, %466 in 1 : vector<2x32xf32>, vector<2x32xf32> -> vector<2x64xf32>
    %499 = tpu.concatenate %98, %436 in 1 : vector<2x32xf32>, vector<2x32xf32> -> vector<2x64xf32>
    %500 = tpu.concatenate %128, %406 in 1 : vector<2x32xf32>, vector<2x32xf32> -> vector<2x64xf32>
    %501 = tpu.concatenate %158, %376 in 1 : vector<2x32xf32>, vector<2x32xf32> -> vector<2x64xf32>
    %502 = tpu.concatenate %188, %346 in 1 : vector<2x32xf32>, vector<2x32xf32> -> vector<2x64xf32>
    %503 = tpu.concatenate %218, %316 in 1 : vector<2x32xf32>, vector<2x32xf32> -> vector<2x64xf32>
    %504 = tpu.concatenate %248, %286 in 1 : vector<2x32xf32>, vector<2x32xf32> -> vector<2x64xf32>
    %505 = tpu.concatenate %497, %498, %499, %500, %501, %502, %503, %504 in 0 : vector<2x64xf32>, vector<2x64xf32>, vector<2x64xf32>, vector<2x64xf32>, vector<2x64xf32>, vector<2x64xf32>, vector<2x64xf32>, vector<2x64xf32> -> vector<16x64xf32>
    %c0_84 = arith.constant 0 : index
    %c0_85 = arith.constant 0 : index
    %506 = vector.load %arg9[%c0_84, %c0_85] : memref<64x96xf32, #tpu.memory_space<vmem>>, vector<64x96xf32>
    %c0_86 = arith.constant 0 : index
    %c0_87 = arith.constant 0 : index
    %507 = vector.load %arg10[%c0_86, %c0_87] : memref<32x96xf32, #tpu.memory_space<vmem>>, vector<32x96xf32>
    %c0_88 = arith.constant 0 : index
    %c0_89 = arith.constant 0 : index
    %508 = vector.load %arg11[%c0_88, %c0_89] : memref<1x96xf32, #tpu.memory_space<vmem>>, vector<1x96xf32>
    %c0_90 = arith.constant 0 : index
    %c0_91 = arith.constant 0 : index
    %509 = vector.load %arg12[%c0_90, %c0_91] : memref<1x96xf32, #tpu.memory_space<vmem>>, vector<1x96xf32>
    %cst_92 = arith.constant dense<0.000000e+00> : vector<16x96xf32>
    %510 = tpu.matmul %505, %506, %cst_92 {dimension_numbers = #tpu.dot_dimension_numbers<[1], [0], [0], [1], [0, 0, 1, 1], [], []>} : vector<16x64xf32>, vector<64x96xf32>, vector<16x96xf32> -> vector<16x96xf32>
    %511 = vector.broadcast %508 : vector<1x96xf32> to vector<16x96xf32>
    %512 = arith.addf %510, %511 : vector<16x96xf32>
    %cst_93 = arith.constant 0.000000e+00 : f32
    %513 = vector.broadcast %cst_93 : f32 to vector<2x32xf32>
    %514 = vector.extract_strided_slice %512 {offsets = [0, 0], sizes = [2, 96], strides = [1, 1]} : vector<16x96xf32> to vector<2x96xf32>
    %cst_94 = arith.constant dense<0.000000e+00> : vector<2x96xf32>
    %515 = tpu.matmul %513, %507, %cst_94 {dimension_numbers = #tpu.dot_dimension_numbers<[1], [0], [0], [1], [0, 0, 1, 1], [], []>} : vector<2x32xf32>, vector<32x96xf32>, vector<2x96xf32> -> vector<2x96xf32>
    %516 = vector.broadcast %509 : vector<1x96xf32> to vector<2x96xf32>
    %517 = arith.addf %515, %516 : vector<2x96xf32>
    %518 = vector.extract_strided_slice %514 {offsets = [0, 0], sizes = [2, 32], strides = [1, 1]} : vector<2x96xf32> to vector<2x32xf32>
    %519 = vector.extract_strided_slice %517 {offsets = [0, 0], sizes = [2, 32], strides = [1, 1]} : vector<2x96xf32> to vector<2x32xf32>
    %520 = arith.addf %518, %519 : vector<2x32xf32>
    %521 = arith.negf %520 : vector<2x32xf32>
    %522 = math.exp %521 : vector<2x32xf32>
    %cst_95 = arith.constant 1.000000e+00 : f32
    %523 = vector.broadcast %cst_95 : f32 to vector<2x32xf32>
    %524 = arith.addf %523, %522 : vector<2x32xf32>
    %525 = arith.divf %523, %524 : vector<2x32xf32>
    %526 = vector.extract_strided_slice %514 {offsets = [0, 32], sizes = [2, 32], strides = [1, 1]} : vector<2x96xf32> to vector<2x32xf32>
    %527 = vector.extract_strided_slice %517 {offsets = [0, 32], sizes = [2, 32], strides = [1, 1]} : vector<2x96xf32> to vector<2x32xf32>
    %528 = arith.addf %526, %527 : vector<2x32xf32>
    %529 = arith.negf %528 : vector<2x32xf32>
    %530 = math.exp %529 : vector<2x32xf32>
    %cst_96 = arith.constant 1.000000e+00 : f32
    %531 = vector.broadcast %cst_96 : f32 to vector<2x32xf32>
    %532 = arith.addf %531, %530 : vector<2x32xf32>
    %533 = arith.divf %531, %532 : vector<2x32xf32>
    %534 = vector.extract_strided_slice %514 {offsets = [0, 64], sizes = [2, 32], strides = [1, 1]} : vector<2x96xf32> to vector<2x32xf32>
    %535 = vector.extract_strided_slice %517 {offsets = [0, 64], sizes = [2, 32], strides = [1, 1]} : vector<2x96xf32> to vector<2x32xf32>
    %536 = arith.mulf %525, %535 : vector<2x32xf32>
    %537 = arith.addf %534, %536 : vector<2x32xf32>
    %538 = math.tanh %537 : vector<2x32xf32>
    %cst_97 = arith.constant 1.000000e+00 : f32
    %539 = vector.broadcast %cst_97 : f32 to vector<2x32xf32>
    %540 = arith.subf %539, %533 : vector<2x32xf32>
    %541 = arith.mulf %540, %538 : vector<2x32xf32>
    %542 = arith.mulf %533, %513 : vector<2x32xf32>
    %543 = arith.addf %541, %542 : vector<2x32xf32>
    %544 = vector.extract_strided_slice %512 {offsets = [2, 0], sizes = [2, 96], strides = [1, 1]} : vector<16x96xf32> to vector<2x96xf32>
    %cst_98 = arith.constant dense<0.000000e+00> : vector<2x96xf32>
    %545 = tpu.matmul %543, %507, %cst_98 {dimension_numbers = #tpu.dot_dimension_numbers<[1], [0], [0], [1], [0, 0, 1, 1], [], []>} : vector<2x32xf32>, vector<32x96xf32>, vector<2x96xf32> -> vector<2x96xf32>
    %546 = vector.broadcast %509 : vector<1x96xf32> to vector<2x96xf32>
    %547 = arith.addf %545, %546 : vector<2x96xf32>
    %548 = vector.extract_strided_slice %544 {offsets = [0, 0], sizes = [2, 32], strides = [1, 1]} : vector<2x96xf32> to vector<2x32xf32>
    %549 = vector.extract_strided_slice %547 {offsets = [0, 0], sizes = [2, 32], strides = [1, 1]} : vector<2x96xf32> to vector<2x32xf32>
    %550 = arith.addf %548, %549 : vector<2x32xf32>
    %551 = arith.negf %550 : vector<2x32xf32>
    %552 = math.exp %551 : vector<2x32xf32>
    %cst_99 = arith.constant 1.000000e+00 : f32
    %553 = vector.broadcast %cst_99 : f32 to vector<2x32xf32>
    %554 = arith.addf %553, %552 : vector<2x32xf32>
    %555 = arith.divf %553, %554 : vector<2x32xf32>
    %556 = vector.extract_strided_slice %544 {offsets = [0, 32], sizes = [2, 32], strides = [1, 1]} : vector<2x96xf32> to vector<2x32xf32>
    %557 = vector.extract_strided_slice %547 {offsets = [0, 32], sizes = [2, 32], strides = [1, 1]} : vector<2x96xf32> to vector<2x32xf32>
    %558 = arith.addf %556, %557 : vector<2x32xf32>
    %559 = arith.negf %558 : vector<2x32xf32>
    %560 = math.exp %559 : vector<2x32xf32>
    %cst_100 = arith.constant 1.000000e+00 : f32
    %561 = vector.broadcast %cst_100 : f32 to vector<2x32xf32>
    %562 = arith.addf %561, %560 : vector<2x32xf32>
    %563 = arith.divf %561, %562 : vector<2x32xf32>
    %564 = vector.extract_strided_slice %544 {offsets = [0, 64], sizes = [2, 32], strides = [1, 1]} : vector<2x96xf32> to vector<2x32xf32>
    %565 = vector.extract_strided_slice %547 {offsets = [0, 64], sizes = [2, 32], strides = [1, 1]} : vector<2x96xf32> to vector<2x32xf32>
    %566 = arith.mulf %555, %565 : vector<2x32xf32>
    %567 = arith.addf %564, %566 : vector<2x32xf32>
    %568 = math.tanh %567 : vector<2x32xf32>
    %cst_101 = arith.constant 1.000000e+00 : f32
    %569 = vector.broadcast %cst_101 : f32 to vector<2x32xf32>
    %570 = arith.subf %569, %563 : vector<2x32xf32>
    %571 = arith.mulf %570, %568 : vector<2x32xf32>
    %572 = arith.mulf %563, %543 : vector<2x32xf32>
    %573 = arith.addf %571, %572 : vector<2x32xf32>
    %574 = vector.extract_strided_slice %512 {offsets = [4, 0], sizes = [2, 96], strides = [1, 1]} : vector<16x96xf32> to vector<2x96xf32>
    %cst_102 = arith.constant dense<0.000000e+00> : vector<2x96xf32>
    %575 = tpu.matmul %573, %507, %cst_102 {dimension_numbers = #tpu.dot_dimension_numbers<[1], [0], [0], [1], [0, 0, 1, 1], [], []>} : vector<2x32xf32>, vector<32x96xf32>, vector<2x96xf32> -> vector<2x96xf32>
    %576 = vector.broadcast %509 : vector<1x96xf32> to vector<2x96xf32>
    %577 = arith.addf %575, %576 : vector<2x96xf32>
    %578 = vector.extract_strided_slice %574 {offsets = [0, 0], sizes = [2, 32], strides = [1, 1]} : vector<2x96xf32> to vector<2x32xf32>
    %579 = vector.extract_strided_slice %577 {offsets = [0, 0], sizes = [2, 32], strides = [1, 1]} : vector<2x96xf32> to vector<2x32xf32>
    %580 = arith.addf %578, %579 : vector<2x32xf32>
    %581 = arith.negf %580 : vector<2x32xf32>
    %582 = math.exp %581 : vector<2x32xf32>
    %cst_103 = arith.constant 1.000000e+00 : f32
    %583 = vector.broadcast %cst_103 : f32 to vector<2x32xf32>
    %584 = arith.addf %583, %582 : vector<2x32xf32>
    %585 = arith.divf %583, %584 : vector<2x32xf32>
    %586 = vector.extract_strided_slice %574 {offsets = [0, 32], sizes = [2, 32], strides = [1, 1]} : vector<2x96xf32> to vector<2x32xf32>
    %587 = vector.extract_strided_slice %577 {offsets = [0, 32], sizes = [2, 32], strides = [1, 1]} : vector<2x96xf32> to vector<2x32xf32>
    %588 = arith.addf %586, %587 : vector<2x32xf32>
    %589 = arith.negf %588 : vector<2x32xf32>
    %590 = math.exp %589 : vector<2x32xf32>
    %cst_104 = arith.constant 1.000000e+00 : f32
    %591 = vector.broadcast %cst_104 : f32 to vector<2x32xf32>
    %592 = arith.addf %591, %590 : vector<2x32xf32>
    %593 = arith.divf %591, %592 : vector<2x32xf32>
    %594 = vector.extract_strided_slice %574 {offsets = [0, 64], sizes = [2, 32], strides = [1, 1]} : vector<2x96xf32> to vector<2x32xf32>
    %595 = vector.extract_strided_slice %577 {offsets = [0, 64], sizes = [2, 32], strides = [1, 1]} : vector<2x96xf32> to vector<2x32xf32>
    %596 = arith.mulf %585, %595 : vector<2x32xf32>
    %597 = arith.addf %594, %596 : vector<2x32xf32>
    %598 = math.tanh %597 : vector<2x32xf32>
    %cst_105 = arith.constant 1.000000e+00 : f32
    %599 = vector.broadcast %cst_105 : f32 to vector<2x32xf32>
    %600 = arith.subf %599, %593 : vector<2x32xf32>
    %601 = arith.mulf %600, %598 : vector<2x32xf32>
    %602 = arith.mulf %593, %573 : vector<2x32xf32>
    %603 = arith.addf %601, %602 : vector<2x32xf32>
    %604 = vector.extract_strided_slice %512 {offsets = [6, 0], sizes = [2, 96], strides = [1, 1]} : vector<16x96xf32> to vector<2x96xf32>
    %cst_106 = arith.constant dense<0.000000e+00> : vector<2x96xf32>
    %605 = tpu.matmul %603, %507, %cst_106 {dimension_numbers = #tpu.dot_dimension_numbers<[1], [0], [0], [1], [0, 0, 1, 1], [], []>} : vector<2x32xf32>, vector<32x96xf32>, vector<2x96xf32> -> vector<2x96xf32>
    %606 = vector.broadcast %509 : vector<1x96xf32> to vector<2x96xf32>
    %607 = arith.addf %605, %606 : vector<2x96xf32>
    %608 = vector.extract_strided_slice %604 {offsets = [0, 0], sizes = [2, 32], strides = [1, 1]} : vector<2x96xf32> to vector<2x32xf32>
    %609 = vector.extract_strided_slice %607 {offsets = [0, 0], sizes = [2, 32], strides = [1, 1]} : vector<2x96xf32> to vector<2x32xf32>
    %610 = arith.addf %608, %609 : vector<2x32xf32>
    %611 = arith.negf %610 : vector<2x32xf32>
    %612 = math.exp %611 : vector<2x32xf32>
    %cst_107 = arith.constant 1.000000e+00 : f32
    %613 = vector.broadcast %cst_107 : f32 to vector<2x32xf32>
    %614 = arith.addf %613, %612 : vector<2x32xf32>
    %615 = arith.divf %613, %614 : vector<2x32xf32>
    %616 = vector.extract_strided_slice %604 {offsets = [0, 32], sizes = [2, 32], strides = [1, 1]} : vector<2x96xf32> to vector<2x32xf32>
    %617 = vector.extract_strided_slice %607 {offsets = [0, 32], sizes = [2, 32], strides = [1, 1]} : vector<2x96xf32> to vector<2x32xf32>
    %618 = arith.addf %616, %617 : vector<2x32xf32>
    %619 = arith.negf %618 : vector<2x32xf32>
    %620 = math.exp %619 : vector<2x32xf32>
    %cst_108 = arith.constant 1.000000e+00 : f32
    %621 = vector.broadcast %cst_108 : f32 to vector<2x32xf32>
    %622 = arith.addf %621, %620 : vector<2x32xf32>
    %623 = arith.divf %621, %622 : vector<2x32xf32>
    %624 = vector.extract_strided_slice %604 {offsets = [0, 64], sizes = [2, 32], strides = [1, 1]} : vector<2x96xf32> to vector<2x32xf32>
    %625 = vector.extract_strided_slice %607 {offsets = [0, 64], sizes = [2, 32], strides = [1, 1]} : vector<2x96xf32> to vector<2x32xf32>
    %626 = arith.mulf %615, %625 : vector<2x32xf32>
    %627 = arith.addf %624, %626 : vector<2x32xf32>
    %628 = math.tanh %627 : vector<2x32xf32>
    %cst_109 = arith.constant 1.000000e+00 : f32
    %629 = vector.broadcast %cst_109 : f32 to vector<2x32xf32>
    %630 = arith.subf %629, %623 : vector<2x32xf32>
    %631 = arith.mulf %630, %628 : vector<2x32xf32>
    %632 = arith.mulf %623, %603 : vector<2x32xf32>
    %633 = arith.addf %631, %632 : vector<2x32xf32>
    %634 = vector.extract_strided_slice %512 {offsets = [8, 0], sizes = [2, 96], strides = [1, 1]} : vector<16x96xf32> to vector<2x96xf32>
    %cst_110 = arith.constant dense<0.000000e+00> : vector<2x96xf32>
    %635 = tpu.matmul %633, %507, %cst_110 {dimension_numbers = #tpu.dot_dimension_numbers<[1], [0], [0], [1], [0, 0, 1, 1], [], []>} : vector<2x32xf32>, vector<32x96xf32>, vector<2x96xf32> -> vector<2x96xf32>
    %636 = vector.broadcast %509 : vector<1x96xf32> to vector<2x96xf32>
    %637 = arith.addf %635, %636 : vector<2x96xf32>
    %638 = vector.extract_strided_slice %634 {offsets = [0, 0], sizes = [2, 32], strides = [1, 1]} : vector<2x96xf32> to vector<2x32xf32>
    %639 = vector.extract_strided_slice %637 {offsets = [0, 0], sizes = [2, 32], strides = [1, 1]} : vector<2x96xf32> to vector<2x32xf32>
    %640 = arith.addf %638, %639 : vector<2x32xf32>
    %641 = arith.negf %640 : vector<2x32xf32>
    %642 = math.exp %641 : vector<2x32xf32>
    %cst_111 = arith.constant 1.000000e+00 : f32
    %643 = vector.broadcast %cst_111 : f32 to vector<2x32xf32>
    %644 = arith.addf %643, %642 : vector<2x32xf32>
    %645 = arith.divf %643, %644 : vector<2x32xf32>
    %646 = vector.extract_strided_slice %634 {offsets = [0, 32], sizes = [2, 32], strides = [1, 1]} : vector<2x96xf32> to vector<2x32xf32>
    %647 = vector.extract_strided_slice %637 {offsets = [0, 32], sizes = [2, 32], strides = [1, 1]} : vector<2x96xf32> to vector<2x32xf32>
    %648 = arith.addf %646, %647 : vector<2x32xf32>
    %649 = arith.negf %648 : vector<2x32xf32>
    %650 = math.exp %649 : vector<2x32xf32>
    %cst_112 = arith.constant 1.000000e+00 : f32
    %651 = vector.broadcast %cst_112 : f32 to vector<2x32xf32>
    %652 = arith.addf %651, %650 : vector<2x32xf32>
    %653 = arith.divf %651, %652 : vector<2x32xf32>
    %654 = vector.extract_strided_slice %634 {offsets = [0, 64], sizes = [2, 32], strides = [1, 1]} : vector<2x96xf32> to vector<2x32xf32>
    %655 = vector.extract_strided_slice %637 {offsets = [0, 64], sizes = [2, 32], strides = [1, 1]} : vector<2x96xf32> to vector<2x32xf32>
    %656 = arith.mulf %645, %655 : vector<2x32xf32>
    %657 = arith.addf %654, %656 : vector<2x32xf32>
    %658 = math.tanh %657 : vector<2x32xf32>
    %cst_113 = arith.constant 1.000000e+00 : f32
    %659 = vector.broadcast %cst_113 : f32 to vector<2x32xf32>
    %660 = arith.subf %659, %653 : vector<2x32xf32>
    %661 = arith.mulf %660, %658 : vector<2x32xf32>
    %662 = arith.mulf %653, %633 : vector<2x32xf32>
    %663 = arith.addf %661, %662 : vector<2x32xf32>
    %664 = vector.extract_strided_slice %512 {offsets = [10, 0], sizes = [2, 96], strides = [1, 1]} : vector<16x96xf32> to vector<2x96xf32>
    %cst_114 = arith.constant dense<0.000000e+00> : vector<2x96xf32>
    %665 = tpu.matmul %663, %507, %cst_114 {dimension_numbers = #tpu.dot_dimension_numbers<[1], [0], [0], [1], [0, 0, 1, 1], [], []>} : vector<2x32xf32>, vector<32x96xf32>, vector<2x96xf32> -> vector<2x96xf32>
    %666 = vector.broadcast %509 : vector<1x96xf32> to vector<2x96xf32>
    %667 = arith.addf %665, %666 : vector<2x96xf32>
    %668 = vector.extract_strided_slice %664 {offsets = [0, 0], sizes = [2, 32], strides = [1, 1]} : vector<2x96xf32> to vector<2x32xf32>
    %669 = vector.extract_strided_slice %667 {offsets = [0, 0], sizes = [2, 32], strides = [1, 1]} : vector<2x96xf32> to vector<2x32xf32>
    %670 = arith.addf %668, %669 : vector<2x32xf32>
    %671 = arith.negf %670 : vector<2x32xf32>
    %672 = math.exp %671 : vector<2x32xf32>
    %cst_115 = arith.constant 1.000000e+00 : f32
    %673 = vector.broadcast %cst_115 : f32 to vector<2x32xf32>
    %674 = arith.addf %673, %672 : vector<2x32xf32>
    %675 = arith.divf %673, %674 : vector<2x32xf32>
    %676 = vector.extract_strided_slice %664 {offsets = [0, 32], sizes = [2, 32], strides = [1, 1]} : vector<2x96xf32> to vector<2x32xf32>
    %677 = vector.extract_strided_slice %667 {offsets = [0, 32], sizes = [2, 32], strides = [1, 1]} : vector<2x96xf32> to vector<2x32xf32>
    %678 = arith.addf %676, %677 : vector<2x32xf32>
    %679 = arith.negf %678 : vector<2x32xf32>
    %680 = math.exp %679 : vector<2x32xf32>
    %cst_116 = arith.constant 1.000000e+00 : f32
    %681 = vector.broadcast %cst_116 : f32 to vector<2x32xf32>
    %682 = arith.addf %681, %680 : vector<2x32xf32>
    %683 = arith.divf %681, %682 : vector<2x32xf32>
    %684 = vector.extract_strided_slice %664 {offsets = [0, 64], sizes = [2, 32], strides = [1, 1]} : vector<2x96xf32> to vector<2x32xf32>
    %685 = vector.extract_strided_slice %667 {offsets = [0, 64], sizes = [2, 32], strides = [1, 1]} : vector<2x96xf32> to vector<2x32xf32>
    %686 = arith.mulf %675, %685 : vector<2x32xf32>
    %687 = arith.addf %684, %686 : vector<2x32xf32>
    %688 = math.tanh %687 : vector<2x32xf32>
    %cst_117 = arith.constant 1.000000e+00 : f32
    %689 = vector.broadcast %cst_117 : f32 to vector<2x32xf32>
    %690 = arith.subf %689, %683 : vector<2x32xf32>
    %691 = arith.mulf %690, %688 : vector<2x32xf32>
    %692 = arith.mulf %683, %663 : vector<2x32xf32>
    %693 = arith.addf %691, %692 : vector<2x32xf32>
    %694 = vector.extract_strided_slice %512 {offsets = [12, 0], sizes = [2, 96], strides = [1, 1]} : vector<16x96xf32> to vector<2x96xf32>
    %cst_118 = arith.constant dense<0.000000e+00> : vector<2x96xf32>
    %695 = tpu.matmul %693, %507, %cst_118 {dimension_numbers = #tpu.dot_dimension_numbers<[1], [0], [0], [1], [0, 0, 1, 1], [], []>} : vector<2x32xf32>, vector<32x96xf32>, vector<2x96xf32> -> vector<2x96xf32>
    %696 = vector.broadcast %509 : vector<1x96xf32> to vector<2x96xf32>
    %697 = arith.addf %695, %696 : vector<2x96xf32>
    %698 = vector.extract_strided_slice %694 {offsets = [0, 0], sizes = [2, 32], strides = [1, 1]} : vector<2x96xf32> to vector<2x32xf32>
    %699 = vector.extract_strided_slice %697 {offsets = [0, 0], sizes = [2, 32], strides = [1, 1]} : vector<2x96xf32> to vector<2x32xf32>
    %700 = arith.addf %698, %699 : vector<2x32xf32>
    %701 = arith.negf %700 : vector<2x32xf32>
    %702 = math.exp %701 : vector<2x32xf32>
    %cst_119 = arith.constant 1.000000e+00 : f32
    %703 = vector.broadcast %cst_119 : f32 to vector<2x32xf32>
    %704 = arith.addf %703, %702 : vector<2x32xf32>
    %705 = arith.divf %703, %704 : vector<2x32xf32>
    %706 = vector.extract_strided_slice %694 {offsets = [0, 32], sizes = [2, 32], strides = [1, 1]} : vector<2x96xf32> to vector<2x32xf32>
    %707 = vector.extract_strided_slice %697 {offsets = [0, 32], sizes = [2, 32], strides = [1, 1]} : vector<2x96xf32> to vector<2x32xf32>
    %708 = arith.addf %706, %707 : vector<2x32xf32>
    %709 = arith.negf %708 : vector<2x32xf32>
    %710 = math.exp %709 : vector<2x32xf32>
    %cst_120 = arith.constant 1.000000e+00 : f32
    %711 = vector.broadcast %cst_120 : f32 to vector<2x32xf32>
    %712 = arith.addf %711, %710 : vector<2x32xf32>
    %713 = arith.divf %711, %712 : vector<2x32xf32>
    %714 = vector.extract_strided_slice %694 {offsets = [0, 64], sizes = [2, 32], strides = [1, 1]} : vector<2x96xf32> to vector<2x32xf32>
    %715 = vector.extract_strided_slice %697 {offsets = [0, 64], sizes = [2, 32], strides = [1, 1]} : vector<2x96xf32> to vector<2x32xf32>
    %716 = arith.mulf %705, %715 : vector<2x32xf32>
    %717 = arith.addf %714, %716 : vector<2x32xf32>
    %718 = math.tanh %717 : vector<2x32xf32>
    %cst_121 = arith.constant 1.000000e+00 : f32
    %719 = vector.broadcast %cst_121 : f32 to vector<2x32xf32>
    %720 = arith.subf %719, %713 : vector<2x32xf32>
    %721 = arith.mulf %720, %718 : vector<2x32xf32>
    %722 = arith.mulf %713, %693 : vector<2x32xf32>
    %723 = arith.addf %721, %722 : vector<2x32xf32>
    %724 = vector.extract_strided_slice %512 {offsets = [14, 0], sizes = [2, 96], strides = [1, 1]} : vector<16x96xf32> to vector<2x96xf32>
    %cst_122 = arith.constant dense<0.000000e+00> : vector<2x96xf32>
    %725 = tpu.matmul %723, %507, %cst_122 {dimension_numbers = #tpu.dot_dimension_numbers<[1], [0], [0], [1], [0, 0, 1, 1], [], []>} : vector<2x32xf32>, vector<32x96xf32>, vector<2x96xf32> -> vector<2x96xf32>
    %726 = vector.broadcast %509 : vector<1x96xf32> to vector<2x96xf32>
    %727 = arith.addf %725, %726 : vector<2x96xf32>
    %728 = vector.extract_strided_slice %724 {offsets = [0, 0], sizes = [2, 32], strides = [1, 1]} : vector<2x96xf32> to vector<2x32xf32>
    %729 = vector.extract_strided_slice %727 {offsets = [0, 0], sizes = [2, 32], strides = [1, 1]} : vector<2x96xf32> to vector<2x32xf32>
    %730 = arith.addf %728, %729 : vector<2x32xf32>
    %731 = arith.negf %730 : vector<2x32xf32>
    %732 = math.exp %731 : vector<2x32xf32>
    %cst_123 = arith.constant 1.000000e+00 : f32
    %733 = vector.broadcast %cst_123 : f32 to vector<2x32xf32>
    %734 = arith.addf %733, %732 : vector<2x32xf32>
    %735 = arith.divf %733, %734 : vector<2x32xf32>
    %736 = vector.extract_strided_slice %724 {offsets = [0, 32], sizes = [2, 32], strides = [1, 1]} : vector<2x96xf32> to vector<2x32xf32>
    %737 = vector.extract_strided_slice %727 {offsets = [0, 32], sizes = [2, 32], strides = [1, 1]} : vector<2x96xf32> to vector<2x32xf32>
    %738 = arith.addf %736, %737 : vector<2x32xf32>
    %739 = arith.negf %738 : vector<2x32xf32>
    %740 = math.exp %739 : vector<2x32xf32>
    %cst_124 = arith.constant 1.000000e+00 : f32
    %741 = vector.broadcast %cst_124 : f32 to vector<2x32xf32>
    %742 = arith.addf %741, %740 : vector<2x32xf32>
    %743 = arith.divf %741, %742 : vector<2x32xf32>
    %744 = vector.extract_strided_slice %724 {offsets = [0, 64], sizes = [2, 32], strides = [1, 1]} : vector<2x96xf32> to vector<2x32xf32>
    %745 = vector.extract_strided_slice %727 {offsets = [0, 64], sizes = [2, 32], strides = [1, 1]} : vector<2x96xf32> to vector<2x32xf32>
    %746 = arith.mulf %735, %745 : vector<2x32xf32>
    %747 = arith.addf %744, %746 : vector<2x32xf32>
    %748 = math.tanh %747 : vector<2x32xf32>
    %cst_125 = arith.constant 1.000000e+00 : f32
    %749 = vector.broadcast %cst_125 : f32 to vector<2x32xf32>
    %750 = arith.subf %749, %743 : vector<2x32xf32>
    %751 = arith.mulf %750, %748 : vector<2x32xf32>
    %752 = arith.mulf %743, %723 : vector<2x32xf32>
    %753 = arith.addf %751, %752 : vector<2x32xf32>
    %c0_126 = arith.constant 0 : index
    %c0_127 = arith.constant 0 : index
    %754 = vector.load %arg13[%c0_126, %c0_127] : memref<64x96xf32, #tpu.memory_space<vmem>>, vector<64x96xf32>
    %c0_128 = arith.constant 0 : index
    %c0_129 = arith.constant 0 : index
    %755 = vector.load %arg14[%c0_128, %c0_129] : memref<32x96xf32, #tpu.memory_space<vmem>>, vector<32x96xf32>
    %c0_130 = arith.constant 0 : index
    %c0_131 = arith.constant 0 : index
    %756 = vector.load %arg15[%c0_130, %c0_131] : memref<1x96xf32, #tpu.memory_space<vmem>>, vector<1x96xf32>
    %c0_132 = arith.constant 0 : index
    %c0_133 = arith.constant 0 : index
    %757 = vector.load %arg16[%c0_132, %c0_133] : memref<1x96xf32, #tpu.memory_space<vmem>>, vector<1x96xf32>
    %cst_134 = arith.constant dense<0.000000e+00> : vector<16x96xf32>
    %758 = tpu.matmul %505, %754, %cst_134 {dimension_numbers = #tpu.dot_dimension_numbers<[1], [0], [0], [1], [0, 0, 1, 1], [], []>} : vector<16x64xf32>, vector<64x96xf32>, vector<16x96xf32> -> vector<16x96xf32>
    %759 = vector.broadcast %756 : vector<1x96xf32> to vector<16x96xf32>
    %760 = arith.addf %758, %759 : vector<16x96xf32>
    %cst_135 = arith.constant 0.000000e+00 : f32
    %761 = vector.broadcast %cst_135 : f32 to vector<2x32xf32>
    %762 = vector.extract_strided_slice %760 {offsets = [14, 0], sizes = [2, 96], strides = [1, 1]} : vector<16x96xf32> to vector<2x96xf32>
    %cst_136 = arith.constant dense<0.000000e+00> : vector<2x96xf32>
    %763 = tpu.matmul %761, %755, %cst_136 {dimension_numbers = #tpu.dot_dimension_numbers<[1], [0], [0], [1], [0, 0, 1, 1], [], []>} : vector<2x32xf32>, vector<32x96xf32>, vector<2x96xf32> -> vector<2x96xf32>
    %764 = vector.broadcast %757 : vector<1x96xf32> to vector<2x96xf32>
    %765 = arith.addf %763, %764 : vector<2x96xf32>
    %766 = vector.extract_strided_slice %762 {offsets = [0, 0], sizes = [2, 32], strides = [1, 1]} : vector<2x96xf32> to vector<2x32xf32>
    %767 = vector.extract_strided_slice %765 {offsets = [0, 0], sizes = [2, 32], strides = [1, 1]} : vector<2x96xf32> to vector<2x32xf32>
    %768 = arith.addf %766, %767 : vector<2x32xf32>
    %769 = arith.negf %768 : vector<2x32xf32>
    %770 = math.exp %769 : vector<2x32xf32>
    %cst_137 = arith.constant 1.000000e+00 : f32
    %771 = vector.broadcast %cst_137 : f32 to vector<2x32xf32>
    %772 = arith.addf %771, %770 : vector<2x32xf32>
    %773 = arith.divf %771, %772 : vector<2x32xf32>
    %774 = vector.extract_strided_slice %762 {offsets = [0, 32], sizes = [2, 32], strides = [1, 1]} : vector<2x96xf32> to vector<2x32xf32>
    %775 = vector.extract_strided_slice %765 {offsets = [0, 32], sizes = [2, 32], strides = [1, 1]} : vector<2x96xf32> to vector<2x32xf32>
    %776 = arith.addf %774, %775 : vector<2x32xf32>
    %777 = arith.negf %776 : vector<2x32xf32>
    %778 = math.exp %777 : vector<2x32xf32>
    %cst_138 = arith.constant 1.000000e+00 : f32
    %779 = vector.broadcast %cst_138 : f32 to vector<2x32xf32>
    %780 = arith.addf %779, %778 : vector<2x32xf32>
    %781 = arith.divf %779, %780 : vector<2x32xf32>
    %782 = vector.extract_strided_slice %762 {offsets = [0, 64], sizes = [2, 32], strides = [1, 1]} : vector<2x96xf32> to vector<2x32xf32>
    %783 = vector.extract_strided_slice %765 {offsets = [0, 64], sizes = [2, 32], strides = [1, 1]} : vector<2x96xf32> to vector<2x32xf32>
    %784 = arith.mulf %773, %783 : vector<2x32xf32>
    %785 = arith.addf %782, %784 : vector<2x32xf32>
    %786 = math.tanh %785 : vector<2x32xf32>
    %cst_139 = arith.constant 1.000000e+00 : f32
    %787 = vector.broadcast %cst_139 : f32 to vector<2x32xf32>
    %788 = arith.subf %787, %781 : vector<2x32xf32>
    %789 = arith.mulf %788, %786 : vector<2x32xf32>
    %790 = arith.mulf %781, %761 : vector<2x32xf32>
    %791 = arith.addf %789, %790 : vector<2x32xf32>
    %792 = vector.extract_strided_slice %760 {offsets = [12, 0], sizes = [2, 96], strides = [1, 1]} : vector<16x96xf32> to vector<2x96xf32>
    %cst_140 = arith.constant dense<0.000000e+00> : vector<2x96xf32>
    %793 = tpu.matmul %791, %755, %cst_140 {dimension_numbers = #tpu.dot_dimension_numbers<[1], [0], [0], [1], [0, 0, 1, 1], [], []>} : vector<2x32xf32>, vector<32x96xf32>, vector<2x96xf32> -> vector<2x96xf32>
    %794 = vector.broadcast %757 : vector<1x96xf32> to vector<2x96xf32>
    %795 = arith.addf %793, %794 : vector<2x96xf32>
    %796 = vector.extract_strided_slice %792 {offsets = [0, 0], sizes = [2, 32], strides = [1, 1]} : vector<2x96xf32> to vector<2x32xf32>
    %797 = vector.extract_strided_slice %795 {offsets = [0, 0], sizes = [2, 32], strides = [1, 1]} : vector<2x96xf32> to vector<2x32xf32>
    %798 = arith.addf %796, %797 : vector<2x32xf32>
    %799 = arith.negf %798 : vector<2x32xf32>
    %800 = math.exp %799 : vector<2x32xf32>
    %cst_141 = arith.constant 1.000000e+00 : f32
    %801 = vector.broadcast %cst_141 : f32 to vector<2x32xf32>
    %802 = arith.addf %801, %800 : vector<2x32xf32>
    %803 = arith.divf %801, %802 : vector<2x32xf32>
    %804 = vector.extract_strided_slice %792 {offsets = [0, 32], sizes = [2, 32], strides = [1, 1]} : vector<2x96xf32> to vector<2x32xf32>
    %805 = vector.extract_strided_slice %795 {offsets = [0, 32], sizes = [2, 32], strides = [1, 1]} : vector<2x96xf32> to vector<2x32xf32>
    %806 = arith.addf %804, %805 : vector<2x32xf32>
    %807 = arith.negf %806 : vector<2x32xf32>
    %808 = math.exp %807 : vector<2x32xf32>
    %cst_142 = arith.constant 1.000000e+00 : f32
    %809 = vector.broadcast %cst_142 : f32 to vector<2x32xf32>
    %810 = arith.addf %809, %808 : vector<2x32xf32>
    %811 = arith.divf %809, %810 : vector<2x32xf32>
    %812 = vector.extract_strided_slice %792 {offsets = [0, 64], sizes = [2, 32], strides = [1, 1]} : vector<2x96xf32> to vector<2x32xf32>
    %813 = vector.extract_strided_slice %795 {offsets = [0, 64], sizes = [2, 32], strides = [1, 1]} : vector<2x96xf32> to vector<2x32xf32>
    %814 = arith.mulf %803, %813 : vector<2x32xf32>
    %815 = arith.addf %812, %814 : vector<2x32xf32>
    %816 = math.tanh %815 : vector<2x32xf32>
    %cst_143 = arith.constant 1.000000e+00 : f32
    %817 = vector.broadcast %cst_143 : f32 to vector<2x32xf32>
    %818 = arith.subf %817, %811 : vector<2x32xf32>
    %819 = arith.mulf %818, %816 : vector<2x32xf32>
    %820 = arith.mulf %811, %791 : vector<2x32xf32>
    %821 = arith.addf %819, %820 : vector<2x32xf32>
    %822 = vector.extract_strided_slice %760 {offsets = [10, 0], sizes = [2, 96], strides = [1, 1]} : vector<16x96xf32> to vector<2x96xf32>
    %cst_144 = arith.constant dense<0.000000e+00> : vector<2x96xf32>
    %823 = tpu.matmul %821, %755, %cst_144 {dimension_numbers = #tpu.dot_dimension_numbers<[1], [0], [0], [1], [0, 0, 1, 1], [], []>} : vector<2x32xf32>, vector<32x96xf32>, vector<2x96xf32> -> vector<2x96xf32>
    %824 = vector.broadcast %757 : vector<1x96xf32> to vector<2x96xf32>
    %825 = arith.addf %823, %824 : vector<2x96xf32>
    %826 = vector.extract_strided_slice %822 {offsets = [0, 0], sizes = [2, 32], strides = [1, 1]} : vector<2x96xf32> to vector<2x32xf32>
    %827 = vector.extract_strided_slice %825 {offsets = [0, 0], sizes = [2, 32], strides = [1, 1]} : vector<2x96xf32> to vector<2x32xf32>
    %828 = arith.addf %826, %827 : vector<2x32xf32>
    %829 = arith.negf %828 : vector<2x32xf32>
    %830 = math.exp %829 : vector<2x32xf32>
    %cst_145 = arith.constant 1.000000e+00 : f32
    %831 = vector.broadcast %cst_145 : f32 to vector<2x32xf32>
    %832 = arith.addf %831, %830 : vector<2x32xf32>
    %833 = arith.divf %831, %832 : vector<2x32xf32>
    %834 = vector.extract_strided_slice %822 {offsets = [0, 32], sizes = [2, 32], strides = [1, 1]} : vector<2x96xf32> to vector<2x32xf32>
    %835 = vector.extract_strided_slice %825 {offsets = [0, 32], sizes = [2, 32], strides = [1, 1]} : vector<2x96xf32> to vector<2x32xf32>
    %836 = arith.addf %834, %835 : vector<2x32xf32>
    %837 = arith.negf %836 : vector<2x32xf32>
    %838 = math.exp %837 : vector<2x32xf32>
    %cst_146 = arith.constant 1.000000e+00 : f32
    %839 = vector.broadcast %cst_146 : f32 to vector<2x32xf32>
    %840 = arith.addf %839, %838 : vector<2x32xf32>
    %841 = arith.divf %839, %840 : vector<2x32xf32>
    %842 = vector.extract_strided_slice %822 {offsets = [0, 64], sizes = [2, 32], strides = [1, 1]} : vector<2x96xf32> to vector<2x32xf32>
    %843 = vector.extract_strided_slice %825 {offsets = [0, 64], sizes = [2, 32], strides = [1, 1]} : vector<2x96xf32> to vector<2x32xf32>
    %844 = arith.mulf %833, %843 : vector<2x32xf32>
    %845 = arith.addf %842, %844 : vector<2x32xf32>
    %846 = math.tanh %845 : vector<2x32xf32>
    %cst_147 = arith.constant 1.000000e+00 : f32
    %847 = vector.broadcast %cst_147 : f32 to vector<2x32xf32>
    %848 = arith.subf %847, %841 : vector<2x32xf32>
    %849 = arith.mulf %848, %846 : vector<2x32xf32>
    %850 = arith.mulf %841, %821 : vector<2x32xf32>
    %851 = arith.addf %849, %850 : vector<2x32xf32>
    %852 = vector.extract_strided_slice %760 {offsets = [8, 0], sizes = [2, 96], strides = [1, 1]} : vector<16x96xf32> to vector<2x96xf32>
    %cst_148 = arith.constant dense<0.000000e+00> : vector<2x96xf32>
    %853 = tpu.matmul %851, %755, %cst_148 {dimension_numbers = #tpu.dot_dimension_numbers<[1], [0], [0], [1], [0, 0, 1, 1], [], []>} : vector<2x32xf32>, vector<32x96xf32>, vector<2x96xf32> -> vector<2x96xf32>
    %854 = vector.broadcast %757 : vector<1x96xf32> to vector<2x96xf32>
    %855 = arith.addf %853, %854 : vector<2x96xf32>
    %856 = vector.extract_strided_slice %852 {offsets = [0, 0], sizes = [2, 32], strides = [1, 1]} : vector<2x96xf32> to vector<2x32xf32>
    %857 = vector.extract_strided_slice %855 {offsets = [0, 0], sizes = [2, 32], strides = [1, 1]} : vector<2x96xf32> to vector<2x32xf32>
    %858 = arith.addf %856, %857 : vector<2x32xf32>
    %859 = arith.negf %858 : vector<2x32xf32>
    %860 = math.exp %859 : vector<2x32xf32>
    %cst_149 = arith.constant 1.000000e+00 : f32
    %861 = vector.broadcast %cst_149 : f32 to vector<2x32xf32>
    %862 = arith.addf %861, %860 : vector<2x32xf32>
    %863 = arith.divf %861, %862 : vector<2x32xf32>
    %864 = vector.extract_strided_slice %852 {offsets = [0, 32], sizes = [2, 32], strides = [1, 1]} : vector<2x96xf32> to vector<2x32xf32>
    %865 = vector.extract_strided_slice %855 {offsets = [0, 32], sizes = [2, 32], strides = [1, 1]} : vector<2x96xf32> to vector<2x32xf32>
    %866 = arith.addf %864, %865 : vector<2x32xf32>
    %867 = arith.negf %866 : vector<2x32xf32>
    %868 = math.exp %867 : vector<2x32xf32>
    %cst_150 = arith.constant 1.000000e+00 : f32
    %869 = vector.broadcast %cst_150 : f32 to vector<2x32xf32>
    %870 = arith.addf %869, %868 : vector<2x32xf32>
    %871 = arith.divf %869, %870 : vector<2x32xf32>
    %872 = vector.extract_strided_slice %852 {offsets = [0, 64], sizes = [2, 32], strides = [1, 1]} : vector<2x96xf32> to vector<2x32xf32>
    %873 = vector.extract_strided_slice %855 {offsets = [0, 64], sizes = [2, 32], strides = [1, 1]} : vector<2x96xf32> to vector<2x32xf32>
    %874 = arith.mulf %863, %873 : vector<2x32xf32>
    %875 = arith.addf %872, %874 : vector<2x32xf32>
    %876 = math.tanh %875 : vector<2x32xf32>
    %cst_151 = arith.constant 1.000000e+00 : f32
    %877 = vector.broadcast %cst_151 : f32 to vector<2x32xf32>
    %878 = arith.subf %877, %871 : vector<2x32xf32>
    %879 = arith.mulf %878, %876 : vector<2x32xf32>
    %880 = arith.mulf %871, %851 : vector<2x32xf32>
    %881 = arith.addf %879, %880 : vector<2x32xf32>
    %882 = vector.extract_strided_slice %760 {offsets = [6, 0], sizes = [2, 96], strides = [1, 1]} : vector<16x96xf32> to vector<2x96xf32>
    %cst_152 = arith.constant dense<0.000000e+00> : vector<2x96xf32>
    %883 = tpu.matmul %881, %755, %cst_152 {dimension_numbers = #tpu.dot_dimension_numbers<[1], [0], [0], [1], [0, 0, 1, 1], [], []>} : vector<2x32xf32>, vector<32x96xf32>, vector<2x96xf32> -> vector<2x96xf32>
    %884 = vector.broadcast %757 : vector<1x96xf32> to vector<2x96xf32>
    %885 = arith.addf %883, %884 : vector<2x96xf32>
    %886 = vector.extract_strided_slice %882 {offsets = [0, 0], sizes = [2, 32], strides = [1, 1]} : vector<2x96xf32> to vector<2x32xf32>
    %887 = vector.extract_strided_slice %885 {offsets = [0, 0], sizes = [2, 32], strides = [1, 1]} : vector<2x96xf32> to vector<2x32xf32>
    %888 = arith.addf %886, %887 : vector<2x32xf32>
    %889 = arith.negf %888 : vector<2x32xf32>
    %890 = math.exp %889 : vector<2x32xf32>
    %cst_153 = arith.constant 1.000000e+00 : f32
    %891 = vector.broadcast %cst_153 : f32 to vector<2x32xf32>
    %892 = arith.addf %891, %890 : vector<2x32xf32>
    %893 = arith.divf %891, %892 : vector<2x32xf32>
    %894 = vector.extract_strided_slice %882 {offsets = [0, 32], sizes = [2, 32], strides = [1, 1]} : vector<2x96xf32> to vector<2x32xf32>
    %895 = vector.extract_strided_slice %885 {offsets = [0, 32], sizes = [2, 32], strides = [1, 1]} : vector<2x96xf32> to vector<2x32xf32>
    %896 = arith.addf %894, %895 : vector<2x32xf32>
    %897 = arith.negf %896 : vector<2x32xf32>
    %898 = math.exp %897 : vector<2x32xf32>
    %cst_154 = arith.constant 1.000000e+00 : f32
    %899 = vector.broadcast %cst_154 : f32 to vector<2x32xf32>
    %900 = arith.addf %899, %898 : vector<2x32xf32>
    %901 = arith.divf %899, %900 : vector<2x32xf32>
    %902 = vector.extract_strided_slice %882 {offsets = [0, 64], sizes = [2, 32], strides = [1, 1]} : vector<2x96xf32> to vector<2x32xf32>
    %903 = vector.extract_strided_slice %885 {offsets = [0, 64], sizes = [2, 32], strides = [1, 1]} : vector<2x96xf32> to vector<2x32xf32>
    %904 = arith.mulf %893, %903 : vector<2x32xf32>
    %905 = arith.addf %902, %904 : vector<2x32xf32>
    %906 = math.tanh %905 : vector<2x32xf32>
    %cst_155 = arith.constant 1.000000e+00 : f32
    %907 = vector.broadcast %cst_155 : f32 to vector<2x32xf32>
    %908 = arith.subf %907, %901 : vector<2x32xf32>
    %909 = arith.mulf %908, %906 : vector<2x32xf32>
    %910 = arith.mulf %901, %881 : vector<2x32xf32>
    %911 = arith.addf %909, %910 : vector<2x32xf32>
    %912 = vector.extract_strided_slice %760 {offsets = [4, 0], sizes = [2, 96], strides = [1, 1]} : vector<16x96xf32> to vector<2x96xf32>
    %cst_156 = arith.constant dense<0.000000e+00> : vector<2x96xf32>
    %913 = tpu.matmul %911, %755, %cst_156 {dimension_numbers = #tpu.dot_dimension_numbers<[1], [0], [0], [1], [0, 0, 1, 1], [], []>} : vector<2x32xf32>, vector<32x96xf32>, vector<2x96xf32> -> vector<2x96xf32>
    %914 = vector.broadcast %757 : vector<1x96xf32> to vector<2x96xf32>
    %915 = arith.addf %913, %914 : vector<2x96xf32>
    %916 = vector.extract_strided_slice %912 {offsets = [0, 0], sizes = [2, 32], strides = [1, 1]} : vector<2x96xf32> to vector<2x32xf32>
    %917 = vector.extract_strided_slice %915 {offsets = [0, 0], sizes = [2, 32], strides = [1, 1]} : vector<2x96xf32> to vector<2x32xf32>
    %918 = arith.addf %916, %917 : vector<2x32xf32>
    %919 = arith.negf %918 : vector<2x32xf32>
    %920 = math.exp %919 : vector<2x32xf32>
    %cst_157 = arith.constant 1.000000e+00 : f32
    %921 = vector.broadcast %cst_157 : f32 to vector<2x32xf32>
    %922 = arith.addf %921, %920 : vector<2x32xf32>
    %923 = arith.divf %921, %922 : vector<2x32xf32>
    %924 = vector.extract_strided_slice %912 {offsets = [0, 32], sizes = [2, 32], strides = [1, 1]} : vector<2x96xf32> to vector<2x32xf32>
    %925 = vector.extract_strided_slice %915 {offsets = [0, 32], sizes = [2, 32], strides = [1, 1]} : vector<2x96xf32> to vector<2x32xf32>
    %926 = arith.addf %924, %925 : vector<2x32xf32>
    %927 = arith.negf %926 : vector<2x32xf32>
    %928 = math.exp %927 : vector<2x32xf32>
    %cst_158 = arith.constant 1.000000e+00 : f32
    %929 = vector.broadcast %cst_158 : f32 to vector<2x32xf32>
    %930 = arith.addf %929, %928 : vector<2x32xf32>
    %931 = arith.divf %929, %930 : vector<2x32xf32>
    %932 = vector.extract_strided_slice %912 {offsets = [0, 64], sizes = [2, 32], strides = [1, 1]} : vector<2x96xf32> to vector<2x32xf32>
    %933 = vector.extract_strided_slice %915 {offsets = [0, 64], sizes = [2, 32], strides = [1, 1]} : vector<2x96xf32> to vector<2x32xf32>
    %934 = arith.mulf %923, %933 : vector<2x32xf32>
    %935 = arith.addf %932, %934 : vector<2x32xf32>
    %936 = math.tanh %935 : vector<2x32xf32>
    %cst_159 = arith.constant 1.000000e+00 : f32
    %937 = vector.broadcast %cst_159 : f32 to vector<2x32xf32>
    %938 = arith.subf %937, %931 : vector<2x32xf32>
    %939 = arith.mulf %938, %936 : vector<2x32xf32>
    %940 = arith.mulf %931, %911 : vector<2x32xf32>
    %941 = arith.addf %939, %940 : vector<2x32xf32>
    %942 = vector.extract_strided_slice %760 {offsets = [2, 0], sizes = [2, 96], strides = [1, 1]} : vector<16x96xf32> to vector<2x96xf32>
    %cst_160 = arith.constant dense<0.000000e+00> : vector<2x96xf32>
    %943 = tpu.matmul %941, %755, %cst_160 {dimension_numbers = #tpu.dot_dimension_numbers<[1], [0], [0], [1], [0, 0, 1, 1], [], []>} : vector<2x32xf32>, vector<32x96xf32>, vector<2x96xf32> -> vector<2x96xf32>
    %944 = vector.broadcast %757 : vector<1x96xf32> to vector<2x96xf32>
    %945 = arith.addf %943, %944 : vector<2x96xf32>
    %946 = vector.extract_strided_slice %942 {offsets = [0, 0], sizes = [2, 32], strides = [1, 1]} : vector<2x96xf32> to vector<2x32xf32>
    %947 = vector.extract_strided_slice %945 {offsets = [0, 0], sizes = [2, 32], strides = [1, 1]} : vector<2x96xf32> to vector<2x32xf32>
    %948 = arith.addf %946, %947 : vector<2x32xf32>
    %949 = arith.negf %948 : vector<2x32xf32>
    %950 = math.exp %949 : vector<2x32xf32>
    %cst_161 = arith.constant 1.000000e+00 : f32
    %951 = vector.broadcast %cst_161 : f32 to vector<2x32xf32>
    %952 = arith.addf %951, %950 : vector<2x32xf32>
    %953 = arith.divf %951, %952 : vector<2x32xf32>
    %954 = vector.extract_strided_slice %942 {offsets = [0, 32], sizes = [2, 32], strides = [1, 1]} : vector<2x96xf32> to vector<2x32xf32>
    %955 = vector.extract_strided_slice %945 {offsets = [0, 32], sizes = [2, 32], strides = [1, 1]} : vector<2x96xf32> to vector<2x32xf32>
    %956 = arith.addf %954, %955 : vector<2x32xf32>
    %957 = arith.negf %956 : vector<2x32xf32>
    %958 = math.exp %957 : vector<2x32xf32>
    %cst_162 = arith.constant 1.000000e+00 : f32
    %959 = vector.broadcast %cst_162 : f32 to vector<2x32xf32>
    %960 = arith.addf %959, %958 : vector<2x32xf32>
    %961 = arith.divf %959, %960 : vector<2x32xf32>
    %962 = vector.extract_strided_slice %942 {offsets = [0, 64], sizes = [2, 32], strides = [1, 1]} : vector<2x96xf32> to vector<2x32xf32>
    %963 = vector.extract_strided_slice %945 {offsets = [0, 64], sizes = [2, 32], strides = [1, 1]} : vector<2x96xf32> to vector<2x32xf32>
    %964 = arith.mulf %953, %963 : vector<2x32xf32>
    %965 = arith.addf %962, %964 : vector<2x32xf32>
    %966 = math.tanh %965 : vector<2x32xf32>
    %cst_163 = arith.constant 1.000000e+00 : f32
    %967 = vector.broadcast %cst_163 : f32 to vector<2x32xf32>
    %968 = arith.subf %967, %961 : vector<2x32xf32>
    %969 = arith.mulf %968, %966 : vector<2x32xf32>
    %970 = arith.mulf %961, %941 : vector<2x32xf32>
    %971 = arith.addf %969, %970 : vector<2x32xf32>
    %972 = vector.extract_strided_slice %760 {offsets = [0, 0], sizes = [2, 96], strides = [1, 1]} : vector<16x96xf32> to vector<2x96xf32>
    %cst_164 = arith.constant dense<0.000000e+00> : vector<2x96xf32>
    %973 = tpu.matmul %971, %755, %cst_164 {dimension_numbers = #tpu.dot_dimension_numbers<[1], [0], [0], [1], [0, 0, 1, 1], [], []>} : vector<2x32xf32>, vector<32x96xf32>, vector<2x96xf32> -> vector<2x96xf32>
    %974 = vector.broadcast %757 : vector<1x96xf32> to vector<2x96xf32>
    %975 = arith.addf %973, %974 : vector<2x96xf32>
    %976 = vector.extract_strided_slice %972 {offsets = [0, 0], sizes = [2, 32], strides = [1, 1]} : vector<2x96xf32> to vector<2x32xf32>
    %977 = vector.extract_strided_slice %975 {offsets = [0, 0], sizes = [2, 32], strides = [1, 1]} : vector<2x96xf32> to vector<2x32xf32>
    %978 = arith.addf %976, %977 : vector<2x32xf32>
    %979 = arith.negf %978 : vector<2x32xf32>
    %980 = math.exp %979 : vector<2x32xf32>
    %cst_165 = arith.constant 1.000000e+00 : f32
    %981 = vector.broadcast %cst_165 : f32 to vector<2x32xf32>
    %982 = arith.addf %981, %980 : vector<2x32xf32>
    %983 = arith.divf %981, %982 : vector<2x32xf32>
    %984 = vector.extract_strided_slice %972 {offsets = [0, 32], sizes = [2, 32], strides = [1, 1]} : vector<2x96xf32> to vector<2x32xf32>
    %985 = vector.extract_strided_slice %975 {offsets = [0, 32], sizes = [2, 32], strides = [1, 1]} : vector<2x96xf32> to vector<2x32xf32>
    %986 = arith.addf %984, %985 : vector<2x32xf32>
    %987 = arith.negf %986 : vector<2x32xf32>
    %988 = math.exp %987 : vector<2x32xf32>
    %cst_166 = arith.constant 1.000000e+00 : f32
    %989 = vector.broadcast %cst_166 : f32 to vector<2x32xf32>
    %990 = arith.addf %989, %988 : vector<2x32xf32>
    %991 = arith.divf %989, %990 : vector<2x32xf32>
    %992 = vector.extract_strided_slice %972 {offsets = [0, 64], sizes = [2, 32], strides = [1, 1]} : vector<2x96xf32> to vector<2x32xf32>
    %993 = vector.extract_strided_slice %975 {offsets = [0, 64], sizes = [2, 32], strides = [1, 1]} : vector<2x96xf32> to vector<2x32xf32>
    %994 = arith.mulf %983, %993 : vector<2x32xf32>
    %995 = arith.addf %992, %994 : vector<2x32xf32>
    %996 = math.tanh %995 : vector<2x32xf32>
    %cst_167 = arith.constant 1.000000e+00 : f32
    %997 = vector.broadcast %cst_167 : f32 to vector<2x32xf32>
    %998 = arith.subf %997, %991 : vector<2x32xf32>
    %999 = arith.mulf %998, %996 : vector<2x32xf32>
    %1000 = arith.mulf %991, %971 : vector<2x32xf32>
    %1001 = arith.addf %999, %1000 : vector<2x32xf32>
    %1002 = tpu.concatenate %753, %1001 in 1 : vector<2x32xf32>, vector<2x32xf32> -> vector<2x64xf32>
    %cst_168 = arith.constant dense<0.000000e+00> : vector<2xf32>
    %1003 = vector.multi_reduction <add>, %1002, %cst_168 [1] : vector<2x64xf32> to vector<2xf32>
    %1004 = vector.shape_cast %1003 : vector<2xf32> to vector<2x1xf32>
    %cst_169 = arith.constant 6.400000e+01 : f32
    %1005 = vector.broadcast %cst_169 : f32 to vector<2x1xf32>
    %1006 = arith.divf %1004, %1005 : vector<2x1xf32>
    %1007 = vector.broadcast %1006 : vector<2x1xf32> to vector<2x64xf32>
    %1008 = arith.subf %1002, %1007 : vector<2x64xf32>
    %1009 = vector.broadcast %1006 : vector<2x1xf32> to vector<2x64xf32>
    %1010 = arith.subf %1002, %1009 : vector<2x64xf32>
    %1011 = arith.mulf %1008, %1010 : vector<2x64xf32>
    %cst_170 = arith.constant dense<0.000000e+00> : vector<2xf32>
    %1012 = vector.multi_reduction <add>, %1011, %cst_170 [1] : vector<2x64xf32> to vector<2xf32>
    %1013 = vector.shape_cast %1012 : vector<2xf32> to vector<2x1xf32>
    %cst_171 = arith.constant 6.400000e+01 : f32
    %1014 = vector.broadcast %cst_171 : f32 to vector<2x1xf32>
    %1015 = arith.divf %1013, %1014 : vector<2x1xf32>
    %1016 = vector.broadcast %1006 : vector<2x1xf32> to vector<2x64xf32>
    %1017 = arith.subf %1002, %1016 : vector<2x64xf32>
    %cst_172 = arith.constant 9.99999974E-6 : f32
    %1018 = vector.broadcast %cst_172 : f32 to vector<2x1xf32>
    %1019 = arith.addf %1015, %1018 : vector<2x1xf32>
    %1020 = math.rsqrt %1019 : vector<2x1xf32>
    %1021 = vector.broadcast %1020 : vector<2x1xf32> to vector<2x64xf32>
    %1022 = arith.mulf %1017, %1021 : vector<2x64xf32>
    %c0_173 = arith.constant 0 : index
    %c0_174 = arith.constant 0 : index
    %1023 = vector.load %arg17[%c0_173, %c0_174] : memref<1x64xf32, #tpu.memory_space<vmem>>, vector<1x64xf32>
    %1024 = vector.broadcast %1023 : vector<1x64xf32> to vector<2x64xf32>
    %1025 = arith.mulf %1022, %1024 : vector<2x64xf32>
    %c0_175 = arith.constant 0 : index
    %c0_176 = arith.constant 0 : index
    %1026 = vector.load %arg18[%c0_175, %c0_176] : memref<1x64xf32, #tpu.memory_space<vmem>>, vector<1x64xf32>
    %1027 = vector.broadcast %1026 : vector<1x64xf32> to vector<2x64xf32>
    %1028 = arith.addf %1025, %1027 : vector<2x64xf32>
    %c0_177 = arith.constant 0 : index
    %c0_178 = arith.constant 0 : index
    %1029 = vector.load %arg19[%c0_177, %c0_178] : memref<64x32xf32, #tpu.memory_space<vmem>>, vector<64x32xf32>
    %cst_179 = arith.constant dense<0.000000e+00> : vector<2x32xf32>
    %1030 = tpu.matmul %1028, %1029, %cst_179 {dimension_numbers = #tpu.dot_dimension_numbers<[1], [0], [0], [1], [0, 0, 1, 1], [], []>} : vector<2x64xf32>, vector<64x32xf32>, vector<2x32xf32> -> vector<2x32xf32>
    %c0_180 = arith.constant 0 : index
    %c0_181 = arith.constant 0 : index
    %1031 = vector.load %arg20[%c0_180, %c0_181] : memref<1x32xf32, #tpu.memory_space<vmem>>, vector<1x32xf32>
    %1032 = vector.broadcast %1031 : vector<1x32xf32> to vector<2x32xf32>
    %1033 = arith.addf %1030, %1032 : vector<2x32xf32>
    %cst_182 = arith.constant 0.000000e+00 : f32
    %1034 = vector.broadcast %cst_182 : f32 to vector<2x32xf32>
    %1035 = arith.maximumf %1033, %1034 : vector<2x32xf32>
    %c0_183 = arith.constant 0 : index
    %c0_184 = arith.constant 0 : index
    %1036 = vector.load %arg21[%c0_183, %c0_184] : memref<32x16xf32, #tpu.memory_space<vmem>>, vector<32x16xf32>
    %cst_185 = arith.constant dense<0.000000e+00> : vector<2x16xf32>
    %1037 = tpu.matmul %1035, %1036, %cst_185 {dimension_numbers = #tpu.dot_dimension_numbers<[1], [0], [0], [1], [0, 0, 1, 1], [], []>} : vector<2x32xf32>, vector<32x16xf32>, vector<2x16xf32> -> vector<2x16xf32>
    %c0_186 = arith.constant 0 : index
    %c0_187 = arith.constant 0 : index
    %1038 = vector.load %arg22[%c0_186, %c0_187] : memref<1x16xf32, #tpu.memory_space<vmem>>, vector<1x16xf32>
    %1039 = vector.broadcast %1038 : vector<1x16xf32> to vector<2x16xf32>
    %1040 = arith.addf %1037, %1039 : vector<2x16xf32>
    %cst_188 = arith.constant 0.000000e+00 : f32
    %1041 = vector.broadcast %cst_188 : f32 to vector<2x16xf32>
    %1042 = arith.maximumf %1040, %1041 : vector<2x16xf32>
    %c0_189 = arith.constant 0 : index
    %c0_190 = arith.constant 0 : index
    %1043 = vector.load %arg23[%c0_189, %c0_190] : memref<16x5xf32, #tpu.memory_space<vmem>>, vector<16x5xf32>
    %cst_191 = arith.constant dense<0.000000e+00> : vector<2x5xf32>
    %1044 = tpu.matmul %1042, %1043, %cst_191 {dimension_numbers = #tpu.dot_dimension_numbers<[1], [0], [0], [1], [0, 0, 1, 1], [], []>} : vector<2x16xf32>, vector<16x5xf32>, vector<2x5xf32> -> vector<2x5xf32>
    %c0_192 = arith.constant 0 : index
    %c0_193 = arith.constant 0 : index
    %1045 = vector.load %arg24[%c0_192, %c0_193] : memref<1x5xf32, #tpu.memory_space<vmem>>, vector<1x5xf32>
    %1046 = vector.broadcast %1045 : vector<1x5xf32> to vector<2x5xf32>
    %1047 = arith.addf %1044, %1046 : vector<2x5xf32>
    %c0_194 = arith.constant 0 : index
    %c0_195 = arith.constant 0 : index
    %1048 = vector.load %arg25[%c0_194, %c0_195] : memref<2x5xf32, #tpu.memory_space<vmem>>, vector<2x5xf32>
    tpu.vector_store %arg25[%c0_194, %c0_195], %1047 {strides = array<i32>} : memref<2x5xf32, #tpu.memory_space<vmem>>, vector<2x5xf32>,
    return
  }
}

</mosaic_0001>

<bundles_post_ra>
// kernel: tpu_custom_call.1
= control target key start
LH: loop header
LB: loop body
LE: loop exit
PB: predicated region body
PF: predicated region fallthrough
CT: control target
= control target key end

     0   :  { %s6888_s0 = inlined_call_operand.hbm [shape: f32[16,16], index: 0, kind: input, shape index: {}]   ;;  %s6889_s1 = inlined_call_operand.hbm [shape: f32[16,96], index: 1, kind: input, shape index: {}]   ;;  %s6890_s2 = inlined_call_operand.hbm [shape: f32[32,96], index: 2, kind: input, shape index: {}]   ;;  %s6891_s3 = inlined_call_operand.vmem [shape: f32[1,96], index: 3, kind: input, shape index: {}]   ;;  %s6892_s4 = inlined_call_operand.hbm [shape: f32[1,96], index: 4, kind: input, shape index: {}]   ;;  %s6893_s5 = inlined_call_operand.hbm [shape: f32[16,96], index: 5, kind: input, shape index: {}]   ;;  %s6894_s6 = inlined_call_operand.hbm [shape: f32[32,96], index: 6, kind: input, shape index: {}]   ;;  %s6895_s7 = inlined_call_operand.hbm [shape: f32[1,96], index: 7, kind: input, shape index: {}]   ;;  %s6896_s8 = inlined_call_operand.hbm [shape: f32[1,96], index: 8, kind: input, shape index: {}]   ;;  %s6897_s9 = inlined_call_operand.vmem [shape: f32[64,96], index: 9, kind: input, shape index: {}]   ;;  %s6898_s10 = inlined_call_operand.vmem [shape: f32[32,96], index: 10, kind: input, shape index: {}]   ;;  %s6899_s11 = inlined_call_operand.hbm [shape: f32[1,96], index: 11, kind: input, shape index: {}]   ;;  %s6900_s12 = inlined_call_operand.hbm [shape: f32[1,96], index: 12, kind: input, shape index: {}]   ;;  %s6901_s13 = inlined_call_operand.vmem [shape: f32[64,96], index: 13, kind: input, shape index: {}]   ;;  %s6902_s14 = inlined_call_operand.hbm [shape: f32[32,96], index: 14, kind: input, shape index: {}]   ;;  %s6903_s15 = inlined_call_operand.vmem [shape: f32[1,96], index: 15, kind: input, shape index: {}]   ;;  %s6904_s16 = inlined_call_operand.vmem [shape: f32[1,96], index: 16, kind: input, shape index: {}]   ;;  %s6905_s17 = inlined_call_operand.vmem [shape: f32[1,64], index: 17, kind: input, shape index: {}]   ;;  %s6906_s18 = inlined_call_operand.vmem [shape: f32[1,64], index: 18, kind: input, shape index: {}]   ;;  %s6907_s19 = inlined_call_operand.vmem [shape: f32[64,32], index: 19, kind: input, shape index: {}]   ;;  %s6908_s20 = inlined_call_operand.vmem [shape: f32[1,32], index: 20, kind: input, shape index: {}]   ;;  %s6909_s21 = inlined_call_operand.vmem [shape: f32[32,16], index: 21, kind: input, shape index: {}]   ;;  %s6910_s22 = inlined_call_operand.vmem [shape: f32[1,16], index: 22, kind: input, shape index: {}]   ;;  %s6911_s23 = inlined_call_operand.vmem [shape: f32[16,5], index: 23, kind: input, shape index: {}]   ;;  %s6912_s24 = inlined_call_operand.vmem [shape: f32[1,5], index: 24, kind: input, shape index: {}]   ;;  %s6913_s25 = inlined_call_operand.hbm [shape: f32[2,5], index: 25, kind: output, shape index: {}]  }
   0x1   :  { %6928 = sst [smem:[#allocation28_spill]] %s6888_s0 }
   0x2   :  { %6929 = sst [smem:[#allocation29_spill]] %s6889_s1 }
   0x3   :  { %6930 = sst [smem:[#allocation30_spill]] %s6890_s2 }
   0x4   :  { %6931 = sst [smem:[#allocation31_spill]] %s6891_s3 }
   0x5   :  { %6932 = sst [smem:[#allocation32_spill]] %s6892_s4 }
   0x6   :  { %6933 = sst [smem:[#allocation33_spill]] %s6893_s5 }
   0x7   :  { %6934 = sst [smem:[#allocation34_spill]] %s6894_s6 }
   0x8   :  { %6935 = sst [smem:[#allocation35_spill]] %s6895_s7 }
   0x9   :  { %6936 = sst [smem:[#allocation36_spill]] %s6896_s8 }
   0xa   :  { %6937 = sst [smem:[#allocation37_spill]] %s6897_s9 }
   0xb   :  { %6938 = sst [smem:[#allocation38_spill]] %s6912_s24 }
   0xc   :  { %6939 = sst [smem:[#allocation39_spill]] %s6913_s25 }
   0xd   :  { %30 = vsyncpa [#allocation3], 0 }
   0xe   :  { %31 = vsyncpa [#allocation6], 0 }
   0xf   :  { %32 = vsyncpa [#allocation9], 0 }
  0x10   :  { %33 = vsyncpa [#allocation12], 0 }
  0x11   :  { %34 = vsyncpa [#allocation15], 0 }
  0x12   :  { %35 = vsyncpa [#allocation18], 0 }
  0x13   :  { %36 = vsyncpa [#allocation4], 0  ;;  %s5795_s29 = smov [#allocation5]   ;;  %s5796_s6 = smov [#allocation8]  }
  0x14   :  { %s54_s2 = sshll.u32 %s5795_s29, 4  ;;  %s81_s30 = sshll.u32 %s5796_s6, 4  ;;  %s55_s2 = int_to_ptr.vmem [resolvable:$true] %s54_s2  ;;  %s5944_s30 = int_to_ptr.vmem [resolvable:$true] %s81_s30 }
  0x15   :  { %s6940_s26 = sld [smem:[#allocation29_spill]] }
  0x1b   :  { %s5517_s1 = scalar_lea.hbm %s6940_s26, 256 }
  0x1c   :  { %p5518_p0 = scmp.ne.s32.totalorder %s6940_s26, %s5517_s1  ;;  %p5521_p1 = scmp.lt.u32.totalorder %s5517_s1, %s6940_s26 }
  0x1e   :  { %p5523_p2 = pnand %p5521_p1, %p5518_p0 }
  0x20   :  { %5526 = shalt.err (!%p5523_p2)
}
  0x21   :  { %s5527_s9 = scalar_lea.vmem %s55_s2, 256  ;;  %p5532_p4 = scmp.lt.s32.totalorder %s55_s2, %s55_s2 }
  0x22   :  { %p5528_p3 = scmp.ne.s32.totalorder %s55_s2, %s5527_s9  ;;  %p5533_p5 = scmp.lt.s32.totalorder %s5527_s9, %s5527_s9 }
  0x24   :  { %p5534_p6 = por %p5533_p5, %p5532_p4 }
  0x26   :  { %p5535_p7 = pnand %p5534_p6, %p5528_p3 }
  0x28   :  { %5538 = shalt.err (!%p5535_p7)
}
  0x29   :  { %s6923_s5 = smov 128   ;;  %s6925_s0 = smov 8  }
  0x2a   :  { %60 = dma.hbm_to_vmem [thread:$0]  %s6940_s26, 256, %s55_s2, [#allocation6], %s6923_s5, %s6923_s5, %s6925_s0  }
  0x2b   :  { %s6941_s1 = sld [smem:[#allocation32_spill]] }
  0x31   :  { %s5539_s8 = scalar_lea.hbm %s6941_s1, 16 }
  0x32   :  { %p5540_p8 = scmp.ne.s32.totalorder %s6941_s1, %s5539_s8  ;;  %p5543_p9 = scmp.lt.u32.totalorder %s5539_s8, %s6941_s1 }
  0x34   :  { %p5545_p10 = pnand %p5543_p9, %p5540_p8 }
  0x36   :  { %5548 = shalt.err (!%p5545_p10)
}
  0x37   :  { %s5549_s29 = scalar_lea.vmem %s5944_s30, 16  ;;  %s5553_s2 = scalar_lea.vmem %s5944_s30, 32 }
  0x38   :  { %p5550_p11 = scmp.ne.s32.totalorder %s5944_s30, %s5549_s29  ;;  %p5554_p12 = scmp.lt.s32.totalorder %s5944_s30, %s5944_s30 }
  0x39   :  { %p5555_p13 = scmp.lt.s32.totalorder %s5553_s2, %s5549_s29 }
  0x3b   :  { %p5556_p0 = por %p5555_p13, %p5554_p12 }
  0x3d   :  { %p5557_p1 = pnand %p5556_p0, %p5550_p11 }
  0x3f   :  { %5560 = shalt.err (!%p5557_p1)
}
  0x40   :  { %84 = dma.hbm_to_vmem [thread:$0]  %s6941_s1, 16, %s5944_s30, [#allocation9]  }
  0x41   :  { %s5799_s7 = smov [#allocation11]   ;;  %s5800_s8 = smov [#allocation14]  }
  0x42   :  { %s102_s3 = sshll.u32 %s5799_s7, 4  ;;  %s125_s27 = sshll.u32 %s5800_s8, 4  ;;  %s103_s3 = int_to_ptr.vmem [resolvable:$true] %s102_s3  ;;  %s126_s27 = int_to_ptr.vmem [resolvable:$true] %s125_s27 }
  0x43   :  { %s6942_s9 = sld [smem:[#allocation34_spill]] }
  0x49   :  { %s5561_s5 = scalar_lea.hbm %s6942_s9, 512 }
  0x4a   :  { %p5562_p2 = scmp.ne.s32.totalorder %s6942_s9, %s5561_s5  ;;  %p5565_p3 = scmp.lt.u32.totalorder %s5561_s5, %s6942_s9 }
  0x4c   :  { %p5567_p4 = pnand %p5565_p3, %p5562_p2 }
  0x4e   :  { %5570 = shalt.err (!%p5567_p4)
}
  0x4f   :  { %s5571_s30 = scalar_lea.vmem %s103_s3, 512  ;;  %p5576_p6 = scmp.lt.s32.totalorder %s103_s3, %s103_s3 }
  0x50   :  { %p5572_p5 = scmp.ne.s32.totalorder %s103_s3, %s5571_s30  ;;  %p5577_p7 = scmp.lt.s32.totalorder %s5571_s30, %s5571_s30 }
  0x52   :  { %p5578_p8 = por %p5577_p7, %p5576_p6 }
  0x54   :  { %p5579_p9 = pnand %p5578_p8, %p5572_p5 }
  0x56   :  { %5582 = shalt.err (!%p5579_p9)
}
  0x57   :  { %s6943_s1 = smov 8   ;;  %s6944_s26 = smov 128  }
  0x58   :  { %108 = dma.hbm_to_vmem [thread:$0]  %s6942_s9, 512, %s103_s3, [#allocation12], %s6944_s26, %s6944_s26, %s6943_s1  }
  0x59   :  { %s6945_s25 = sld [smem:[#allocation36_spill]] }
  0x5f   :  { %s5583_s5 = scalar_lea.hbm %s6945_s25, 16 }
  0x60   :  { %p5584_p10 = scmp.ne.s32.totalorder %s6945_s25, %s5583_s5  ;;  %p5587_p11 = scmp.lt.u32.totalorder %s5583_s5, %s6945_s25 }
  0x62   :  { %p5589_p12 = pnand %p5587_p11, %p5584_p10 }
  0x64   :  { %5592 = shalt.err (!%p5589_p12)
}
  0x65   :  { %s5593_s30 = scalar_lea.vmem %s126_s27, 16  ;;  %s5597_s24 = scalar_lea.vmem %s126_s27, 32 }
  0x66   :  { %p5594_p13 = scmp.ne.s32.totalorder %s126_s27, %s5593_s30  ;;  %p5598_p0 = scmp.lt.s32.totalorder %s126_s27, %s126_s27 }
  0x67   :  { %p5599_p1 = scmp.lt.s32.totalorder %s5597_s24, %s5593_s30 }
  0x69   :  { %p5600_p2 = por %p5599_p1, %p5598_p0 }
  0x6b   :  { %p5601_p3 = pnand %p5600_p2, %p5594_p13 }
  0x6d   :  { %5604 = shalt.err (!%p5601_p3)
}
  0x6e   :  { %128 = dma.hbm_to_vmem [thread:$0]  %s6945_s25, 16, %s126_s27, [#allocation15]  }
  0x6f   :  { %s5801_s6 = smov [#allocation17]   ;;  %s5802_s0 = smov [#allocation2]  }
  0x70   :  { %s149_s7 = sshll.u32 %s5801_s6, 4  ;;  %s42_s8 = sshll.u32 %s5802_s0, 4  ;;  %s150_s7 = int_to_ptr.vmem [resolvable:$true] %s149_s7  ;;  %s6006_s8 = int_to_ptr.vmem [resolvable:$true] %s42_s8 }
  0x71   :  { %s5605_s28 = scalar_lea.hbm %s6900_s12, 16 }
  0x72   :  { %p5606_p4 = scmp.ne.s32.totalorder %s6900_s12, %s5605_s28  ;;  %p5609_p5 = scmp.lt.u32.totalorder %s5605_s28, %s6900_s12 }
  0x74   :  { %p5611_p6 = pnand %p5609_p5, %p5606_p4 }
  0x76   :  { %5614 = shalt.err (!%p5611_p6)
}
  0x77   :  { %s5615_s27 = scalar_lea.vmem %s150_s7, 16  ;;  %s5619_s25 = scalar_lea.vmem %s150_s7, 32 }
  0x78   :  { %p5616_p7 = scmp.ne.s32.totalorder %s150_s7, %s5615_s27  ;;  %p5620_p8 = scmp.lt.s32.totalorder %s150_s7, %s150_s7 }
  0x79   :  { %p5621_p9 = scmp.lt.s32.totalorder %s5619_s25, %s5615_s27 }
  0x7b   :  { %p5622_p10 = por %p5621_p9, %p5620_p8 }
  0x7d   :  { %p5623_p11 = pnand %p5622_p10, %p5616_p7 }
  0x7f   :  { %5626 = shalt.err (!%p5623_p11)
}
  0x80   :  { %152 = dma.hbm_to_vmem [thread:$0]  %s6900_s12, 16, %s150_s7, [#allocation18]  }
  0x81   :  { %s6946_s5 = sld [smem:[#allocation28_spill]] }
  0x87   :  { %s5627_s4 = scalar_lea.hbm %s6946_s5, 256 }
  0x88   :  { %p5628_p12 = scmp.ne.s32.totalorder %s6946_s5, %s5627_s4  ;;  %p5631_p13 = scmp.lt.u32.totalorder %s5627_s4, %s6946_s5 }
  0x8a   :  { %p5633_p0 = pnand %p5631_p13, %p5628_p12 }
  0x8c   :  { %5636 = shalt.err (!%p5633_p0)
}
  0x8d   :  { %s5637_s30 = scalar_lea.vmem %s6006_s8, 256  ;;  %p5642_p2 = scmp.lt.s32.totalorder %s6006_s8, %s6006_s8 }
  0x8e   :  { %p5638_p1 = scmp.ne.s32.totalorder %s6006_s8, %s5637_s30  ;;  %p5643_p3 = scmp.lt.s32.totalorder %s5637_s30, %s5637_s30 }
  0x90   :  { %p5644_p4 = por %p5643_p3, %p5642_p2 }
  0x92   :  { %p5645_p5 = pnand %p5644_p4, %p5638_p1 }
  0x94   :  { %5648 = shalt.err (!%p5645_p5)
}
  0x95   :  { %48 = dma.hbm_to_vmem [thread:$0]  %s6946_s5, 256, %s6006_s8, [#allocation3], %s6944_s26, %s6944_s26, %s6943_s1  }
  0x96   :  { %s5803_s27 = smov [#allocation7]   ;;  %s5804_s3 = smov [#allocation10]  }
  0x97   :  { %s66_s25 = sshll.u32 %s5803_s27, 4  ;;  %s90_s9 = sshll.u32 %s5804_s3, 4  ;;  %s67_s25 = int_to_ptr.vmem [resolvable:$true] %s66_s25  ;;  %s6040_s9 = int_to_ptr.vmem [resolvable:$true] %s90_s9 }
  0x98   :  { %s6947_s4 = sld [smem:[#allocation30_spill]] }
  0x9e   :  { %s5649_s29 = scalar_lea.hbm %s6947_s4, 512 }
  0x9f   :  { %p5650_p6 = scmp.ne.s32.totalorder %s6947_s4, %s5649_s29  ;;  %p5653_p7 = scmp.lt.u32.totalorder %s5649_s29, %s6947_s4 }
  0xa1   :  { %p5655_p8 = pnand %p5653_p7, %p5650_p6 }
  0xa3   :  { %5658 = shalt.err (!%p5655_p8)
}
  0xa4   :  { %s5659_s8 = scalar_lea.vmem %s67_s25, 512  ;;  %p5664_p10 = scmp.lt.s32.totalorder %s67_s25, %s67_s25 }
  0xa5   :  { %p5660_p9 = scmp.ne.s32.totalorder %s67_s25, %s5659_s8  ;;  %p5665_p11 = scmp.lt.s32.totalorder %s5659_s8, %s5659_s8 }
  0xa7   :  { %p5666_p12 = por %p5665_p11, %p5664_p10 }
  0xa9   :  { %p5667_p13 = pnand %p5666_p12, %p5660_p9 }
  0xab   :  { %5670 = shalt.err (!%p5667_p13)
}
  0xac   :  { %72 = dma.hbm_to_vmem [thread:$0]  %s6947_s4, 512, %s67_s25, [#allocation6], %s6944_s26, %s6944_s26, %s6943_s1  }
  0xad   :  { %s6948_s3 = sld [smem:[#allocation33_spill]] }
  0xb3   :  { %s5671_s6 = scalar_lea.hbm %s6948_s3, 256 }
  0xb4   :  { %p5672_p0 = scmp.ne.s32.totalorder %s6948_s3, %s5671_s6  ;;  %p5675_p1 = scmp.lt.u32.totalorder %s5671_s6, %s6948_s3 }
  0xb6   :  { %p5677_p2 = pnand %p5675_p1, %p5672_p0 }
  0xb8   :  { %5680 = shalt.err (!%p5677_p2)
}
  0xb9   :  { %s5681_s2 = scalar_lea.vmem %s6040_s9, 256  ;;  %p5686_p4 = scmp.lt.s32.totalorder %s6040_s9, %s6040_s9 }
  0xba   :  { %p5682_p3 = scmp.ne.s32.totalorder %s6040_s9, %s5681_s2  ;;  %p5687_p5 = scmp.lt.s32.totalorder %s5681_s2, %s5681_s2 }
  0xbc   :  { %p5688_p6 = por %p5687_p5, %p5686_p4 }
  0xbe   :  { %p5689_p7 = pnand %p5688_p6, %p5682_p3 }
  0xc0   :  { %5692 = shalt.err (!%p5689_p7)
}
  0xc1   :  { %96 = dma.hbm_to_vmem [thread:$0]  %s6948_s3, 256, %s6040_s9, [#allocation9], %s6944_s26, %s6944_s26, %s6943_s1  }
  0xc2   :  { %s5805_s30 = smov [#allocation13]   ;;  %s5806_s5 = smov [#allocation16]  }
  0xc3   :  { %s115_s8 = sshll.u32 %s5805_s30, 4  ;;  %s139_s12 = sshll.u32 %s5806_s5, 4  ;;  %s116_s8 = int_to_ptr.vmem [resolvable:$true] %s115_s8  ;;  %s140_s12 = int_to_ptr.vmem [resolvable:$true] %s139_s12 }
  0xc4   :  { %s6949_s6 = sld [smem:[#allocation35_spill]] }
  0xca   :  { %s5693_s0 = scalar_lea.hbm %s6949_s6, 16 }
  0xcb   :  { %p5694_p8 = scmp.ne.s32.totalorder %s6949_s6, %s5693_s0  ;;  %p5697_p9 = scmp.lt.u32.totalorder %s5693_s0, %s6949_s6 }
  0xcd   :  { %p5699_p10 = pnand %p5697_p9, %p5694_p8 }
  0xcf   :  { %5702 = shalt.err (!%p5699_p10)
}
  0xd0   :  { %s5703_s9 = scalar_lea.vmem %s116_s8, 16  ;;  %s5707_s3 = scalar_lea.vmem %s116_s8, 32 }
  0xd1   :  { %p5704_p11 = scmp.ne.s32.totalorder %s116_s8, %s5703_s9  ;;  %p5708_p12 = scmp.lt.s32.totalorder %s116_s8, %s116_s8 }
  0xd2   :  { %p5709_p13 = scmp.lt.s32.totalorder %s5707_s3, %s5703_s9 }
  0xd4   :  { %p5710_p0 = por %p5709_p13, %p5708_p12 }
  0xd6   :  { %p5711_p1 = pnand %p5710_p0, %p5704_p11 }
  0xd8   :  { %5714 = shalt.err (!%p5711_p1)
}
  0xd9   :  { %118 = dma.hbm_to_vmem [thread:$0]  %s6949_s6, 16, %s116_s8, [#allocation12]  }
  0xda   :  { %s5715_s7 = scalar_lea.hbm %s6899_s11, 16 }
  0xdb   :  { %p5716_p2 = scmp.ne.s32.totalorder %s6899_s11, %s5715_s7  ;;  %p5719_p3 = scmp.lt.u32.totalorder %s5715_s7, %s6899_s11 }
  0xdd   :  { %p5721_p4 = pnand %p5719_p3, %p5716_p2 }
  0xdf   :  { %5724 = shalt.err (!%p5721_p4)
}
  0xe0   :  { %s5725_s24 = scalar_lea.vmem %s140_s12, 16  ;;  %s5729_s2 = scalar_lea.vmem %s140_s12, 32 }
  0xe1   :  { %p5726_p5 = scmp.ne.s32.totalorder %s140_s12, %s5725_s24  ;;  %p5730_p6 = scmp.lt.s32.totalorder %s140_s12, %s140_s12 }
  0xe2   :  { %p5731_p7 = scmp.lt.s32.totalorder %s5729_s2, %s5725_s24 }
  0xe4   :  { %p5732_p8 = por %p5731_p7, %p5730_p6 }
  0xe6   :  { %p5733_p9 = pnand %p5732_p8, %p5726_p5 }
  0xe8   :  { %5736 = shalt.err (!%p5733_p9)
}
  0xe9   :  { %142 = dma.hbm_to_vmem [thread:$0]  %s6899_s11, 16, %s140_s12, [#allocation15]  }
  0xea   :  { %s5807_s9 = smov [#allocation19]   ;;  %s5737_s30 = scalar_lea.hbm %s6902_s14, 512 }
  0xeb   :  { %s160_s3 = sshll.u32 %s5807_s9, 4  ;;  %p5738_p10 = scmp.ne.s32.totalorder %s6902_s14, %s5737_s30  ;;  %s161_s3 = int_to_ptr.vmem [resolvable:$true] %s160_s3 }
  0xec   :  { %p5741_p11 = scmp.lt.u32.totalorder %s5737_s30, %s6902_s14 }
  0xee   :  { %p5743_p12 = pnand %p5741_p11, %p5738_p10 }
  0xf0   :  { %5746 = shalt.err (!%p5743_p12)
}
  0xf1   :  { %s5747_s29 = scalar_lea.vmem %s161_s3, 512  ;;  %p5752_p0 = scmp.lt.s32.totalorder %s161_s3, %s161_s3 }
  0xf2   :  { %p5748_p13 = scmp.ne.s32.totalorder %s161_s3, %s5747_s29  ;;  %p5753_p1 = scmp.lt.s32.totalorder %s5747_s29, %s5747_s29 }
  0xf4   :  { %p5754_p2 = por %p5753_p1, %p5752_p0 }
  0xf6   :  { %p5755_p3 = pnand %p5754_p2, %p5748_p13 }
  0xf8   :  { %5758 = shalt.err (!%p5755_p3)
}
  0xf9   :  { %166 = dma.hbm_to_vmem [thread:$0]  %s6902_s14, 512, %s161_s3, [#allocation18], %s6944_s26, %s6944_s26, %s6943_s1  }
  0xfa   :  { %5781 = dma.done.wait [#allocation3], 256  }
  0xfb   :  { %5782 = vsyncadd [#allocation3], 4294967040 }
  0xfc   :  { %5783 = dma.done.wait [#allocation6], 768  }
  0xfd   :  { %5784 = vsyncadd [#allocation6], 4294966528 }
  0xfe   :  { %5785 = dma.done.wait [#allocation9], 272  }
  0xff   :  { %5786 = vsyncadd [#allocation9], 4294967024 }
 0x100   :  { %5787 = dma.done.wait [#allocation12], 528  }
 0x101   :  { %5788 = vsyncadd [#allocation12], 4294966768 }
 0x102   :  { %5789 = dma.done.wait [#allocation15], 32  }
 0x103   :  { %5790 = vsyncadd [#allocation15], 4294967264 }
 0x104   :  { %5791 = dma.done.wait [#allocation18], 528  }
 0x105   :  { %5792 = vsyncadd [#allocation18], 4294966768  ;;  %v5808_v0 = vmov 0.0|0.0   ;;  %vm5809_vm0 = vmmov 0   ;;  %v5810_v1 = vmov 0.0   ;;  %v224_v2 = vld [vmem:[#allocation7] sm:$0xff] }
 0x106   :  { %5054 = vmatprep.subr.bf16.mxu1 %v5808_v0  ;;  %4624 = vmatprep.mubr.msk.f32.mxu1 %vm5809_vm0, %v5810_v1  ;;  %v225_v3 = vld [vmem:[#allocation7 + $0x8] sm:$0xff]  ;;  %v222_v4 = vld [vmem:[#allocation5] sm:$0xff]  ;;  %vm236_vm1 = vcmask 130048   ;;  %v223_v6 = vld [vmem:[#allocation5 + $0x8] sm:$0xff]  ;;  %s6950_s26 = sld [smem:[#allocation31_spill]]  ;;  %s5811_s28 = smov 64  }
 0x107   :  { %v6119_v5 = vpack.c.bf16 %v225_v3, %v224_v2  ;;  %v226_v7 = vld [vmem:[#allocation7 + $0x10] sm:$0xff]  ;;  %v227_v8 = vld [vmem:[#allocation7 + $0x18] sm:$0xff]  ;;  %v5050_v9 = vpack.c.bf16 %v223_v6, %v222_v4  ;;  %v6121_v10 = vld [vmem:[#allocation2] sm:$0xff]  ;;  %s5812_s24 = smov 96   ;;  %vm324_vm2 = vcmask 261120   ;;  %s6951_s27 = sld [smem:[#allocation37_spill]] }
 0x108   :  { %v6124_v11 = vpack.c.bf16 %v227_v8, %v226_v7  ;;  %4613 = vmatprep.mubr.msk.f32.mxu0 %vm236_vm1, %v6121_v10  ;;  %v6129_v12 = vld [vmem:[#allocation2 + $0x8] sm:$0xff]  ;;  %v6152_v15 = vld [vmem:[#allocation8] ss:$0 sm:$0xff]  ;;  %vm2118_vm3 = vcmask 1041408   ;;  %vm2120_vm4 = vcmask 1043456   ;;  %vm2122_vm5 = vcmask 1045504  }
 0x109   :  { %5056 = vmatpush3.bf16.msra.mxu1 %v6119_v5  ;;  %5051 = vmatprep.subr.bf16.mxu0 %v5050_v9  ;;  %vm2147_vm6 = vcmask 523264   ;;  %vm4010_vm7 = vcmask 523270   ;;  %s6952_s0 = sld [smem:[#allocation38_spill]]  ;;  %s5813_s29 = smov [#allocation20]   ;;  %vm4298_vm8 = vcmask 33792  }
 0x10a   :  { %5057 = vmatprep.subr.bf16.mxu1 %v5808_v0  ;;  %5053 = vmatpush3.bf16.msra.mxu0 %v5050_v9  ;;  %s4306_s11 = sshll.u32 %s5813_s29, 4  ;;  %s4307_s11 = int_to_ptr.vmem [resolvable:$true] %s4306_s11 }
 0x10b   :  { %5060 = vmatprep.subr.bf16.mxu0 %v5808_v0  ;;  %p5764_p5 = scmp.lt.s32.totalorder %s4307_s11, %s4307_s11 }
 0x10c   :  { %v4320_v14 = vld [vmem:[%s6950_s26] ss:$0 sm:$0xff] }
 0x10d   :  { %5059 = vmatpush3.bf16.msra.mxu1 %v6124_v11  ;;  %4614 = vmatmul.mubr.msk.f32.vlgmr.msra.gmra.mrb[0].mxu0 %vm236_vm1, %v6129_v12 }
 0x10e   :  { %5066 = vmatprep.subr.bf16.mxu1 %v5808_v0  ;;  %5062 = vmatpush3.bf16.msra.mxu0 %v6119_v5 }
 0x10f   :  { %4635 = vmatprep.mubr.msk.f32.mxu0 %vm5809_vm0, %v5810_v1  ;;  %5063 = vmatprep.subr.bf16.mxu0 %v5808_v0 }
 0x110   :  { %4625 = vmatmul.mubr.f32.vlgmr.msra.gmra.mrb[0].mxu1 %v5810_v1 }
 0x111   :  { %5068 = vmatpush3.bf16.msra.mxu1 %v6119_v5  ;;  %4646 = vmatprep.mubr.msk.f32.mxu1 %vm5809_vm0, %v5810_v1 }
 0x112   :  { %5069 = vmatprep.subr.bf16.mxu1 %v5808_v0  ;;  %5065 = vmatpush3.bf16.msra.mxu0 %v6124_v11 }
 0x113   :  { %5072 = vmatprep.subr.bf16.mxu0 %v5808_v0 }
 0x115   :  { %5071 = vmatpush3.bf16.msra.mxu1 %v6124_v11 }
 0x116   :  { %5078 = vmatprep.subr.bf16.mxu1 %v5808_v0 }
 0x1e0   :  { %v4615_v13 = vpop.f32.mrb[0].mxu0 }
 0x1e1   :  { %v6154_v16 = vadd.f32 %v4615_v13, %v4320_v14  ;;  %v309_v17 = vpop.f32.mrb[1].mxu0 }
 0x1e2   :  { %v6158_v21 = vadd.f32 %v4320_v14, %v309_v17 }
 0x1e3   :  { %v394_v18 = vpop.f32.mrb[0].mxu1 }
 0x1e4   :  { %v395_v19 = vadd.f32 %v6152_v15, %v394_v18  ;;  %v4626_v20 = vpop.f32.mrb[1].mxu1 }
 0x1e6   :  { %406 = vrot.lane.b32.xlu0 %v395_v19, %s5811_s28  ;;  %v398_v22 = vadd.f32 %v395_v19, %v6158_v21 }
 0x1e8   :  { %v4324_v23 = vmul.f32 -1.442695, %v398_v22 }
 0x1ea   :  { %5322 = vpow2.f32 %v4324_v23 }
 0x1f4   :  { %v5323_v24 = vpop.eup %5322 }
 0x1f5   :  { %v402_v25 = vadd.f32 1.0, %v5323_v24 }
 0x1f7   :  { %5324 = vrcp.f32 %v402_v25 }
 0x201   :  { %v5325_v26 = vpop.eup %5324 }
 0x202   :  { %v416_v32 = vsub.f32 1.0, %v5325_v26  ;;  %v422_v34 = vmul.f32 0.0, %v5325_v26 }
 0x258   :  { %v407_v27 = vpop.permute.xlu0 %406 }
 0x259   :  { %v409_v28 = vmul.f32 %v5325_v26, %v407_v27 }
 0x25b   :  { %411 = vrot.lane.b32.xlu0 %v409_v28, %s5811_s28 }
 0x2cd   :  { %v412_v29 = vpop.permute.xlu0 %411 }
 0x2ce   :  { %v414_v30 = vadd.f32 %v412_v29, %v6158_v21 }
 0x2d0   :  { %5326 = vtanh.f32 %v414_v30 }
 0x2da   :  { %v5327_v31 = vpop.eup %5326 }
 0x2db   :  { %418 = vrot.lane.b32.xlu1 %v5327_v31, %s5812_s24 }
 0x34d   :  { %v419_v33 = vpop.permute.xlu1 %418 }
 0x34e   :  { %v421_v35 = vmul.f32 %v419_v33, %v416_v32 }
 0x350   :  { %v423_v36 = vadd.f32 %v422_v34, %v421_v35 }
 0x352   :  { %425 = vrot.lane.b32.xlu1 %v423_v36, %s5812_s24  ;;  %v525_v52 = vrot.slane %v423_v36, 6 }
 0x3c4   :  { %v6165_v37 = vpop.permute.xlu1 %425 }
 0x3c5   :  { %4636 = vmatmul.mubr.msk.f32.vlgmr.msra.gmra.mrb[2].mxu0 %vm324_vm2, %v6165_v37 }
 0x3c6   :  { %5074 = vmatpush3.bf16.msra.mxu0 %v6119_v5  ;;  %4657 = vmatprep.mubr.msk.f32.mxu0 %vm5809_vm0, %v5810_v1 }
 0x3c7   :  { %5075 = vmatprep.subr.bf16.mxu0 %v5808_v0 }
 0x3ca   :  { %5077 = vmatpush3.bf16.msra.mxu0 %v6124_v11 }
 0x3cb   :  { %5084 = vmatprep.subr.bf16.mxu0 %v5808_v0 }
 0x498   :  { %v495_v38 = vpop.f32.mrb[2].mxu0 }
 0x499   :  { %v496_v39 = vadd.f32 %v6152_v15, %v495_v38  ;;  %v4637_v40 = vpop.f32.mrb[3].mxu0 }
 0x49b   :  { %v500_v41 = vrot.slane %v496_v39, 6 }
 0x49d   :  { %509 = vrot.lane.b32.xlu0 %v500_v41, %s5811_s28  ;;  %v502_v42 = vadd.f32 %v500_v41, %v6158_v21 }
 0x49f   :  { %v4326_v43 = vmul.f32 -1.442695, %v502_v42 }
 0x4a1   :  { %5328 = vpow2.f32 %v4326_v43 }
 0x4ab   :  { %v5329_v44 = vpop.eup %5328 }
 0x4ac   :  { %v506_v45 = vadd.f32 1.0, %v5329_v44 }
 0x4ae   :  { %5330 = vrcp.f32 %v506_v45 }
 0x4b8   :  { %v5331_v46 = vpop.eup %5330 }
 0x4b9   :  { %v519_v53 = vsub.f32 1.0, %v5331_v46  ;;  %v527_v56 = vmul.f32 %v5331_v46, %v525_v52 }
 0x50f   :  { %v510_v47 = vpop.permute.xlu0 %509 }
 0x510   :  { %v512_v48 = vmul.f32 %v5331_v46, %v510_v47 }
 0x512   :  { %514 = vrot.lane.b32.xlu1 %v512_v48, %s5811_s28 }
 0x584   :  { %v515_v49 = vpop.permute.xlu1 %514 }
 0x585   :  { %v517_v50 = vadd.f32 %v515_v49, %v6158_v21 }
 0x587   :  { %5332 = vtanh.f32 %v517_v50 }
 0x591   :  { %v5333_v51 = vpop.eup %5332 }
 0x592   :  { %521 = vrot.lane.b32.xlu0 %v5333_v51, %s5812_s24 }
 0x604   :  { %v522_v54 = vpop.permute.xlu0 %521 }
 0x605   :  { %v524_v55 = vmul.f32 %v522_v54, %v519_v53 }
 0x607   :  { %v6181_v57 = vadd.f32 %v527_v56, %v524_v55 }
 0x609   :  { %v530_v58 = vrot.slane %v6181_v57, 2  ;;  %v631_v19 = vrot.slane %v6181_v57, 6 }
 0x60b   :  { %531 = vrot.lane.b32.xlu1 %v530_v58, %s5812_s24 }
 0x67d   :  { %v532_v59 = vpop.permute.xlu1 %531 }
 0x67e   :  { %4647 = vmatmul.mubr.msk.f32.vlgmr.msra.gmra.mrb[2].mxu1 %vm324_vm2, %v532_v59 }
 0x67f   :  { %5080 = vmatpush3.bf16.msra.mxu1 %v6119_v5  ;;  %4668 = vmatprep.mubr.msk.f32.mxu1 %vm5809_vm0, %v5810_v1 }
 0x680   :  { %5081 = vmatprep.subr.bf16.mxu1 %v5808_v0 }
 0x683   :  { %5083 = vmatpush3.bf16.msra.mxu1 %v6124_v11 }
 0x684   :  { %5090 = vmatprep.subr.bf16.mxu1 %v5808_v0 }
 0x751   :  { %v601_v60 = vpop.f32.mrb[2].mxu1 }
 0x752   :  { %v602_v61 = vadd.f32 %v6152_v15, %v601_v60  ;;  %v4648_v62 = vpop.f32.mrb[3].mxu1 }
 0x754   :  { %v606_v63 = vrot.slane %v602_v61, 4 }
 0x756   :  { %615 = vrot.lane.b32.xlu0 %v606_v63, %s5811_s28  ;;  %v608_v2 = vadd.f32 %v606_v63, %v6158_v21 }
 0x758   :  { %v4328_v3 = vmul.f32 -1.442695, %v608_v2 }
 0x75a   :  { %5334 = vpow2.f32 %v4328_v3 }
 0x764   :  { %v5335_v4 = vpop.eup %5334 }
 0x765   :  { %v612_v6 = vadd.f32 1.0, %v5335_v4 }
 0x767   :  { %5336 = vrcp.f32 %v612_v6 }
 0x771   :  { %v5337_v7 = vpop.eup %5336 }
 0x772   :  { %v625_v18 = vsub.f32 1.0, %v5337_v7  ;;  %v633_v22 = vmul.f32 %v5337_v7, %v631_v19 }
 0x7c8   :  { %v616_v8 = vpop.permute.xlu0 %615 }
 0x7c9   :  { %v618_v9 = vmul.f32 %v5337_v7, %v616_v8 }
 0x7cb   :  { %620 = vrot.lane.b32.xlu1 %v618_v9, %s5811_s28 }
 0x83d   :  { %v621_v13 = vpop.permute.xlu1 %620 }
 0x83e   :  { %v623_v14 = vadd.f32 %v621_v13, %v6158_v21 }
 0x840   :  { %5338 = vtanh.f32 %v623_v14 }
 0x84a   :  { %v5339_v17 = vpop.eup %5338 }
 0x84b   :  { %627 = vrot.lane.b32.xlu0 %v5339_v17, %s5812_s24 }
 0x8bd   :  { %v628_v20 = vpop.permute.xlu0 %627 }
 0x8be   :  { %v630_v23 = vmul.f32 %v628_v20, %v625_v18 }
 0x8c0   :  { %v6199_v24 = vadd.f32 %v633_v22, %v630_v23 }
 0x8c2   :  { %v636_v25 = vrot.slane %v6199_v24, 4  ;;  %v737_v43 = vrot.slane %v6199_v24, 6 }
 0x8c4   :  { %637 = vrot.lane.b32.xlu1 %v636_v25, %s5812_s24 }
 0x936   :  { %v638_v26 = vpop.permute.xlu1 %637 }
 0x937   :  { %4658 = vmatmul.mubr.msk.f32.vlgmr.msra.gmra.mrb[4].mxu0 %vm324_vm2, %v638_v26 }
 0x938   :  { %5086 = vmatpush3.bf16.msra.mxu0 %v6119_v5  ;;  %4679 = vmatprep.mubr.msk.f32.mxu0 %vm5809_vm0, %v5810_v1 }
 0x939   :  { %5087 = vmatprep.subr.bf16.mxu0 %v5808_v0 }
 0x93c   :  { %5089 = vmatpush3.bf16.msra.mxu0 %v6124_v11 }
 0x93d   :  { %5096 = vmatprep.subr.bf16.mxu0 %v5808_v0 }
 0xa0a   :  { %v707_v27 = vpop.f32.mrb[4].mxu0 }
 0xa0b   :  { %v708_v28 = vadd.f32 %v6152_v15, %v707_v27  ;;  %v4659_v29 = vpop.f32.mrb[5].mxu0 }
 0xa0d   :  { %v712_v30 = vrot.slane %v708_v28, 2 }
 0xa0f   :  { %721 = vrot.lane.b32.xlu0 %v712_v30, %s5811_s28  ;;  %v714_v31 = vadd.f32 %v712_v30, %v6158_v21 }
 0xa11   :  { %v4330_v32 = vmul.f32 -1.442695, %v714_v31 }
 0xa13   :  { %5340 = vpow2.f32 %v4330_v32 }
 0xa1d   :  { %v5341_v33 = vpop.eup %5340 }
 0xa1e   :  { %v718_v34 = vadd.f32 1.0, %v5341_v33 }
 0xa20   :  { %5342 = vrcp.f32 %v718_v34 }
 0xa2a   :  { %v5343_v35 = vpop.eup %5342 }
 0xa2b   :  { %v731_v42 = vsub.f32 1.0, %v5343_v35  ;;  %v739_v45 = vmul.f32 %v5343_v35, %v737_v43 }
 0xa81   :  { %v722_v36 = vpop.permute.xlu0 %721 }
 0xa82   :  { %v724_v38 = vmul.f32 %v5343_v35, %v722_v36 }
 0xa84   :  { %726 = vrot.lane.b32.xlu1 %v724_v38, %s5811_s28 }
 0xaf6   :  { %v727_v39 = vpop.permute.xlu1 %726 }
 0xaf7   :  { %v729_v40 = vadd.f32 %v727_v39, %v6158_v21 }
 0xaf9   :  { %5344 = vtanh.f32 %v729_v40 }
 0xb03   :  { %v5345_v41 = vpop.eup %5344 }
 0xb04   :  { %733 = vrot.lane.b32.xlu0 %v5345_v41, %s5812_s24 }
 0xb76   :  { %v734_v44 = vpop.permute.xlu0 %733 }
 0xb77   :  { %v736_v46 = vmul.f32 %v734_v44, %v731_v42 }
 0xb79   :  { %v6217_v47 = vadd.f32 %v739_v45, %v736_v46 }
 0xb7b   :  { %v742_v48 = vrot.slane %v6217_v47, 6 }
 0xb7d   :  { %743 = vrot.lane.b32.xlu1 %v742_v48, %s5812_s24 }
 0xbef   :  { %v744_v49 = vpop.permute.xlu1 %743 }
 0xbf0   :  { %4669 = vmatmul.mubr.msk.f32.vlgmr.msra.gmra.mrb[4].mxu1 %vm324_vm2, %v744_v49 }
 0xbf1   :  { %5092 = vmatpush3.bf16.msra.mxu1 %v6119_v5  ;;  %4690 = vmatprep.mubr.msk.f32.mxu1 %vm5809_vm0, %v5810_v1 }
 0xbf2   :  { %5093 = vmatprep.subr.bf16.mxu1 %v5808_v0 }
 0xbf5   :  { %5095 = vmatpush3.bf16.msra.mxu1 %v6124_v11 }
 0xcc3   :  { %v813_v21 = vpop.f32.mrb[4].mxu1 }
 0xcc4   :  { %v814_v50 = vadd.f32 %v6152_v15, %v813_v21  ;;  %v4670_v51 = vpop.f32.mrb[5].mxu1  ;;  %v1161_v21 = vld [vmem:[#allocation10] sm:$0xff] }
 0xcc6   :  { %825 = vrot.lane.b32.xlu0 %v814_v50, %s5811_s28  ;;  %v817_v52 = vadd.f32 %v814_v50, %v6154_v16  ;;  %v1162_v50 = vld [vmem:[#allocation10 + $0x8] sm:$0xff] }
 0xcc7   :  { %v5102_v51 = vpack.c.bf16 %v1162_v50, %v1161_v21 }
 0xcc8   :  { %v4332_v53 = vmul.f32 -1.442695, %v817_v52 }
 0xcc9   :  { %5103 = vmatprep.subr.bf16.mxu1 %v5102_v51 }
 0xcca   :  { %5346 = vpow2.f32 %v4332_v53 }
 0xcd4   :  { %v5347_v54 = vpop.eup %5346 }
 0xcd5   :  { %v821_v55 = vadd.f32 1.0, %v5347_v54 }
 0xcd7   :  { %5348 = vrcp.f32 %v821_v55  ;;  %v1163_v55 = vld [vmem:[#allocation11] sm:$0xff] }
 0xce1   :  { %v5349_v56 = vpop.eup %5348 }
 0xce2   :  { %v835_v63 = vsub.f32 1.0, %v5349_v56  ;;  %v842_v3 = vmul.f32 %v5349_v56, %v742_v48 }
 0xd38   :  { %v826_v58 = vpop.permute.xlu0 %825 }
 0xd39   :  { %v828_v59 = vmul.f32 %v5349_v56, %v826_v58  ;;  %v1164_v56 = vld [vmem:[#allocation11 + $0x8] sm:$0xff] }
 0xd3b   :  { %830 = vrot.lane.b32.xlu1 %v828_v59, %s5811_s28 }
 0xdad   :  { %v831_v60 = vpop.permute.xlu1 %830 }
 0xdae   :  { %v833_v61 = vadd.f32 %v831_v60, %v6154_v16 }
 0xdb0   :  { %5350 = vtanh.f32 %v833_v61  ;;  %v6267_v61 = vpack.c.bf16 %v1164_v56, %v1163_v55 }
 0xdba   :  { %v5351_v62 = vpop.eup %5350 }
 0xdbb   :  { %837 = vrot.lane.b32.xlu0 %v5351_v62, %s5812_s24  ;;  %v1165_v62 = vld [vmem:[#allocation11 + $0x10] sm:$0xff] }
 0xe2d   :  { %v838_v2 = vpop.permute.xlu0 %837 }
 0xe2e   :  { %v840_v4 = vmul.f32 %v838_v2, %v835_v63  ;;  %v1166_v63 = vld [vmem:[#allocation11 + $0x18] sm:$0xff] }
 0xe30   :  { %v843_v6 = vadd.f32 %v842_v3, %v840_v4  ;;  %v6277_v3 = vpack.c.bf16 %v1166_v63, %v1165_v62 }
 0xe32   :  { %845 = vrot.lane.b32.xlu1 %v843_v6, %s5812_s24  ;;  %v945_v27 = vrot.slane %v843_v6, 6  ;;  %v4339_v6 = vld [vmem:[#allocation13] ss:$0 sm:$0xff] }
 0xea4   :  { %v6234_v7 = vpop.permute.xlu1 %845 }
 0xea5   :  { %4680 = vmatmul.mubr.msk.f32.vlgmr.msra.gmra.mrb[6].mxu0 %vm324_vm2, %v6234_v7 }
 0xea6   :  { %5098 = vmatpush3.bf16.msra.mxu0 %v6119_v5  ;;  %4701 = vmatprep.mubr.msk.f32.mxu0 %vm5809_vm0, %v5810_v1 }
 0xea7   :  { %5099 = vmatprep.subr.bf16.mxu0 %v5808_v0 }
 0xeaa   :  { %5101 = vmatpush3.bf16.msra.mxu0 %v6124_v11 }
 0xeab   :  { %5106 = vmatprep.subr.bf16.mxu0 %v5808_v0 }
 0xf78   :  { %v915_v8 = vpop.f32.mrb[6].mxu0 }
 0xf79   :  { %v916_v9 = vadd.f32 %v6152_v15, %v915_v8  ;;  %v4681_v13 = vpop.f32.mrb[7].mxu0 }
 0xf7b   :  { %v920_v14 = vrot.slane %v916_v9, 6 }
 0xf7d   :  { %929 = vrot.lane.b32.xlu0 %v920_v14, %s5811_s28  ;;  %v922_v17 = vadd.f32 %v920_v14, %v6154_v16 }
 0xf7f   :  { %v4334_v18 = vmul.f32 -1.442695, %v922_v17  ;;  %v6299_v17 = vld [vmem:[#allocation14] ss:$0 sm:$0xff] }
 0xf81   :  { %5352 = vpow2.f32 %v4334_v18 }
 0xf8b   :  { %v5353_v5 = vpop.eup %5352 }
 0xf8c   :  { %v926_v19 = vadd.f32 1.0, %v5353_v5 }
 0xf8e   :  { %5354 = vrcp.f32 %v926_v19 }
 0xf98   :  { %v5355_v20 = vpop.eup %5354 }
 0xf99   :  { %v939_v28 = vsub.f32 1.0, %v5355_v20  ;;  %v947_v31 = vmul.f32 %v5355_v20, %v945_v27 }
 0xfef   :  { %v930_v22 = vpop.permute.xlu0 %929 }
 0xff0   :  { %v932_v23 = vmul.f32 %v5355_v20, %v930_v22 }
 0xff2   :  { %934 = vrot.lane.b32.xlu1 %v932_v23, %s5811_s28 }
0x1064   :  { %v935_v11 = vpop.permute.xlu1 %934 }
0x1065   :  { %v937_v25 = vadd.f32 %v935_v11, %v6154_v16 }
0x1067   :  { %5356 = vtanh.f32 %v937_v25 }
0x1071   :  { %v5357_v26 = vpop.eup %5356 }
0x1072   :  { %941 = vrot.lane.b32.xlu0 %v5357_v26, %s5812_s24 }
0x10e4   :  { %v942_v29 = vpop.permute.xlu0 %941 }
0x10e5   :  { %v944_v30 = vmul.f32 %v942_v29, %v939_v28 }
0x10e7   :  { %v6250_v32 = vadd.f32 %v947_v31, %v944_v30 }
0x10e9   :  { %v950_v33 = vrot.slane %v6250_v32, 2  ;;  %v1051_v53 = vrot.slane %v6250_v32, 6 }
0x10eb   :  { %951 = vrot.lane.b32.xlu1 %v950_v33, %s5812_s24 }
0x115d   :  { %v952_v34 = vpop.permute.xlu1 %951 }
0x115e   :  { %4691 = vmatmul.mubr.msk.f32.vlgmr.msra.gmra.mrb[6].mxu1 %vm324_vm2, %v952_v34 }
0x115f   :  { %4708 = vmatprep.mubr.msk.f32.mxu1 %vm236_vm1, %v6121_v10  ;;  %5105 = vmatpush3.bf16.msra.mxu1 %v5102_v51 }
0x1160   :  { %5112 = vmatprep.subr.bf16.mxu1 %v5808_v0 }
0x1162   :  { %4709 = vmatmul.mubr.msk.f32.vlgmr.msra.gmra.mrb[8].mxu1 %vm236_vm1, %v6129_v12 }
0x1163   :  { %5114 = vmatpush3.bf16.msra.mxu1 %v6267_v61  ;;  %4730 = vmatprep.mubr.msk.f32.mxu1 %vm5809_vm0, %v5810_v1 }
0x1164   :  { %5115 = vmatprep.subr.bf16.mxu1 %v5808_v0 }
0x1167   :  { %5117 = vmatpush3.bf16.msra.mxu1 %v6277_v3 }
0x1168   :  { %5124 = vmatprep.subr.bf16.mxu1 %v5808_v0 }
0x1231   :  { %v1021_v35 = vpop.f32.mrb[6].mxu1 }
0x1232   :  { %v1022_v36 = vadd.f32 %v6152_v15, %v1021_v35  ;;  %v4692_v38 = vpop.f32.mrb[7].mxu1 }
0x1234   :  { %v1026_v39 = vrot.slane %v1022_v36, 4 }
0x1235   :  { %v4710_v12 = vpop.f32.mrb[8].mxu1 }
0x1236   :  { %1035 = vrot.lane.b32.xlu0 %v1026_v39, %s5811_s28  ;;  %v1028_v40 = vadd.f32 %v1026_v39, %v6154_v16  ;;  %v1241_v8 = vpop.f32.mrb[9].mxu1  ;;  %v6303_v22 = vadd.f32 %v4710_v12, %v4339_v6 }
0x1237   :  { %v6295_v9 = vadd.f32 %v4339_v6, %v1241_v8 }
0x1238   :  { %v4336_v41 = vmul.f32 -1.442695, %v1028_v40 }
0x123a   :  { %5358 = vpow2.f32 %v4336_v41 }
0x1244   :  { %v5359_v42 = vpop.eup %5358 }
0x1245   :  { %v1032_v43 = vadd.f32 1.0, %v5359_v42 }
0x1247   :  { %5360 = vrcp.f32 %v1032_v43 }
0x1251   :  { %v5361_v44 = vpop.eup %5360 }
0x1252   :  { %v1045_v52 = vsub.f32 1.0, %v5361_v44  ;;  %v1053_v58 = vmul.f32 %v5361_v44, %v1051_v53 }
0x12a8   :  { %v1036_v45 = vpop.permute.xlu0 %1035 }
0x12a9   :  { %v1038_v46 = vmul.f32 %v5361_v44, %v1036_v45 }
0x12ab   :  { %1040 = vrot.lane.b32.xlu1 %v1038_v46, %s5811_s28 }
0x131d   :  { %v1041_v10 = vpop.permute.xlu1 %1040 }
0x131e   :  { %v1043_v48 = vadd.f32 %v1041_v10, %v6154_v16 }
0x1320   :  { %5362 = vtanh.f32 %v1043_v48 }
0x132a   :  { %v5363_v49 = vpop.eup %5362 }
0x132b   :  { %1047 = vrot.lane.b32.xlu0 %v5363_v49, %s5812_s24 }
0x139d   :  { %v1048_v54 = vpop.permute.xlu0 %1047 }
0x139e   :  { %v1050_v59 = vmul.f32 %v1048_v54, %v1045_v52 }
0x13a0   :  { %v6265_v60 = vadd.f32 %v1053_v58, %v1050_v59 }
0x13a2   :  { %v1056_v2 = vrot.slane %v6265_v60, 4 }
0x13a4   :  { %1057 = vrot.lane.b32.xlu1 %v1056_v2, %s5812_s24 }
0x1416   :  { %v1058_v4 = vpop.permute.xlu1 %1057 }
0x1417   :  { %4702 = vmatmul.mubr.msk.f32.vlgmr.msra.gmra.mrb[8].mxu0 %vm324_vm2, %v1058_v4 }
0x1418   :  { %5108 = vmatpush3.bf16.msra.mxu0 %v6267_v61  ;;  %4719 = vmatprep.mubr.msk.f32.mxu0 %vm5809_vm0, %v5810_v1 }
0x1419   :  { %5109 = vmatprep.subr.bf16.mxu0 %v5808_v0 }
0x141c   :  { %5111 = vmatpush3.bf16.msra.mxu0 %v6277_v3 }
0x141d   :  { %5118 = vmatprep.subr.bf16.mxu0 %v5808_v0 }
0x141f   :  { %4720 = vmatmul.mubr.f32.vlgmr.msra.gmra.mrb[10].mxu0 %v5810_v1 }
0x1420   :  { %5120 = vmatpush3.bf16.msra.mxu0 %v6267_v61  ;;  %4741 = vmatprep.mubr.msk.f32.mxu0 %vm5809_vm0, %v5810_v1 }
0x1421   :  { %5121 = vmatprep.subr.bf16.mxu0 %v5808_v0 }
0x1424   :  { %5123 = vmatpush3.bf16.msra.mxu0 %v6277_v3 }
0x1425   :  { %5130 = vmatprep.subr.bf16.mxu0 %v5808_v0 }
0x14ea   :  { %v6297_v13 = vpop.f32.mrb[8].mxu0 }
0x14eb   :  { %v4703_v14 = vpop.f32.mrb[9].mxu0 }
0x14f2   :  { %v1322_v18 = vpop.f32.mrb[10].mxu0 }
0x14f3   :  { %v1323_v5 = vadd.f32 %v6299_v17, %v1322_v18  ;;  %v4721_v19 = vpop.f32.mrb[11].mxu0 }
0x14f5   :  { %v1327_v20 = vrot.slane %v1323_v5, 2 }
0x14f7   :  { %1336 = vrot.lane.b32.xlu0 %v1327_v20, %s5811_s28  ;;  %v1329_v23 = vadd.f32 %v1327_v20, %v6303_v22 }
0x14f9   :  { %v4343_v11 = vmul.f32 -1.442695, %v1329_v23 }
0x14fb   :  { %5364 = vpow2.f32 %v4343_v11 }
0x1505   :  { %v5365_v25 = vpop.eup %5364 }
0x1506   :  { %v1333_v26 = vadd.f32 1.0, %v5365_v25 }
0x1508   :  { %5366 = vrcp.f32 %v1333_v26 }
0x1512   :  { %v5367_v27 = vpop.eup %5366 }
0x1513   :  { %v1346_v34 = vsub.f32 1.0, %v5367_v27  ;;  %v1352_v36 = vmul.f32 0.0, %v5367_v27 }
0x1569   :  { %v1337_v28 = vpop.permute.xlu0 %1336 }
0x156a   :  { %v1339_v29 = vmul.f32 %v5367_v27, %v1337_v28 }
0x156c   :  { %1341 = vrot.lane.b32.xlu1 %v1339_v29, %s5811_s28 }
0x15de   :  { %v1342_v30 = vpop.permute.xlu1 %1341 }
0x15df   :  { %v1344_v31 = vadd.f32 %v1342_v30, %v6303_v22 }
0x15e1   :  { %5368 = vtanh.f32 %v1344_v31 }
0x15eb   :  { %v5369_v33 = vpop.eup %5368 }
0x15ec   :  { %1348 = vrot.lane.b32.xlu0 %v5369_v33, %s5812_s24 }
0x165e   :  { %v1349_v35 = vpop.permute.xlu0 %1348 }
0x165f   :  { %v1351_v38 = vmul.f32 %v1349_v35, %v1346_v34 }
0x1661   :  { %v6309_v39 = vadd.f32 %v1352_v36, %v1351_v38 }
0x1663   :  { %v1355_v40 = vrot.slane %v6309_v39, 6  ;;  %v1456_v56 = vrot.slane %v6309_v39, 2 }
0x1665   :  { %1356 = vrot.lane.b32.xlu1 %v1355_v40, %s5812_s24 }
0x16d7   :  { %v1357_v41 = vpop.permute.xlu1 %1356 }
0x16d8   :  { %4731 = vmatmul.mubr.msk.f32.vlgmr.msra.gmra.mrb[10].mxu1 %vm324_vm2, %v1357_v41 }
0x16d9   :  { %5126 = vmatpush3.bf16.msra.mxu1 %v6267_v61  ;;  %4752 = vmatprep.mubr.msk.f32.mxu1 %vm5809_vm0, %v5810_v1 }
0x16da   :  { %5127 = vmatprep.subr.bf16.mxu1 %v5808_v0 }
0x16dd   :  { %5129 = vmatpush3.bf16.msra.mxu1 %v6277_v3 }
0x16de   :  { %5136 = vmatprep.subr.bf16.mxu1 %v5808_v0 }
0x17ab   :  { %v1426_v42 = vpop.f32.mrb[10].mxu1 }
0x17ac   :  { %v1427_v43 = vadd.f32 %v6299_v17, %v1426_v42  ;;  %v4732_v44 = vpop.f32.mrb[11].mxu1 }
0x17ae   :  { %v1431_v45 = vrot.slane %v1427_v43, 4 }
0x17b0   :  { %1440 = vrot.lane.b32.xlu0 %v1431_v45, %s5811_s28  ;;  %v1433_v46 = vadd.f32 %v1431_v45, %v6303_v22 }
0x17b2   :  { %v4345_v10 = vmul.f32 -1.442695, %v1433_v46 }
0x17b4   :  { %5370 = vpow2.f32 %v4345_v10 }
0x17be   :  { %v5371_v48 = vpop.eup %5370 }
0x17bf   :  { %v1437_v49 = vadd.f32 1.0, %v5371_v48 }
0x17c1   :  { %5372 = vrcp.f32 %v1437_v49 }
0x17cb   :  { %v5373_v21 = vpop.eup %5372 }
0x17cc   :  { %v1450_v55 = vsub.f32 1.0, %v5373_v21  ;;  %v1458_v59 = vmul.f32 %v5373_v21, %v1456_v56 }
0x1822   :  { %v1441_v50 = vpop.permute.xlu0 %1440 }
0x1823   :  { %v1443_v51 = vmul.f32 %v5373_v21, %v1441_v50 }
0x1825   :  { %1445 = vrot.lane.b32.xlu1 %v1443_v51, %s5811_s28 }
0x1897   :  { %v1446_v52 = vpop.permute.xlu1 %1445 }
0x1898   :  { %v1448_v53 = vadd.f32 %v1446_v52, %v6303_v22 }
0x189a   :  { %5374 = vtanh.f32 %v1448_v53 }
0x18a4   :  { %v5375_v54 = vpop.eup %5374 }
0x18a5   :  { %1452 = vrot.lane.b32.xlu0 %v5375_v54, %s5812_s24 }
0x1917   :  { %v1453_v58 = vpop.permute.xlu0 %1452 }
0x1918   :  { %v1455_v62 = vmul.f32 %v1453_v58, %v1450_v55 }
0x191a   :  { %v6327_v63 = vadd.f32 %v1458_v59, %v1455_v62 }
0x191c   :  { %v1461_v2 = vrot.slane %v6327_v63, 4  ;;  %v1562_v30 = vrot.slane %v6327_v63, 2 }
0x191e   :  { %1462 = vrot.lane.b32.xlu1 %v1461_v2, %s5812_s24 }
0x1990   :  { %v1463_v4 = vpop.permute.xlu1 %1462 }
0x1991   :  { %4742 = vmatmul.mubr.msk.f32.vlgmr.msra.gmra.mrb[12].mxu0 %vm324_vm2, %v1463_v4 }
0x1992   :  { %5132 = vmatpush3.bf16.msra.mxu0 %v6267_v61  ;;  %4763 = vmatprep.mubr.msk.f32.mxu0 %vm5809_vm0, %v5810_v1 }
0x1993   :  { %5133 = vmatprep.subr.bf16.mxu0 %v5808_v0 }
0x1996   :  { %5135 = vmatpush3.bf16.msra.mxu0 %v6277_v3 }
0x1997   :  { %5142 = vmatprep.subr.bf16.mxu0 %v5808_v0 }
0x1a64   :  { %v1532_v12 = vpop.f32.mrb[12].mxu0 }
0x1a65   :  { %v1533_v6 = vadd.f32 %v6299_v17, %v1532_v12  ;;  %v4743_v8 = vpop.f32.mrb[13].mxu0 }
0x1a67   :  { %v1537_v14 = vrot.slane %v1533_v6, 6 }
0x1a69   :  { %1546 = vrot.lane.b32.xlu0 %v1537_v14, %s5811_s28  ;;  %v1539_v18 = vadd.f32 %v1537_v14, %v6303_v22 }
0x1a6b   :  { %v4347_v5 = vmul.f32 -1.442695, %v1539_v18 }
0x1a6d   :  { %5376 = vpow2.f32 %v4347_v5 }
0x1a77   :  { %v5377_v19 = vpop.eup %5376 }
0x1a78   :  { %v1543_v20 = vadd.f32 1.0, %v5377_v19 }
0x1a7a   :  { %5378 = vrcp.f32 %v1543_v20 }
0x1a84   :  { %v5379_v23 = vpop.eup %5378 }
0x1a85   :  { %v1556_v29 = vsub.f32 1.0, %v5379_v23  ;;  %v1564_v33 = vmul.f32 %v5379_v23, %v1562_v30 }
0x1adb   :  { %v1547_v11 = vpop.permute.xlu0 %1546 }
0x1adc   :  { %v1549_v25 = vmul.f32 %v5379_v23, %v1547_v11 }
0x1ade   :  { %1551 = vrot.lane.b32.xlu1 %v1549_v25, %s5811_s28 }
0x1b50   :  { %v1552_v26 = vpop.permute.xlu1 %1551 }
0x1b51   :  { %v1554_v27 = vadd.f32 %v1552_v26, %v6303_v22 }
0x1b53   :  { %5380 = vtanh.f32 %v1554_v27 }
0x1b5d   :  { %v5381_v28 = vpop.eup %5380 }
0x1b5e   :  { %1558 = vrot.lane.b32.xlu0 %v5381_v28, %s5812_s24 }
0x1bd0   :  { %v1559_v31 = vpop.permute.xlu0 %1558 }
0x1bd1   :  { %v1561_v34 = vmul.f32 %v1559_v31, %v1556_v29 }
0x1bd3   :  { %v6345_v35 = vadd.f32 %v1564_v33, %v1561_v34 }
0x1bd5   :  { %v1567_v36 = vrot.slane %v6345_v35, 2 }
0x1bd7   :  { %1568 = vrot.lane.b32.xlu1 %v1567_v36, %s5812_s24 }
0x1c49   :  { %v1569_v38 = vpop.permute.xlu1 %1568 }
0x1c4a   :  { %4753 = vmatmul.mubr.msk.f32.vlgmr.msra.gmra.mrb[12].mxu1 %vm324_vm2, %v1569_v38 }
0x1c4b   :  { %5138 = vmatpush3.bf16.msra.mxu1 %v6267_v61  ;;  %4774 = vmatprep.mubr.msk.f32.mxu1 %vm5809_vm0, %v5810_v1 }
0x1c4c   :  { %5139 = vmatprep.subr.bf16.mxu1 %v5808_v0 }
0x1c4f   :  { %5141 = vmatpush3.bf16.msra.mxu1 %v6277_v3 }
0x1c50   :  { %5148 = vmatprep.subr.bf16.mxu1 %v5808_v0 }
0x1d1d   :  { %v1638_v40 = vpop.f32.mrb[12].mxu1 }
0x1d1e   :  { %v1639_v41 = vadd.f32 %v6299_v17, %v1638_v40  ;;  %v4754_v42 = vpop.f32.mrb[13].mxu1 }
0x1d20   :  { %1650 = vrot.lane.b32.xlu0 %v1639_v41, %s5811_s28  ;;  %v1642_v43 = vadd.f32 %v1639_v41, %v6303_v22 }
0x1d22   :  { %v4349_v44 = vmul.f32 -1.442695, %v1642_v43 }
0x1d24   :  { %5382 = vpow2.f32 %v4349_v44 }
0x1d2e   :  { %v5383_v45 = vpop.eup %5382 }
0x1d2f   :  { %v1646_v46 = vadd.f32 1.0, %v5383_v45 }
0x1d31   :  { %5384 = vrcp.f32 %v1646_v46 }
0x1d3b   :  { %v5385_v10 = vpop.eup %5384 }
0x1d3c   :  { %v1660_v52 = vsub.f32 1.0, %v5385_v10  ;;  %v1667_v54 = vmul.f32 %v5385_v10, %v1567_v36 }
0x1d92   :  { %v1651_v48 = vpop.permute.xlu0 %1650 }
0x1d93   :  { %v1653_v49 = vmul.f32 %v5385_v10, %v1651_v48 }
0x1d95   :  { %1655 = vrot.lane.b32.xlu1 %v1653_v49, %s5811_s28 }
0x1e07   :  { %v1656_v21 = vpop.permute.xlu1 %1655 }
0x1e08   :  { %v1658_v50 = vadd.f32 %v1656_v21, %v6303_v22 }
0x1e0a   :  { %5386 = vtanh.f32 %v1658_v50 }
0x1e14   :  { %v5387_v51 = vpop.eup %5386 }
0x1e15   :  { %1662 = vrot.lane.b32.xlu0 %v5387_v51, %s5812_s24 }
0x1e87   :  { %v1663_v53 = vpop.permute.xlu0 %1662 }
0x1e88   :  { %v1665_v55 = vmul.f32 %v1663_v53, %v1660_v52 }
0x1e8a   :  { %v6362_v56 = vadd.f32 %v1667_v54, %v1665_v55 }
0x1e8c   :  { %1670 = vrot.lane.b32.xlu1 %v6362_v56, %s5812_s24  ;;  %v1770_v25 = vrot.slane %v6362_v56, 2 }
0x1efe   :  { %v1671_v58 = vpop.permute.xlu1 %1670 }
0x1eff   :  { %4764 = vmatmul.mubr.msk.f32.vlgmr.msra.gmra.mrb[14].mxu0 %vm324_vm2, %v1671_v58 }
0x1f00   :  { %5144 = vmatpush3.bf16.msra.mxu0 %v6267_v61  ;;  %4785 = vmatprep.mubr.msk.f32.mxu0 %vm5809_vm0, %v5810_v1 }
0x1f01   :  { %5145 = vmatprep.subr.bf16.mxu0 %v5808_v0 }
0x1f04   :  { %5147 = vmatpush3.bf16.msra.mxu0 %v6277_v3 }
0x1fd2   :  { %v1740_v22 = vpop.f32.mrb[14].mxu0 }
0x1fd3   :  { %v1741_v59 = vadd.f32 %v6299_v17, %v1740_v22  ;;  %v4765_v62 = vpop.f32.mrb[15].mxu0 }
0x1fd5   :  { %v1745_v2 = vrot.slane %v1741_v59, 2 }
0x1fd7   :  { %1754 = vrot.lane.b32.xlu0 %v1745_v2, %s5811_s28  ;;  %v1747_v4 = vadd.f32 %v1745_v2, %v6295_v9 }
0x1fd9   :  { %v4351_v12 = vmul.f32 -1.442695, %v1747_v4 }
0x1fdb   :  { %5388 = vpow2.f32 %v4351_v12 }
0x1fe5   :  { %v5389_v6 = vpop.eup %5388 }
0x1fe6   :  { %v1751_v8 = vadd.f32 1.0, %v5389_v6 }
0x1fe8   :  { %5390 = vrcp.f32 %v1751_v8 }
0x1ff2   :  { %v5391_v14 = vpop.eup %5390 }
0x1ff3   :  { %v1764_v11 = vsub.f32 1.0, %v5391_v14  ;;  %v1772_v27 = vmul.f32 %v5391_v14, %v1770_v25 }
0x2049   :  { %v1755_v18 = vpop.permute.xlu0 %1754 }
0x204a   :  { %v1757_v5 = vmul.f32 %v5391_v14, %v1755_v18 }
0x204c   :  { %1759 = vrot.lane.b32.xlu1 %v1757_v5, %s5811_s28 }
0x20be   :  { %v1760_v19 = vpop.permute.xlu1 %1759 }
0x20bf   :  { %v1762_v20 = vadd.f32 %v1760_v19, %v6295_v9  ;;  %v1128_v19 = vadd.f32 %v6152_v15, %v6297_v13 }
0x20c1   :  { %5392 = vtanh.f32 %v1762_v20 }
0x20cb   :  { %v5393_v23 = vpop.eup %5392 }
0x20cc   :  { %1766 = vrot.lane.b32.xlu0 %v5393_v23, %s5812_s24  ;;  %v1132_v23 = vrot.slane %v1128_v19, 2 }
0x213e   :  { %v1767_v26 = vpop.permute.xlu0 %1766 }
0x213f   :  { %v1769_v28 = vmul.f32 %v1767_v26, %v1764_v11  ;;  %v1134_v11 = vadd.f32 %v1132_v23, %v6154_v16 }
0x2141   :  { %v6379_v29 = vadd.f32 %v1772_v27, %v1769_v28  ;;  %v4338_v25 = vmul.f32 -1.442695, %v1134_v11 }
0x2143   :  { %v1775_v30 = vrot.slane %v6379_v29, 6  ;;  %v1876_v49 = vrot.slane %v6379_v29, 2 }
0x2145   :  { %1776 = vrot.lane.b32.xlu1 %v1775_v30, %s5812_s24 }
0x21b7   :  { %v1777_v31 = vpop.permute.xlu1 %1776 }
0x21b8   :  { %4775 = vmatmul.mubr.msk.f32.vlgmr.msra.gmra.mrb[14].mxu1 %vm324_vm2, %v1777_v31 }
0x21b9   :  { %5150 = vmatpush3.bf16.msra.mxu1 %v6267_v61  ;;  %4796 = vmatprep.mubr.msk.f32.mxu1 %vm5809_vm0, %v5810_v1 }
0x21ba   :  { %5151 = vmatprep.subr.bf16.mxu1 %v5808_v0 }
0x21bd   :  { %5153 = vmatpush3.bf16.msra.mxu1 %v6277_v3 }
0x21be   :  { %5170 = vmatprep.subr.bf16.mxu1 %v5808_v0 }
0x228b   :  { %v1846_v33 = vpop.f32.mrb[14].mxu1 }
0x228c   :  { %v1847_v34 = vadd.f32 %v6299_v17, %v1846_v33  ;;  %v4776_v36 = vpop.f32.mrb[15].mxu1 }
0x228e   :  { %v1851_v38 = vrot.slane %v1847_v34, 4 }
0x2290   :  { %1860 = vrot.lane.b32.xlu0 %v1851_v38, %s5811_s28  ;;  %v1853_v40 = vadd.f32 %v1851_v38, %v6295_v9 }
0x2292   :  { %v4353_v41 = vmul.f32 -1.442695, %v1853_v40 }
0x2294   :  { %5394 = vpow2.f32 %v4353_v41 }
0x229e   :  { %v5395_v61 = vpop.eup %5394 }
0x229f   :  { %v1857_v42 = vadd.f32 1.0, %v5395_v61 }
0x22a1   :  { %5396 = vrcp.f32 %v1857_v42 }
0x22ab   :  { %v5397_v43 = vpop.eup %5396 }
0x22ac   :  { %v1870_v48 = vsub.f32 1.0, %v5397_v43  ;;  %v1878_v50 = vmul.f32 %v5397_v43, %v1876_v49 }
0x2302   :  { %v1861_v44 = vpop.permute.xlu0 %1860 }
0x2303   :  { %v1863_v45 = vmul.f32 %v5397_v43, %v1861_v44 }
0x2305   :  { %1865 = vrot.lane.b32.xlu1 %v1863_v45, %s5811_s28 }
0x2377   :  { %v1866_v3 = vpop.permute.xlu1 %1865 }
0x2378   :  { %v1868_v46 = vadd.f32 %v1866_v3, %v6295_v9 }
0x237a   :  { %5398 = vtanh.f32 %v1868_v46 }
0x2384   :  { %v5399_v10 = vpop.eup %5398 }
0x2385   :  { %1872 = vrot.lane.b32.xlu0 %v5399_v10, %s5812_s24 }
0x23f7   :  { %v1873_v21 = vpop.permute.xlu0 %1872 }
0x23f8   :  { %v1875_v51 = vmul.f32 %v1873_v21, %v1870_v48  ;;  %v2136_v21 = vld [vmem:[%s6898_s10 + $0x8] sm:$0xff] }
0x23fa   :  { %v6397_v52 = vadd.f32 %v1878_v50, %v1875_v51  ;;  %v2137_v50 = vld [vmem:[%s6898_s10 + $0x10] sm:$0xff] }
0x23fc   :  { %v1881_v53 = vrot.slane %v6397_v52, 4  ;;  %v1982_v30 = vrot.slane %v6397_v52, 2 }
0x23fe   :  { %1882 = vrot.lane.b32.xlu1 %v1881_v53, %s5812_s24  ;;  %v2138_v53 = vld [vmem:[%s6898_s10 + $0x18] sm:$0xff] }
0x2470   :  { %v1883_v54 = vpop.permute.xlu1 %1882 }
0x2471   :  { %4786 = vmatmul.mubr.msk.f32.vlgmr.msra.gmra.mrb[16].mxu0 %vm324_vm2, %v1883_v54  ;;  %v2128_v54 = vld [vmem:[%s6951_s27 + $0x8] sm:$0xff] }
0x2544   :  { %v1952_v55 = vpop.f32.mrb[16].mxu0 }
0x2545   :  { %v1953_v58 = vadd.f32 %v6299_v17, %v1952_v55  ;;  %v4787_v22 = vpop.f32.mrb[17].mxu0 }
0x2546   :  { %v2130_v22 = vld [vmem:[%s6951_s27 + $0x18] sm:$0xff] }
0x2547   :  { %v1957_v59 = vrot.slane %v1953_v58, 6  ;;  %v2129_v58 = vld [vmem:[%s6951_s27 + $0x10] sm:$0xff] }
0x2549   :  { %1966 = vrot.lane.b32.xlu0 %v1957_v59, %s5811_s28  ;;  %v1959_v62 = vadd.f32 %v1957_v59, %v6295_v9  ;;  %v6470_v59 = vpack.c.bf16 %v2138_v53, %v2137_v50 }
0x254b   :  { %v4355_v2 = vmul.f32 -1.442695, %v1959_v62  ;;  %v5158_v62 = vpack.c.bf16 %v2130_v22, %v2129_v58 }
0x254d   :  { %5400 = vpow2.f32 %v4355_v2 }
0x2557   :  { %v5401_v4 = vpop.eup %5400 }
0x2558   :  { %v1963_v12 = vadd.f32 1.0, %v5401_v4  ;;  %v2131_v4 = vld [vmem:[%s6951_s27 + $0x20] sm:$0xff] }
0x255a   :  { %5402 = vrcp.f32 %v1963_v12  ;;  %v2132_v12 = vld [vmem:[%s6951_s27 + $0x28] sm:$0xff] }
0x2564   :  { %v5403_v6 = vpop.eup %5402 }
0x2565   :  { %v1976_v28 = vsub.f32 1.0, %v5403_v6  ;;  %v1984_v33 = vmul.f32 %v5403_v6, %v1982_v30 }
0x25bb   :  { %v1967_v8 = vpop.permute.xlu0 %1966 }
0x25bc   :  { %v1969_v14 = vmul.f32 %v5403_v6, %v1967_v8  ;;  %v5162_v8 = vpack.c.bf16 %v2132_v12, %v2131_v4 }
0x25be   :  { %1971 = vrot.lane.b32.xlu1 %v1969_v14, %s5811_s28  ;;  %v2133_v14 = vld [vmem:[%s6951_s27 + $0x30] sm:$0xff] }
0x2630   :  { %v1972_v18 = vpop.permute.xlu1 %1971 }
0x2631   :  { %v1974_v5 = vadd.f32 %v1972_v18, %v6295_v9  ;;  %v2134_v18 = vld [vmem:[%s6951_s27 + $0x38] sm:$0xff] }
0x2633   :  { %5404 = vtanh.f32 %v1974_v5  ;;  %v5166_v5 = vpack.c.bf16 %v2134_v18, %v2133_v14 }
0x2634   :  { %5406 = vpow2.f32 %v4338_v25 }
0x263d   :  { %v5405_v20 = vpop.eup %5404 }
0x263e   :  { %1978 = vrot.lane.b32.xlu0 %v5405_v20, %s5812_s24  ;;  %v5407_v26 = vpop.eup %5406 }
0x263f   :  { %v1138_v27 = vadd.f32 1.0, %v5407_v26 }
0x2641   :  { %5408 = vrcp.f32 %v1138_v27  ;;  %v6503_v27 = vld [vmem:[#allocation17] ss:$0 sm:$0xff] }
0x2642   :  { %1141 = vrot.lane.b32.xlu0 %v1132_v23, %s5811_s28  ;;  %v1157_v23 = vrot.slane %v6265_v60, 6 }
0x264b   :  { %v6415_v13 = vpop.eup %5408 }
0x264c   :  { %v1159_v25 = vmul.f32 %v6415_v13, %v1157_v23 }
0x26b0   :  { %v1979_v31 = vpop.permute.xlu0 %1978 }
0x26b1   :  { %v1981_v34 = vmul.f32 %v1979_v31, %v1976_v28 }
0x26b3   :  { %v6413_v15 = vadd.f32 %v1984_v33, %v1981_v34 }
0x26b4   :  { %v1142_v36 = vpop.permute.xlu0 %1141 }
0x26b5   :  { %v1144_v38 = vmul.f32 %v6415_v13, %v1142_v36  ;;  %v1987_v40 = vrot.slane %v6413_v15, 2 }
0x26b7   :  { %1988 = vrot.lane.b32.xlu1 %v1987_v40, %s5812_s24  ;;  %1146 = vrot.lane.b32.xlu0 %v1144_v38, %s5811_s28 }
0x2729   :  { %v1989_v41 = vpop.permute.xlu1 %1988  ;;  %v1147_v61 = vpop.permute.xlu0 %1146 }
0x272a   :  { %v1149_v42 = vadd.f32 %v1147_v61, %v6154_v16  ;;  %4797 = vmatmul.mubr.msk.f32.vlgmr.msra.gmra.mrb[16].mxu1 %vm324_vm2, %v1989_v41 }
0x272b   :  { %4826 = vmatprep.mubr.msk.f32.mxu1 %vm5809_vm0, %v5810_v1 }
0x272c   :  { %5410 = vtanh.f32 %v1149_v42 }
0x2736   :  { %v5411_v43 = vpop.eup %5410 }
0x2737   :  { %1153 = vrot.lane.b32.xlu0 %v5411_v43, %s5812_s24 }
0x273b   :  { %2091 = vrot.lane.b32.xlu0 %v6181_v57, %s5812_s24 }
0x273f   :  { %2105 = vrot.lane.b32.xlu0 %v6250_v32, %s5812_s24 }
0x2743   :  { %2109 = vrot.lane.b32.xlu0 %v6265_v60, %s5812_s24 }
0x27a9   :  { %v1154_v20 = vpop.permute.xlu0 %1153 }
0x27ad   :  { %v2092_v33 = vpop.permute.xlu0 %2091 }
0x27ae   :  { %v2094_v43 = vsel %vm324_vm2, %v2092_v33, %v6413_v15 }
0x27b1   :  { %v2106_v60 = vpop.permute.xlu0 %2105 }
0x27b5   :  { %v2110_v41 = vpop.permute.xlu0 %2109 }
0x27fd   :  { %v2058_v44 = vpop.f32.mrb[16].mxu1 }
0x27fe   :  { %v2059_v16 = vadd.f32 %v6299_v17, %v2058_v44  ;;  %v4798_v45 = vpop.f32.mrb[17].mxu1  ;;  %v2135_v17 = vld [vmem:[%s6898_s10] sm:$0xff]  ;;  %v2108_v44 = vsel %vm324_vm2, %v2106_v60, %v6345_v35 }
0x27ff   :  { %v6452_v51 = vpack.c.bf16 %v2136_v21, %v2135_v17  ;;  %v2112_v45 = vsel %vm324_vm2, %v2110_v41, %v6327_v63 }
0x2800   :  { %2070 = vrot.lane.b32.xlu1 %v2059_v16, %s5811_s28  ;;  %v2062_v3 = vadd.f32 %v2059_v16, %v6295_v9 }
0x2801   :  { %5172 = vmatpush3.bf16.msra.mxu1 %v6452_v51 }
0x2802   :  { %v4357_v46 = vmul.f32 -1.442695, %v2062_v3  ;;  %5173 = vmatprep.subr.bf16.mxu1 %v5808_v0 }
0x2804   :  { %5412 = vpow2.f32 %v4357_v46  ;;  %v2104_v46 = vsel %vm324_vm2, %v6234_v7, %v6362_v56  ;;  %v4358_v7 = vld [vmem:[#allocation16] ss:$0 sm:$0xff] }
0x2805   :  { %5175 = vmatpush3.bf16.msra.mxu1 %v6470_v59 }
0x2806   :  { %5176 = vmatprep.subr.bf16.mxu1 %v5808_v0 }
0x2808   :  { %4827 = vmatmul.mubr.f32.vlgmr.msra.gmra.mrb[18].mxu1 %v5810_v1 }
0x2809   :  { %5178 = vmatpush3.bf16.msra.mxu1 %v6452_v51  ;;  %4837 = vmatprep.mubr.msk.f32.mxu1 %vm5809_vm0, %v5810_v1 }
0x280a   :  { %5179 = vmatprep.subr.bf16.mxu1 %v5808_v0 }
0x280d   :  { %5181 = vmatpush3.bf16.msra.mxu1 %v6470_v59 }
0x280e   :  { %v5413_v10 = vpop.eup %5412  ;;  %5188 = vmatprep.subr.bf16.mxu1 %v5808_v0 }
0x280f   :  { %v2066_v48 = vadd.f32 1.0, %v5413_v10  ;;  %v2124_v10 = vsel %vm2118_vm3, %v2104_v46, %v2108_v44 }
0x2810   :  { %v2125_v63 = vsel %vm2120_vm4, %v2124_v10, %v2112_v45 }
0x2811   :  { %5414 = vrcp.f32 %v2066_v48 }
0x281b   :  { %v6437_v57 = vpop.eup %5414 }
0x281c   :  { %v2080_v36 = vsub.f32 1.0, %v6437_v57 }
0x2872   :  { %v2071_v49 = vpop.permute.xlu1 %2070 }
0x2873   :  { %v2073_v32 = vmul.f32 %v6437_v57, %v2071_v49 }
0x2875   :  { %2075 = vrot.lane.b32.xlu1 %v2073_v32, %s5811_s28 }
0x2879   :  { %2095 = vrot.lane.b32.xlu1 %v6199_v24, %s5812_s24  ;;  %v2127_v24 = vld [vmem:[%s6951_s27] sm:$0xff] }
0x287a   :  { %v5154_v55 = vpack.c.bf16 %v2128_v54, %v2127_v24 }
0x287c   :  { %5155 = vmatprep.subr.bf16.mxu0 %v5154_v55 }
0x287d   :  { %5157 = vmatpush3.bf16.msra.mxu0 %v5154_v55 }
0x287e   :  { %5159 = vmatprep.subr.bf16.mxu0 %v5158_v62 }
0x2881   :  { %5161 = vmatpush3.bf16.msra.mxu0 %v5158_v62 }
0x2882   :  { %5163 = vmatprep.subr.bf16.mxu0 %v5162_v8 }
0x2885   :  { %5165 = vmatpush3.bf16.msra.mxu0 %v5162_v8 }
0x2886   :  { %5167 = vmatprep.subr.bf16.mxu0 %v5166_v5 }
0x2889   :  { %5169 = vmatpush3.bf16.msra.mxu0 %v5166_v5 }
0x288a   :  { %5182 = vmatprep.subr.bf16.mxu0 %v5808_v0 }
0x28db   :  { %v2301_v28 = vpop.f32.mrb[18].mxu1 }
0x28dc   :  { %v2302_v30 = vadd.f32 %v6503_v27, %v2301_v28  ;;  %v4828_v31 = vpop.f32.mrb[19].mxu1 }
0x28de   :  { %2313 = vrot.lane.b32.xlu0 %v2302_v30, %s5811_s28 }
0x28e7   :  { %v2076_v2 = vpop.permute.xlu1 %2075 }
0x28e8   :  { %v2078_v6 = vadd.f32 %v2076_v2, %v6295_v9  ;;  %v1151_v9 = vsub.f32 1.0, %v6415_v13 }
0x28ea   :  { %5416 = vtanh.f32 %v2078_v6  ;;  %v1156_v11 = vmul.f32 %v1154_v20, %v1151_v9 }
0x28eb   :  { %v2096_v34 = vpop.permute.xlu1 %2095 }
0x28ec   :  { %v1160_v26 = vadd.f32 %v1159_v25, %v1156_v11 }
0x28f4   :  { %v5417_v19 = vpop.eup %5416 }
0x28f5   :  { %2082 = vrot.lane.b32.xlu1 %v5417_v19, %s5812_s24 }
0x28f9   :  { %2099 = vrot.lane.b32.xlu1 %v6217_v47, %s5812_s24  ;;  %v2087_v47 = vmul.f32 %v6437_v57, %v1987_v40  ;;  %v2098_v40 = vsel %vm324_vm2, %v2096_v34, %v6397_v52 }
0x28fd   :  { %2114 = vrot.lane.b32.xlu1 %v1160_v26, %s5812_s24 }
0x2950   :  { %v2314_v53 = vpop.permute.xlu0 %2313 }
0x2967   :  { %v2083_v13 = vpop.permute.xlu1 %2082 }
0x2968   :  { %v2085_v38 = vmul.f32 %v2083_v13, %v2080_v36 }
0x296a   :  { %v2088_v61 = vadd.f32 %v2087_v47, %v2085_v38 }
0x296b   :  { %v2100_v42 = vpop.permute.xlu1 %2099 }
0x296c   :  { %v2090_v16 = vsel %vm324_vm2, %v6165_v37, %v2088_v61  ;;  %v2102_v15 = vsel %vm324_vm2, %v2100_v42, %v6379_v29 }
0x296d   :  { %v2119_v3 = vsel %vm2118_vm3, %v2090_v16, %v2094_v43 }
0x296e   :  { %v2121_v35 = vsel %vm2120_vm4, %v2119_v3, %v2098_v40 }
0x296f   :  { %v2115_v37 = vpop.permute.xlu1 %2114  ;;  %v6527_v48 = vsel %vm2122_vm5, %v2121_v35, %v2102_v15 }
0x2970   :  { %v2117_v52 = vsel %vm324_vm2, %v2115_v37, %v6309_v39  ;;  %4815 = vmatprep.mubr.msk.f32.mxu0 %vm2147_vm6, %v6527_v48 }
0x2971   :  { %v6534_v57 = vsel %vm2122_vm5, %v2125_v63, %v2117_v52 }
0x2972   :  { %4816 = vmatmul.mubr.msk.f32.vlgmr.msra.gmra.mrb[18].mxu0 %vm2147_vm6, %v6534_v57 }
0x2973   :  { %5184 = vmatpush3.bf16.msra.mxu0 %v6452_v51  ;;  %4848 = vmatprep.mubr.msk.f32.mxu0 %vm5809_vm0, %v5810_v1 }
0x2974   :  { %5185 = vmatprep.subr.bf16.mxu0 %v5808_v0 }
0x2977   :  { %5187 = vmatpush3.bf16.msra.mxu0 %v6470_v59 }
0x2978   :  { %5194 = vmatprep.subr.bf16.mxu0 %v5808_v0 }
0x2a45   :  { %v4817_v39 = vpop.f32.mrb[18].mxu0 }
0x2a46   :  { %v6544_v56 = vadd.f32 %v4817_v39, %v4358_v7  ;;  %v2220_v29 = vpop.f32.mrb[19].mxu0 }
0x2a47   :  { %v6546_v49 = vadd.f32 %v4358_v7, %v2220_v29 }
0x2a49   :  { %v2305_v32 = vadd.f32 %v2302_v30, %v6546_v49 }
0x2a4b   :  { %v4362_v17 = vmul.f32 -1.442695, %v2305_v32 }
0x2a4d   :  { %5418 = vpow2.f32 %v4362_v17 }
0x2a57   :  { %v5419_v21 = vpop.eup %5418 }
0x2a58   :  { %v2309_v50 = vadd.f32 1.0, %v5419_v21 }
0x2a5a   :  { %5420 = vrcp.f32 %v2309_v50 }
0x2a64   :  { %v5421_v24 = vpop.eup %5420 }
0x2a65   :  { %v2316_v54 = vmul.f32 %v5421_v24, %v2314_v53  ;;  %v2323_v62 = vsub.f32 1.0, %v5421_v24  ;;  %v2329_v4 = vmul.f32 0.0, %v5421_v24 }
0x2a67   :  { %2318 = vrot.lane.b32.xlu1 %v2316_v54, %s5811_s28 }
0x2ad9   :  { %v2319_v55 = vpop.permute.xlu1 %2318 }
0x2ada   :  { %v2321_v58 = vadd.f32 %v2319_v55, %v6546_v49 }
0x2adc   :  { %5422 = vtanh.f32 %v2321_v58 }
0x2ae6   :  { %v5423_v22 = vpop.eup %5422 }
0x2ae7   :  { %2325 = vrot.lane.b32.xlu0 %v5423_v22, %s5812_s24 }
0x2b59   :  { %v2326_v2 = vpop.permute.xlu0 %2325 }
0x2b5a   :  { %v2328_v12 = vmul.f32 %v2326_v2, %v2323_v62 }
0x2b5c   :  { %v2330_v6 = vadd.f32 %v2329_v4, %v2328_v12 }
0x2b5e   :  { %2332 = vrot.lane.b32.xlu1 %v2330_v6, %s5812_s24  ;;  %v2432_v34 = vrot.slane %v2330_v6, 6 }
0x2bd0   :  { %v2333_v8 = vpop.permute.xlu1 %2332 }
0x2bd1   :  { %4838 = vmatmul.mubr.msk.f32.vlgmr.msra.gmra.mrb[20].mxu1 %vm324_vm2, %v2333_v8 }
0x2bd2   :  { %5190 = vmatpush3.bf16.msra.mxu1 %v6452_v51  ;;  %4859 = vmatprep.mubr.msk.f32.mxu1 %vm5809_vm0, %v5810_v1 }
0x2bd3   :  { %5191 = vmatprep.subr.bf16.mxu1 %v5808_v0 }
0x2bd6   :  { %5193 = vmatpush3.bf16.msra.mxu1 %v6470_v59 }
0x2bd7   :  { %5200 = vmatprep.subr.bf16.mxu1 %v5808_v0 }
0x2ca4   :  { %v2402_v14 = vpop.f32.mrb[20].mxu1 }
0x2ca5   :  { %v2403_v18 = vadd.f32 %v6503_v27, %v2402_v14  ;;  %v4839_v5 = vpop.f32.mrb[21].mxu1 }
0x2ca7   :  { %v2407_v19 = vrot.slane %v2403_v18, 6 }
0x2ca9   :  { %2416 = vrot.lane.b32.xlu0 %v2407_v19, %s5811_s28  ;;  %v2409_v20 = vadd.f32 %v2407_v19, %v6546_v49 }
0x2cab   :  { %v4364_v9 = vmul.f32 -1.442695, %v2409_v20 }
0x2cad   :  { %5424 = vpow2.f32 %v4364_v9 }
0x2cb7   :  { %v5425_v23 = vpop.eup %5424 }
0x2cb8   :  { %v2413_v11 = vadd.f32 1.0, %v5425_v23 }
0x2cba   :  { %5426 = vrcp.f32 %v2413_v11 }
0x2cc4   :  { %v5427_v25 = vpop.eup %5426 }
0x2cc5   :  { %v2426_v60 = vsub.f32 1.0, %v5427_v25  ;;  %v2434_v13 = vmul.f32 %v5427_v25, %v2432_v34 }
0x2d1b   :  { %v2417_v26 = vpop.permute.xlu0 %2416 }
0x2d1c   :  { %v2419_v28 = vmul.f32 %v5427_v25, %v2417_v26 }
0x2d1e   :  { %2421 = vrot.lane.b32.xlu1 %v2419_v28, %s5811_s28 }
0x2d90   :  { %v2422_v30 = vpop.permute.xlu1 %2421 }
0x2d91   :  { %v2424_v31 = vadd.f32 %v2422_v30, %v6546_v49 }
0x2d93   :  { %5428 = vtanh.f32 %v2424_v31 }
0x2d9d   :  { %v5429_v33 = vpop.eup %5428 }
0x2d9e   :  { %2428 = vrot.lane.b32.xlu0 %v5429_v33, %s5812_s24 }
0x2e10   :  { %v2429_v36 = vpop.permute.xlu0 %2428 }
0x2e11   :  { %v2431_v47 = vmul.f32 %v2429_v36, %v2426_v60 }
0x2e13   :  { %v2435_v38 = vadd.f32 %v2434_v13, %v2431_v47 }
0x2e15   :  { %v2437_v41 = vrot.slane %v2435_v38, 2  ;;  %v2538_v7 = vrot.slane %v2435_v38, 6 }
0x2e17   :  { %2438 = vrot.lane.b32.xlu1 %v2437_v41, %s5812_s24 }
0x2e89   :  { %v2439_v61 = vpop.permute.xlu1 %2438 }
0x2e8a   :  { %4849 = vmatmul.mubr.msk.f32.vlgmr.msra.gmra.mrb[20].mxu0 %vm324_vm2, %v2439_v61 }
0x2e8b   :  { %5196 = vmatpush3.bf16.msra.mxu0 %v6452_v51  ;;  %4870 = vmatprep.mubr.msk.f32.mxu0 %vm5809_vm0, %v5810_v1 }
0x2e8c   :  { %5197 = vmatprep.subr.bf16.mxu0 %v5808_v0 }
0x2e8f   :  { %5199 = vmatpush3.bf16.msra.mxu0 %v6470_v59 }
0x2e90   :  { %5206 = vmatprep.subr.bf16.mxu0 %v5808_v0 }
0x2f5d   :  { %v2508_v42 = vpop.f32.mrb[20].mxu0 }
0x2f5e   :  { %v2509_v43 = vadd.f32 %v6503_v27, %v2508_v42  ;;  %v4850_v44 = vpop.f32.mrb[21].mxu0 }
0x2f60   :  { %v2513_v16 = vrot.slane %v2509_v43, 4 }
0x2f62   :  { %2522 = vrot.lane.b32.xlu0 %v2513_v16, %s5811_s28  ;;  %v2515_v45 = vadd.f32 %v2513_v16, %v6546_v49 }
0x2f64   :  { %v4366_v40 = vmul.f32 -1.442695, %v2515_v45 }
0x2f66   :  { %5430 = vpow2.f32 %v4366_v40 }
0x2f70   :  { %v5431_v3 = vpop.eup %5430 }
0x2f71   :  { %v2519_v46 = vadd.f32 1.0, %v5431_v3 }
0x2f73   :  { %5432 = vrcp.f32 %v2519_v46 }
0x2f7d   :  { %v5433_v15 = vpop.eup %5432 }
0x2f7e   :  { %v2532_v39 = vsub.f32 1.0, %v5433_v15  ;;  %v2540_v32 = vmul.f32 %v5433_v15, %v2538_v7 }
0x2fd4   :  { %v2523_v35 = vpop.permute.xlu0 %2522 }
0x2fd5   :  { %v2525_v10 = vmul.f32 %v5433_v15, %v2523_v35 }
0x2fd7   :  { %2527 = vrot.lane.b32.xlu1 %v2525_v10, %s5811_s28 }
0x3049   :  { %v2528_v37 = vpop.permute.xlu1 %2527 }
0x304a   :  { %v2530_v63 = vadd.f32 %v2528_v37, %v6546_v49 }
0x304c   :  { %5434 = vtanh.f32 %v2530_v63 }
0x3056   :  { %v5435_v52 = vpop.eup %5434 }
0x3057   :  { %2534 = vrot.lane.b32.xlu0 %v5435_v52, %s5812_s24 }
0x30c9   :  { %v2535_v29 = vpop.permute.xlu0 %2534 }
0x30ca   :  { %v2537_v17 = vmul.f32 %v2535_v29, %v2532_v39 }
0x30cc   :  { %v2541_v21 = vadd.f32 %v2540_v32, %v2537_v17  ;;  %v3068_v17 = vld [vmem:[%s6901_s13] sm:$0xff] }
0x30ce   :  { %v2543_v50 = vrot.slane %v2541_v21, 4  ;;  %v2644_v19 = vrot.slane %v2541_v21, 6  ;;  %v3069_v21 = vld [vmem:[%s6901_s13 + $0x8] sm:$0xff] }
0x30d0   :  { %2544 = vrot.lane.b32.xlu1 %v2543_v50, %s5812_s24  ;;  %v5218_v50 = vpack.c.bf16 %v3069_v21, %v3068_v17 }
0x3142   :  { %v2545_v53 = vpop.permute.xlu1 %2544 }
0x3143   :  { %4860 = vmatmul.mubr.msk.f32.vlgmr.msra.gmra.mrb[22].mxu1 %vm324_vm2, %v2545_v53 }
0x3144   :  { %5202 = vmatpush3.bf16.msra.mxu1 %v6452_v51  ;;  %4881 = vmatprep.mubr.msk.f32.mxu1 %vm5809_vm0, %v5810_v1 }
0x3145   :  { %5203 = vmatprep.subr.bf16.mxu1 %v5808_v0 }
0x3148   :  { %5205 = vmatpush3.bf16.msra.mxu1 %v6470_v59 }
0x3149   :  { %5212 = vmatprep.subr.bf16.mxu1 %v5808_v0 }
0x3216   :  { %v2614_v24 = vpop.f32.mrb[22].mxu1 }
0x3217   :  { %v2615_v54 = vadd.f32 %v6503_v27, %v2614_v24  ;;  %v4861_v55 = vpop.f32.mrb[23].mxu1 }
0x3219   :  { %v2619_v58 = vrot.slane %v2615_v54, 2 }
0x321b   :  { %2628 = vrot.lane.b32.xlu0 %v2619_v58, %s5811_s28  ;;  %v2621_v22 = vadd.f32 %v2619_v58, %v6546_v49 }
0x321d   :  { %v4368_v62 = vmul.f32 -1.442695, %v2621_v22 }
0x321f   :  { %5436 = vpow2.f32 %v4368_v62 }
0x3229   :  { %v5437_v2 = vpop.eup %5436 }
0x322a   :  { %v2625_v4 = vadd.f32 1.0, %v5437_v2 }
0x322c   :  { %5438 = vrcp.f32 %v2625_v4  ;;  %v3070_v4 = vld [vmem:[%s6901_s13 + $0x10] sm:$0xff] }
0x3236   :  { %v5439_v12 = vpop.eup %5438 }
0x3237   :  { %v2638_v20 = vsub.f32 1.0, %v5439_v12  ;;  %v2646_v23 = vmul.f32 %v5439_v12, %v2644_v19  ;;  %v3074_v19 = vld [vmem:[%s6901_s13 + $0x30] sm:$0xff] }
0x328d   :  { %v2629_v6 = vpop.permute.xlu0 %2628 }
0x328e   :  { %v2631_v8 = vmul.f32 %v5439_v12, %v2629_v6  ;;  %v3071_v12 = vld [vmem:[%s6901_s13 + $0x18] sm:$0xff] }
0x328f   :  { %v5222_v6 = vpack.c.bf16 %v3071_v12, %v3070_v4 }
0x3290   :  { %2633 = vrot.lane.b32.xlu1 %v2631_v8, %s5811_s28 }
0x3302   :  { %v2634_v14 = vpop.permute.xlu1 %2633 }
0x3303   :  { %v2636_v18 = vadd.f32 %v2634_v14, %v6546_v49  ;;  %v3072_v14 = vld [vmem:[%s6901_s13 + $0x20] sm:$0xff] }
0x3305   :  { %5440 = vtanh.f32 %v2636_v18  ;;  %v3073_v18 = vld [vmem:[%s6901_s13 + $0x28] sm:$0xff] }
0x330f   :  { %v5441_v5 = vpop.eup %5440 }
0x3310   :  { %2640 = vrot.lane.b32.xlu0 %v5441_v5, %s5812_s24  ;;  %v5226_v5 = vpack.c.bf16 %v3073_v18, %v3072_v14 }
0x3382   :  { %v2641_v9 = vpop.permute.xlu0 %2640 }
0x3383   :  { %v2643_v11 = vmul.f32 %v2641_v9, %v2638_v20  ;;  %v3075_v20 = vld [vmem:[%s6901_s13 + $0x38] sm:$0xff] }
0x3384   :  { %v5230_v9 = vpack.c.bf16 %v3075_v20, %v3074_v19 }
0x3385   :  { %v2647_v25 = vadd.f32 %v2646_v23, %v2643_v11 }
0x3387   :  { %v2649_v26 = vrot.slane %v2647_v25, 6 }
0x3389   :  { %2650 = vrot.lane.b32.xlu1 %v2649_v26, %s5812_s24 }
0x33fb   :  { %v2651_v28 = vpop.permute.xlu1 %2650 }
0x33fc   :  { %4871 = vmatmul.mubr.msk.f32.vlgmr.msra.gmra.mrb[22].mxu0 %vm324_vm2, %v2651_v28 }
0x33fd   :  { %5208 = vmatpush3.bf16.msra.mxu0 %v6452_v51  ;;  %4892 = vmatprep.mubr.msk.f32.mxu0 %vm5809_vm0, %v5810_v1 }
0x33fe   :  { %5209 = vmatprep.subr.bf16.mxu0 %v5808_v0 }
0x3401   :  { %5211 = vmatpush3.bf16.msra.mxu0 %v6470_v59 }
0x3402   :  { %5219 = vmatprep.subr.bf16.mxu0 %v5218_v50 }
0x34cf   :  { %v2720_v49 = vpop.f32.mrb[22].mxu0 }
0x34d0   :  { %v2721_v30 = vadd.f32 %v6503_v27, %v2720_v49  ;;  %v4872_v31 = vpop.f32.mrb[23].mxu0 }
0x34d2   :  { %2732 = vrot.lane.b32.xlu0 %v2721_v30, %s5811_s28  ;;  %v2724_v33 = vadd.f32 %v2721_v30, %v6544_v56 }
0x34d4   :  { %v4370_v34 = vmul.f32 -1.442695, %v2724_v33 }
0x34d6   :  { %5442 = vpow2.f32 %v4370_v34 }
0x34e0   :  { %v5443_v60 = vpop.eup %5442 }
0x34e1   :  { %v2728_v36 = vadd.f32 1.0, %v5443_v60 }
0x34e3   :  { %5444 = vrcp.f32 %v2728_v36 }
0x34ed   :  { %v5445_v13 = vpop.eup %5444 }
0x34ee   :  { %v2742_v43 = vsub.f32 1.0, %v5445_v13  ;;  %v2749_v16 = vmul.f32 %v5445_v13, %v2649_v26  ;;  %v4377_v26 = vld [vmem:[%s6903_s15] ss:$0 sm:$0xff] }
0x3544   :  { %v2733_v47 = vpop.permute.xlu0 %2732 }
0x3545   :  { %v2735_v38 = vmul.f32 %v5445_v13, %v2733_v47 }
0x3547   :  { %2737 = vrot.lane.b32.xlu1 %v2735_v38, %s5811_s28 }
0x35b9   :  { %v2738_v41 = vpop.permute.xlu1 %2737 }
0x35ba   :  { %v2740_v61 = vadd.f32 %v2738_v41, %v6544_v56  ;;  %v3076_v41 = vld [vmem:[#allocation19] sm:$0xff] }
0x35bc   :  { %5446 = vtanh.f32 %v2740_v61  ;;  %v3077_v61 = vld [vmem:[#allocation19 + $0x8] sm:$0xff] }
0x35c6   :  { %v5447_v42 = vpop.eup %5446 }
0x35c7   :  { %2744 = vrot.lane.b32.xlu0 %v5447_v42, %s5812_s24  ;;  %v6668_v42 = vpack.c.bf16 %v3077_v61, %v3076_v41 }
0x3639   :  { %v2745_v44 = vpop.permute.xlu0 %2744 }
0x363a   :  { %v2747_v45 = vmul.f32 %v2745_v44, %v2742_v43  ;;  %v3078_v43 = vld [vmem:[#allocation19 + $0x10] sm:$0xff]  ;;  %v3079_v44 = vld [vmem:[#allocation19 + $0x18] sm:$0xff] }
0x363c   :  { %v2750_v40 = vadd.f32 %v2749_v16, %v2747_v45  ;;  %v6672_v16 = vpack.c.bf16 %v3079_v44, %v3078_v43 }
0x363e   :  { %2752 = vrot.lane.b32.xlu1 %v2750_v40, %s5812_s24  ;;  %v2852_v24 = vrot.slane %v2750_v40, 6 }
0x36b0   :  { %v2753_v3 = vpop.permute.xlu1 %2752 }
0x36b1   :  { %4882 = vmatmul.mubr.msk.f32.vlgmr.msra.gmra.mrb[24].mxu1 %vm324_vm2, %v2753_v3 }
0x36b2   :  { %5214 = vmatpush3.bf16.msra.mxu1 %v6452_v51  ;;  %4903 = vmatprep.mubr.msk.f32.mxu1 %vm5809_vm0, %v5810_v1 }
0x36b3   :  { %5215 = vmatprep.subr.bf16.mxu1 %v5808_v0 }
0x36b6   :  { %5217 = vmatpush3.bf16.msra.mxu1 %v6470_v59 }
0x36b7   :  { %5234 = vmatprep.subr.bf16.mxu1 %v5808_v0 }
0x3784   :  { %v2822_v46 = vpop.f32.mrb[24].mxu1 }
0x3785   :  { %v2823_v15 = vadd.f32 %v6503_v27, %v2822_v46  ;;  %v4883_v35 = vpop.f32.mrb[25].mxu1 }
0x3787   :  { %v2827_v10 = vrot.slane %v2823_v15, 6 }
0x3789   :  { %2836 = vrot.lane.b32.xlu0 %v2827_v10, %s5811_s28  ;;  %v2829_v37 = vadd.f32 %v2827_v10, %v6544_v56 }
0x378b   :  { %v4372_v63 = vmul.f32 -1.442695, %v2829_v37 }
0x378d   :  { %5448 = vpow2.f32 %v4372_v63 }
0x3797   :  { %v5449_v51 = vpop.eup %5448 }
0x3798   :  { %v2833_v52 = vadd.f32 1.0, %v5449_v51 }
0x379a   :  { %5450 = vrcp.f32 %v2833_v52  ;;  %v6700_v52 = vld [vmem:[%s6904_s16] ss:$0 sm:$0xff] }
0x37a4   :  { %v5451_v7 = vpop.eup %5450 }
0x37a5   :  { %v2846_v54 = vsub.f32 1.0, %v5451_v7  ;;  %v2854_v58 = vmul.f32 %v5451_v7, %v2852_v24 }
0x37fb   :  { %v2837_v39 = vpop.permute.xlu0 %2836 }
0x37fc   :  { %v2839_v29 = vmul.f32 %v5451_v7, %v2837_v39 }
0x37fe   :  { %2841 = vrot.lane.b32.xlu1 %v2839_v29, %s5811_s28 }
0x3870   :  { %v2842_v59 = vpop.permute.xlu1 %2841 }
0x3871   :  { %v2844_v32 = vadd.f32 %v2842_v59, %v6544_v56 }
0x3873   :  { %5452 = vtanh.f32 %v2844_v32 }
0x387d   :  { %v5453_v53 = vpop.eup %5452 }
0x387e   :  { %2848 = vrot.lane.b32.xlu0 %v5453_v53, %s5812_s24 }
0x38f0   :  { %v2849_v55 = vpop.permute.xlu0 %2848 }
0x38f1   :  { %v2851_v22 = vmul.f32 %v2849_v55, %v2846_v54 }
0x38f3   :  { %v6627_v62 = vadd.f32 %v2854_v58, %v2851_v22 }
0x38f5   :  { %v2857_v2 = vrot.slane %v6627_v62, 2  ;;  %v2958_v45 = vrot.slane %v6627_v62, 6 }
0x38f7   :  { %2858 = vrot.lane.b32.xlu1 %v2857_v2, %s5812_s24 }
0x3969   :  { %v2859_v8 = vpop.permute.xlu1 %2858 }
0x396a   :  { %4893 = vmatmul.mubr.msk.f32.vlgmr.msra.gmra.mrb[24].mxu0 %vm324_vm2, %v2859_v8 }
0x396b   :  { %5221 = vmatpush3.bf16.msra.mxu0 %v5218_v50  ;;  %4922 = vmatprep.mubr.msk.f32.mxu0 %vm2147_vm6, %v6527_v48 }
0x396c   :  { %5223 = vmatprep.subr.bf16.mxu0 %v5222_v6 }
0x396f   :  { %5225 = vmatpush3.bf16.msra.mxu0 %v5222_v6 }
0x3970   :  { %5227 = vmatprep.subr.bf16.mxu0 %v5226_v5 }
0x3973   :  { %5229 = vmatpush3.bf16.msra.mxu0 %v5226_v5 }
0x3974   :  { %5231 = vmatprep.subr.bf16.mxu0 %v5230_v9 }
0x3977   :  { %5233 = vmatpush3.bf16.msra.mxu0 %v5230_v9 }
0x3978   :  { %5246 = vmatprep.subr.bf16.mxu0 %v5808_v0 }
0x397a   :  { %4923 = vmatmul.mubr.msk.f32.vlgmr.msra.gmra.mrb[26].mxu0 %vm2147_vm6, %v6534_v57 }
0x397b   :  { %4955 = vmatprep.mubr.msk.f32.mxu0 %vm5809_vm0, %v5810_v1  ;;  %5248 = vmatpush3.bf16.msra.mxu0 %v6668_v42 }
0x397c   :  { %5249 = vmatprep.subr.bf16.mxu0 %v5808_v0 }
0x397f   :  { %5251 = vmatpush3.bf16.msra.mxu0 %v6672_v16 }
0x3980   :  { %5258 = vmatprep.subr.bf16.mxu0 %v5808_v0 }
0x3a3d   :  { %v2928_v48 = vpop.f32.mrb[24].mxu0 }
0x3a3e   :  { %v2929_v23 = vadd.f32 %v6503_v27, %v2928_v48  ;;  %v4894_v11 = vpop.f32.mrb[25].mxu0 }
0x3a40   :  { %v2933_v25 = vrot.slane %v2929_v23, 4 }
0x3a42   :  { %2942 = vrot.lane.b32.xlu0 %v2933_v25, %s5811_s28  ;;  %v2935_v57 = vadd.f32 %v2933_v25, %v6544_v56 }
0x3a44   :  { %v4374_v31 = vmul.f32 -1.442695, %v2935_v57 }
0x3a46   :  { %5454 = vpow2.f32 %v4374_v31 }
0x3a4d   :  { %v4924_v28 = vpop.f32.mrb[26].mxu0 }
0x3a4e   :  { %v3154_v49 = vpop.f32.mrb[27].mxu0  ;;  %v6704_v32 = vadd.f32 %v4924_v28, %v4377_v26 }
0x3a4f   :  { %v6662_v30 = vadd.f32 %v4377_v26, %v3154_v49 }
0x3a50   :  { %v5455_v33 = vpop.eup %5454 }
0x3a51   :  { %v2939_v34 = vadd.f32 1.0, %v5455_v33 }
0x3a53   :  { %5456 = vrcp.f32 %v2939_v34 }
0x3a5d   :  { %v5457_v27 = vpop.eup %5456 }
0x3a5e   :  { %v2952_v40 = vsub.f32 1.0, %v5457_v27  ;;  %v2960_v46 = vmul.f32 %v5457_v27, %v2958_v45 }
0x3ab4   :  { %v2943_v60 = vpop.permute.xlu0 %2942 }
0x3ab5   :  { %v2945_v36 = vmul.f32 %v5457_v27, %v2943_v60 }
0x3ab7   :  { %2947 = vrot.lane.b32.xlu1 %v2945_v36, %s5811_s28 }
0x3b29   :  { %v2948_v13 = vpop.permute.xlu1 %2947 }
0x3b2a   :  { %v2950_v47 = vadd.f32 %v2948_v13, %v6544_v56 }
0x3b2c   :  { %5458 = vtanh.f32 %v2950_v47 }
0x3b36   :  { %v5459_v38 = vpop.eup %5458 }
0x3b37   :  { %2954 = vrot.lane.b32.xlu0 %v5459_v38, %s5812_s24 }
0x3ba9   :  { %v2955_v3 = vpop.permute.xlu0 %2954 }
0x3baa   :  { %v2957_v15 = vmul.f32 %v2955_v3, %v2952_v40 }
0x3bac   :  { %v6677_v35 = vadd.f32 %v2960_v46, %v2957_v15 }
0x3bae   :  { %v2963_v10 = vrot.slane %v6677_v35, 4 }
0x3bb0   :  { %2964 = vrot.lane.b32.xlu1 %v2963_v10, %s5812_s24 }
0x3c22   :  { %v2965_v37 = vpop.permute.xlu1 %2964 }
0x3c23   :  { %4904 = vmatmul.mubr.msk.f32.vlgmr.msra.gmra.mrb[26].mxu1 %vm324_vm2, %v2965_v37 }
0x3c24   :  { %5236 = vmatpush3.bf16.msra.mxu1 %v6668_v42  ;;  %4933 = vmatprep.mubr.msk.f32.mxu1 %vm5809_vm0, %v5810_v1 }
0x3c25   :  { %5237 = vmatprep.subr.bf16.mxu1 %v5808_v0 }
0x3c28   :  { %5239 = vmatpush3.bf16.msra.mxu1 %v6672_v16 }
0x3c29   :  { %5240 = vmatprep.subr.bf16.mxu1 %v5808_v0 }
0x3c2b   :  { %4934 = vmatmul.mubr.f32.vlgmr.msra.gmra.mrb[28].mxu1 %v5810_v1 }
0x3c2c   :  { %5242 = vmatpush3.bf16.msra.mxu1 %v6668_v42  ;;  %4944 = vmatprep.mubr.msk.f32.mxu1 %vm5809_vm0, %v5810_v1 }
0x3c2d   :  { %5243 = vmatprep.subr.bf16.mxu1 %v5808_v0 }
0x3c30   :  { %5245 = vmatpush3.bf16.msra.mxu1 %v6672_v16 }
0x3c31   :  { %5252 = vmatprep.subr.bf16.mxu1 %v5808_v0 }
0x3cf6   :  { %v6695_v63 = vpop.f32.mrb[26].mxu1 }
0x3cf7   :  { %v4905_v51 = vpop.f32.mrb[27].mxu1 }
0x3cfe   :  { %v3235_v7 = vpop.f32.mrb[28].mxu1 }
0x3cff   :  { %v3236_v39 = vadd.f32 %v6700_v52, %v3235_v7  ;;  %v4935_v29 = vpop.f32.mrb[29].mxu1 }
0x3d01   :  { %v3240_v59 = vrot.slane %v3236_v39, 2 }
0x3d03   :  { %3249 = vrot.lane.b32.xlu0 %v3240_v59, %s5811_s28  ;;  %v3242_v17 = vadd.f32 %v3240_v59, %v6704_v32 }
0x3d05   :  { %v4381_v21 = vmul.f32 -1.442695, %v3242_v17 }
0x3d07   :  { %5460 = vpow2.f32 %v4381_v21 }
0x3d11   :  { %v5461_v50 = vpop.eup %5460 }
0x3d12   :  { %v3246_v53 = vadd.f32 1.0, %v5461_v50 }
0x3d14   :  { %5462 = vrcp.f32 %v3246_v53 }
0x3d1e   :  { %v5463_v24 = vpop.eup %5462 }
0x3d1f   :  { %v3259_v2 = vsub.f32 1.0, %v5463_v24  ;;  %v3265_v12 = vmul.f32 0.0, %v5463_v24 }
0x3d75   :  { %v3250_v54 = vpop.permute.xlu0 %3249 }
0x3d76   :  { %v3252_v55 = vmul.f32 %v5463_v24, %v3250_v54 }
0x3d78   :  { %3254 = vrot.lane.b32.xlu1 %v3252_v55, %s5811_s28 }
0x3dea   :  { %v3255_v58 = vpop.permute.xlu1 %3254 }
0x3deb   :  { %v3257_v22 = vadd.f32 %v3255_v58, %v6704_v32 }
0x3ded   :  { %5464 = vtanh.f32 %v3257_v22 }
0x3df7   :  { %v5465_v62 = vpop.eup %5464 }
0x3df8   :  { %3261 = vrot.lane.b32.xlu0 %v5465_v62, %s5812_s24 }
0x3e6a   :  { %v3262_v4 = vpop.permute.xlu0 %3261 }
0x3e6b   :  { %v3264_v6 = vmul.f32 %v3262_v4, %v3259_v2 }
0x3e6d   :  { %v3266_v8 = vadd.f32 %v3265_v12, %v3264_v6 }
0x3e6f   :  { %v3268_v14 = vrot.slane %v3266_v8, 6  ;;  %v3369_v34 = vrot.slane %v3266_v8, 2 }
0x3e71   :  { %3269 = vrot.lane.b32.xlu1 %v3268_v14, %s5812_s24 }
0x3ee3   :  { %v3270_v18 = vpop.permute.xlu1 %3269 }
0x3ee4   :  { %4945 = vmatmul.mubr.msk.f32.vlgmr.msra.gmra.mrb[30].mxu1 %vm324_vm2, %v3270_v18 }
0x3ee5   :  { %5254 = vmatpush3.bf16.msra.mxu1 %v6668_v42  ;;  %4966 = vmatprep.mubr.msk.f32.mxu1 %vm5809_vm0, %v5810_v1 }
0x3ee6   :  { %5255 = vmatprep.subr.bf16.mxu1 %v5808_v0 }
0x3ee9   :  { %5257 = vmatpush3.bf16.msra.mxu1 %v6672_v16 }
0x3eea   :  { %5264 = vmatprep.subr.bf16.mxu1 %v5808_v0 }
0x3fb7   :  { %v3339_v5 = vpop.f32.mrb[30].mxu1 }
0x3fb8   :  { %v3340_v19 = vadd.f32 %v6700_v52, %v3339_v5  ;;  %v4946_v20 = vpop.f32.mrb[31].mxu1 }
0x3fba   :  { %v3344_v9 = vrot.slane %v3340_v19, 4 }
0x3fbc   :  { %3353 = vrot.lane.b32.xlu0 %v3344_v9, %s5811_s28  ;;  %v3346_v48 = vadd.f32 %v3344_v9, %v6704_v32 }
0x3fbe   :  { %v4383_v23 = vmul.f32 -1.442695, %v3346_v48 }
0x3fc0   :  { %5466 = vpow2.f32 %v4383_v23 }
0x3fca   :  { %v5467_v11 = vpop.eup %5466 }
0x3fcb   :  { %v3350_v25 = vadd.f32 1.0, %v5467_v11 }
0x3fcd   :  { %5468 = vrcp.f32 %v3350_v25 }
0x3fd7   :  { %v5469_v26 = vpop.eup %5468 }
0x3fd8   :  { %v3363_v27 = vsub.f32 1.0, %v5469_v26  ;;  %v3371_v36 = vmul.f32 %v5469_v26, %v3369_v34 }
0x402e   :  { %v3354_v28 = vpop.permute.xlu0 %3353 }
0x402f   :  { %v3356_v49 = vmul.f32 %v5469_v26, %v3354_v28 }
0x4031   :  { %3358 = vrot.lane.b32.xlu1 %v3356_v49, %s5811_s28 }
0x40a3   :  { %v3359_v57 = vpop.permute.xlu1 %3358 }
0x40a4   :  { %v3361_v31 = vadd.f32 %v3359_v57, %v6704_v32 }
0x40a6   :  { %5470 = vtanh.f32 %v3361_v31 }
0x40b0   :  { %v5471_v33 = vpop.eup %5470 }
0x40b1   :  { %3365 = vrot.lane.b32.xlu0 %v5471_v33, %s5812_s24 }
0x4123   :  { %v3366_v60 = vpop.permute.xlu0 %3365 }
0x4124   :  { %v3368_v13 = vmul.f32 %v3366_v60, %v3363_v27 }
0x4126   :  { %v3372_v47 = vadd.f32 %v3371_v36, %v3368_v13 }
0x4128   :  { %v3374_v38 = vrot.slane %v3372_v47, 4  ;;  %v3475_v59 = vrot.slane %v3372_v47, 2 }
0x412a   :  { %3375 = vrot.lane.b32.xlu1 %v3374_v38, %s5812_s24 }
0x419c   :  { %v3376_v41 = vpop.permute.xlu1 %3375 }
0x419d   :  { %4956 = vmatmul.mubr.msk.f32.vlgmr.msra.gmra.mrb[28].mxu0 %vm324_vm2, %v3376_v41 }
0x419e   :  { %5260 = vmatpush3.bf16.msra.mxu0 %v6668_v42  ;;  %4977 = vmatprep.mubr.msk.f32.mxu0 %vm5809_vm0, %v5810_v1 }
0x419f   :  { %5261 = vmatprep.subr.bf16.mxu0 %v5808_v0 }
0x41a2   :  { %5263 = vmatpush3.bf16.msra.mxu0 %v6672_v16 }
0x41a3   :  { %5270 = vmatprep.subr.bf16.mxu0 %v5808_v0 }
0x4270   :  { %v3445_v61 = vpop.f32.mrb[28].mxu0 }
0x4271   :  { %v3446_v43 = vadd.f32 %v6700_v52, %v3445_v61  ;;  %v4957_v44 = vpop.f32.mrb[29].mxu0 }
0x4273   :  { %v3450_v45 = vrot.slane %v3446_v43, 6 }
0x4275   :  { %3459 = vrot.lane.b32.xlu0 %v3450_v45, %s5811_s28  ;;  %v3452_v40 = vadd.f32 %v3450_v45, %v6704_v32 }
0x4277   :  { %v4385_v3 = vmul.f32 -1.442695, %v3452_v40 }
0x4279   :  { %5472 = vpow2.f32 %v4385_v3 }
0x4283   :  { %v5473_v46 = vpop.eup %5472 }
0x4284   :  { %v3456_v15 = vadd.f32 1.0, %v5473_v46 }
0x4286   :  { %5474 = vrcp.f32 %v3456_v15 }
0x4290   :  { %v5475_v10 = vpop.eup %5474 }
0x4291   :  { %v3469_v17 = vsub.f32 1.0, %v5475_v10  ;;  %v3477_v50 = vmul.f32 %v5475_v10, %v3475_v59 }
0x42e7   :  { %v3460_v37 = vpop.permute.xlu0 %3459 }
0x42e8   :  { %v3462_v51 = vmul.f32 %v5475_v10, %v3460_v37 }
0x42ea   :  { %3464 = vrot.lane.b32.xlu1 %v3462_v51, %s5811_s28 }
0x435c   :  { %v3465_v7 = vpop.permute.xlu1 %3464 }
0x435d   :  { %v3467_v39 = vadd.f32 %v3465_v7, %v6704_v32 }
0x435f   :  { %5476 = vtanh.f32 %v3467_v39 }
0x4369   :  { %v5477_v29 = vpop.eup %5476 }
0x436a   :  { %3471 = vrot.lane.b32.xlu0 %v5477_v29, %s5812_s24 }
0x43dc   :  { %v3472_v21 = vpop.permute.xlu0 %3471 }
0x43dd   :  { %v3474_v53 = vmul.f32 %v3472_v21, %v3469_v17 }
0x43df   :  { %v3478_v24 = vadd.f32 %v3477_v50, %v3474_v53 }
0x43e1   :  { %v3480_v54 = vrot.slane %v3478_v24, 2 }
0x43e3   :  { %3481 = vrot.lane.b32.xlu1 %v3480_v54, %s5812_s24 }
0x4455   :  { %v3482_v55 = vpop.permute.xlu1 %3481 }
0x4456   :  { %4967 = vmatmul.mubr.msk.f32.vlgmr.msra.gmra.mrb[32].mxu1 %vm324_vm2, %v3482_v55 }
0x4457   :  { %5266 = vmatpush3.bf16.msra.mxu1 %v6668_v42  ;;  %4988 = vmatprep.mubr.msk.f32.mxu1 %vm5809_vm0, %v5810_v1 }
0x4458   :  { %5267 = vmatprep.subr.bf16.mxu1 %v5808_v0 }
0x445b   :  { %5269 = vmatpush3.bf16.msra.mxu1 %v6672_v16 }
0x445c   :  { %5276 = vmatprep.subr.bf16.mxu1 %v5808_v0 }
0x4529   :  { %v3551_v58 = vpop.f32.mrb[32].mxu1 }
0x452a   :  { %v3552_v22 = vadd.f32 %v6700_v52, %v3551_v58  ;;  %v4968_v62 = vpop.f32.mrb[33].mxu1 }
0x452c   :  { %3563 = vrot.lane.b32.xlu0 %v3552_v22, %s5811_s28  ;;  %v3555_v2 = vadd.f32 %v3552_v22, %v6704_v32 }
0x452e   :  { %v4387_v4 = vmul.f32 -1.442695, %v3555_v2 }
0x4530   :  { %5478 = vpow2.f32 %v4387_v4 }
0x453a   :  { %v5479_v12 = vpop.eup %5478 }
0x453b   :  { %v3559_v6 = vadd.f32 1.0, %v5479_v12 }
0x453d   :  { %5480 = vrcp.f32 %v3559_v6 }
0x4547   :  { %v5481_v8 = vpop.eup %5480 }
0x4548   :  { %v3573_v9 = vsub.f32 1.0, %v5481_v8  ;;  %v3580_v23 = vmul.f32 %v5481_v8, %v3480_v54 }
0x459e   :  { %v3564_v14 = vpop.permute.xlu0 %3563 }
0x459f   :  { %v3566_v18 = vmul.f32 %v5481_v8, %v3564_v14 }
0x45a1   :  { %3568 = vrot.lane.b32.xlu1 %v3566_v18, %s5811_s28 }
0x4613   :  { %v3569_v5 = vpop.permute.xlu1 %3568 }
0x4614   :  { %v3571_v19 = vadd.f32 %v3569_v5, %v6704_v32 }
0x4616   :  { %5482 = vtanh.f32 %v3571_v19 }
0x4620   :  { %v5483_v20 = vpop.eup %5482 }
0x4621   :  { %3575 = vrot.lane.b32.xlu0 %v5483_v20, %s5812_s24 }
0x4693   :  { %v3576_v48 = vpop.permute.xlu0 %3575 }
0x4694   :  { %v3578_v11 = vmul.f32 %v3576_v48, %v3573_v9 }
0x4696   :  { %v3581_v25 = vadd.f32 %v3580_v23, %v3578_v11 }
0x4698   :  { %3583 = vrot.lane.b32.xlu1 %v3581_v25, %s5812_s24  ;;  %v3683_v61 = vrot.slane %v3581_v25, 2 }
0x470a   :  { %v3584_v26 = vpop.permute.xlu1 %3583 }
0x470b   :  { %4978 = vmatmul.mubr.msk.f32.vlgmr.msra.gmra.mrb[30].mxu0 %vm324_vm2, %v3584_v26 }
0x470c   :  { %5272 = vmatpush3.bf16.msra.mxu0 %v6668_v42  ;;  %4999 = vmatprep.mubr.msk.f32.mxu0 %vm5809_vm0, %v5810_v1 }
0x470d   :  { %5273 = vmatprep.subr.bf16.mxu0 %v5808_v0 }
0x4710   :  { %5275 = vmatpush3.bf16.msra.mxu0 %v6672_v16 }
0x4711   :  { %5282 = vmatprep.subr.bf16.mxu0 %v5808_v0 }
0x47de   :  { %v3653_v32 = vpop.f32.mrb[30].mxu0 }
0x47df   :  { %v3654_v28 = vadd.f32 %v6700_v52, %v3653_v32  ;;  %v4979_v49 = vpop.f32.mrb[31].mxu0  ;;  %v5516_v32 = vld [vmem:[#allocation17] ss:$0 sm:$0xff] }
0x47e1   :  { %v3658_v57 = vrot.slane %v3654_v28, 2  ;;  %v3035_v28 = vadd.f32 %v5516_v32, %v6695_v63  ;;  %v4046_v32 = vld [vmem:[%s6907_s19 + $0x28] sm:$0xff] }
0x47e3   :  { %3667 = vrot.lane.b32.xlu0 %v3658_v57, %s5811_s28  ;;  %v3660_v31 = vadd.f32 %v3658_v57, %v6662_v30  ;;  %v3039_v57 = vrot.slane %v3035_v28, 2 }
0x47e5   :  { %v4389_v33 = vmul.f32 -1.442695, %v3660_v31  ;;  %v3041_v31 = vadd.f32 %v3039_v57, %v6544_v56 }
0x47e7   :  { %5484 = vpow2.f32 %v4389_v33  ;;  %v4376_v33 = vmul.f32 -1.442695, %v3041_v31 }
0x47f1   :  { %v5485_v34 = vpop.eup %5484 }
0x47f2   :  { %v3664_v27 = vadd.f32 1.0, %v5485_v34 }
0x47f4   :  { %5486 = vrcp.f32 %v3664_v27 }
0x47fe   :  { %v5487_v60 = vpop.eup %5486 }
0x47ff   :  { %v3677_v43 = vsub.f32 1.0, %v5487_v60  ;;  %v3685_v40 = vmul.f32 %v5487_v60, %v3683_v61 }
0x4855   :  { %v3668_v36 = vpop.permute.xlu0 %3667 }
0x4856   :  { %v3670_v13 = vmul.f32 %v5487_v60, %v3668_v36 }
0x4858   :  { %3672 = vrot.lane.b32.xlu1 %v3670_v13, %s5811_s28 }
0x48ca   :  { %v3673_v47 = vpop.permute.xlu1 %3672 }
0x48cb   :  { %v3675_v38 = vadd.f32 %v3673_v47, %v6662_v30 }
0x48cd   :  { %5488 = vtanh.f32 %v3675_v38 }
0x48d7   :  { %v5489_v41 = vpop.eup %5488 }
0x48d8   :  { %3679 = vrot.lane.b32.xlu0 %v5489_v41, %s5812_s24 }
0x494a   :  { %v3680_v44 = vpop.permute.xlu0 %3679 }
0x494b   :  { %v3682_v45 = vmul.f32 %v3680_v44, %v3677_v43 }
0x494d   :  { %v3686_v3 = vadd.f32 %v3685_v40, %v3682_v45 }
0x494f   :  { %v3688_v46 = vrot.slane %v3686_v3, 6  ;;  %v3789_v54 = vrot.slane %v3686_v3, 2 }
0x4951   :  { %3689 = vrot.lane.b32.xlu1 %v3688_v46, %s5812_s24 }
0x49c3   :  { %v3690_v15 = vpop.permute.xlu1 %3689 }
0x49c4   :  { %4989 = vmatmul.mubr.msk.f32.vlgmr.msra.gmra.mrb[34].mxu1 %vm324_vm2, %v3690_v15  ;;  %v3064_v15 = vrot.slane %v6677_v35, 6 }
0x49c5   :  { %5278 = vmatpush3.bf16.msra.mxu1 %v6668_v42  ;;  %5010 = vmatprep.mubr.msk.f32.mxu1 %vm5809_vm0, %v5810_v1 }
0x49c6   :  { %5279 = vmatprep.subr.bf16.mxu1 %v5808_v0 }
0x49c9   :  { %5281 = vmatpush3.bf16.msra.mxu1 %v6672_v16 }
0x49ca   :  { %5294 = vmatprep.subr.bf16.mxu1 %v5808_v0 }
0x4a97   :  { %v3759_v10 = vpop.f32.mrb[34].mxu1 }
0x4a98   :  { %v3760_v37 = vadd.f32 %v6700_v52, %v3759_v10  ;;  %v4990_v51 = vpop.f32.mrb[35].mxu1 }
0x4a9a   :  { %v3764_v7 = vrot.slane %v3760_v37, 4 }
0x4a9c   :  { %3773 = vrot.lane.b32.xlu0 %v3764_v7, %s5811_s28  ;;  %v3766_v39 = vadd.f32 %v3764_v7, %v6662_v30 }
0x4a9e   :  { %v4391_v29 = vmul.f32 -1.442695, %v3766_v39 }
0x4aa0   :  { %5490 = vpow2.f32 %v4391_v29 }
0x4aaa   :  { %v5491_v42 = vpop.eup %5490 }
0x4aab   :  { %v3770_v59 = vadd.f32 1.0, %v5491_v42 }
0x4aad   :  { %5492 = vrcp.f32 %v3770_v59 }
0x4ab7   :  { %v5493_v17 = vpop.eup %5492 }
0x4ab8   :  { %v3783_v55 = vsub.f32 1.0, %v5493_v17  ;;  %v3791_v22 = vmul.f32 %v5493_v17, %v3789_v54 }
0x4b0e   :  { %v3774_v21 = vpop.permute.xlu0 %3773 }
0x4b0f   :  { %v3776_v50 = vmul.f32 %v5493_v17, %v3774_v21 }
0x4b11   :  { %3778 = vrot.lane.b32.xlu1 %v3776_v50, %s5811_s28 }
0x4b83   :  { %v3779_v16 = vpop.permute.xlu1 %3778 }
0x4b84   :  { %v3781_v53 = vadd.f32 %v3779_v16, %v6662_v30 }
0x4b86   :  { %5494 = vtanh.f32 %v3781_v53 }
0x4b90   :  { %v5495_v24 = vpop.eup %5494 }
0x4b91   :  { %3785 = vrot.lane.b32.xlu0 %v5495_v24, %s5812_s24 }
0x4c03   :  { %v3786_v58 = vpop.permute.xlu0 %3785 }
0x4c04   :  { %v3788_v62 = vmul.f32 %v3786_v58, %v3783_v55 }
0x4c06   :  { %v3792_v2 = vadd.f32 %v3791_v22, %v3788_v62 }
0x4c08   :  { %v3794_v4 = vrot.slane %v3792_v2, 4  ;;  %v3895_v60 = vrot.slane %v3792_v2, 2 }
0x4c0a   :  { %3795 = vrot.lane.b32.xlu1 %v3794_v4, %s5812_s24 }
0x4c7c   :  { %v3796_v12 = vpop.permute.xlu1 %3795 }
0x4c7d   :  { %5000 = vmatmul.mubr.msk.f32.vlgmr.msra.gmra.mrb[32].mxu0 %vm324_vm2, %v3796_v12 }
0x4c7e   :  { %5029 = vmatprep.mubr.msk.f32.mxu0 %vm5809_vm0, %v5810_v1 }
0x4d50   :  { %v3865_v6 = vpop.f32.mrb[32].mxu0 }
0x4d51   :  { %v3866_v8 = vadd.f32 %v6700_v52, %v3865_v6  ;;  %v5001_v14 = vpop.f32.mrb[33].mxu0 }
0x4d53   :  { %v3870_v18 = vrot.slane %v3866_v8, 6 }
0x4d55   :  { %3879 = vrot.lane.b32.xlu0 %v3870_v18, %s5811_s28  ;;  %v3872_v5 = vadd.f32 %v3870_v18, %v6662_v30 }
0x4d57   :  { %v4393_v19 = vmul.f32 -1.442695, %v3872_v5 }
0x4d59   :  { %5496 = vpow2.f32 %v4393_v19 }
0x4d63   :  { %v5497_v20 = vpop.eup %5496 }
0x4d64   :  { %v3876_v9 = vadd.f32 1.0, %v5497_v20  ;;  %v4041_v20 = vld [vmem:[%s6907_s19] sm:$0xff] }
0x4d66   :  { %5498 = vrcp.f32 %v3876_v9  ;;  %v4042_v9 = vld [vmem:[%s6907_s19 + $0x8] sm:$0xff] }
0x4d70   :  { %v5499_v48 = vpop.eup %5498 }
0x4d71   :  { %v3889_v36 = vsub.f32 1.0, %v5499_v48  ;;  %v3897_v47 = vmul.f32 %v5499_v48, %v3895_v60 }
0x4dc7   :  { %v3880_v23 = vpop.permute.xlu0 %3879 }
0x4dc8   :  { %v3882_v11 = vmul.f32 %v5499_v48, %v3880_v23  ;;  %v5283_v48 = vpack.c.bf16 %v4042_v9, %v4041_v20  ;;  %v4043_v23 = vld [vmem:[%s6907_s19 + $0x10] sm:$0xff] }
0x4dca   :  { %3884 = vrot.lane.b32.xlu1 %v3882_v11, %s5811_s28  ;;  %5284 = vmatpush3.bf16.msra.mxu0 %v5283_v48  ;;  %v4044_v11 = vld [vmem:[%s6907_s19 + $0x18] sm:$0xff] }
0x4dcb   :  { %5285 = vmatprep.subr.bf16.mxu0 %v5808_v0 }
0x4e3c   :  { %v3885_v25 = vpop.permute.xlu1 %3884 }
0x4e3d   :  { %v3887_v26 = vadd.f32 %v3885_v25, %v6662_v30  ;;  %v5286_v25 = vpack.c.bf16 %v4044_v11, %v4043_v23 }
0x4e3f   :  { %5500 = vtanh.f32 %v3887_v26  ;;  %5287 = vmatpush3.bf16.msra.mxu0 %v5286_v25  ;;  %v4045_v26 = vld [vmem:[%s6907_s19 + $0x20] sm:$0xff] }
0x4e40   :  { %5502 = vpow2.f32 %v4376_v33  ;;  %5288 = vmatprep.subr.bf16.mxu0 %v5808_v0  ;;  %v5289_v28 = vpack.c.bf16 %v4046_v32, %v4045_v26  ;;  %v4131_v33 = vld [vmem:[%s6909_s21] sm:$0xff] }
0x4e43   :  { %5290 = vmatpush3.bf16.msra.mxu0 %v5289_v28 }
0x4e44   :  { %5291 = vmatprep.subr.bf16.mxu0 %v5808_v0 }
0x4e49   :  { %v5501_v49 = vpop.eup %5500 }
0x4e4a   :  { %3891 = vrot.lane.b32.xlu0 %v5501_v49, %s5812_s24  ;;  %v5503_v34 = vpop.eup %5502  ;;  %v4047_v49 = vld [vmem:[%s6907_s19 + $0x30] sm:$0xff] }
0x4e4b   :  { %v3045_v27 = vadd.f32 1.0, %v5503_v34  ;;  %v4132_v34 = vld [vmem:[%s6909_s21 + $0x8] sm:$0xff] }
0x4e4d   :  { %5504 = vrcp.f32 %v3045_v27  ;;  %v5295_v27 = vpack.c.bf16 %v4132_v34, %v4131_v33 }
0x4e4e   :  { %3048 = vrot.lane.b32.xlu0 %v3039_v57, %s5811_s28  ;;  %v4048_v57 = vld [vmem:[%s6907_s19 + $0x38] sm:$0xff] }
0x4e4f   :  { %v5292_v31 = vpack.c.bf16 %v4048_v57, %v4047_v49 }
0x4e51   :  { %5293 = vmatpush3.bf16.msra.mxu0 %v5292_v31 }
0x4e57   :  { %v5505_v63 = vpop.eup %5504 }
0x4e58   :  { %v3058_v10 = vsub.f32 1.0, %v5505_v63  ;;  %v3066_v51 = vmul.f32 %v5505_v63, %v3064_v15 }
0x4ebc   :  { %v3892_v13 = vpop.permute.xlu0 %3891 }
0x4ebd   :  { %v3894_v38 = vmul.f32 %v3892_v13, %v3889_v36 }
0x4ebf   :  { %v3898_v41 = vadd.f32 %v3897_v47, %v3894_v38  ;;  %v4396_v38 = vld [vmem:[%s6905_s17] ss:$0 sm:$0xff] }
0x4ec0   :  { %v3049_v61 = vpop.permute.xlu0 %3048 }
0x4ec1   :  { %v3900_v43 = vrot.slane %v3898_v41, 2  ;;  %v3051_v44 = vmul.f32 %v5505_v63, %v3049_v61  ;;  %v4397_v63 = vld [vmem:[%s6906_s18] ss:$0 sm:$0xff] }
0x4ec3   :  { %3901 = vrot.lane.b32.xlu1 %v3900_v43, %s5812_s24  ;;  %3053 = vrot.lane.b32.xlu0 %v3051_v44, %s5811_s28 }
0x4f35   :  { %v3902_v45 = vpop.permute.xlu1 %3901  ;;  %v3054_v40 = vpop.permute.xlu0 %3053 }
0x4f36   :  { %v3056_v3 = vadd.f32 %v3054_v40, %v6544_v56  ;;  %5011 = vmatmul.mubr.msk.f32.vlgmr.msra.gmra.mrb[36].mxu1 %vm324_vm2, %v3902_v45  ;;  %v4133_v45 = vld [vmem:[%s6909_s21 + $0x10] sm:$0xff]  ;;  %v4134_v40 = vld [vmem:[%s6909_s21 + $0x18] sm:$0xff] }
0x4f37   :  { %5040 = vmatprep.mubr.msk.f32.mxu1 %vm5809_vm0, %v5810_v1  ;;  %5296 = vmatpush3.bf16.msra.mxu1 %v5295_v27 }
0x4f38   :  { %5506 = vtanh.f32 %v3056_v3  ;;  %5297 = vmatprep.subr.bf16.mxu1 %v5808_v0  ;;  %v5298_v3 = vpack.c.bf16 %v4134_v40, %v4133_v45 }
0x4f3b   :  { %5299 = vmatpush3.bf16.msra.mxu1 %v5298_v3 }
0x4f3c   :  { %5300 = vmatprep.subr.bf16.mxu1 %v5808_v0  ;;  %v4217_v0 = vld [vmem:[%s6911_s23 + $0x8] sm:$0xff] }
0x4f42   :  { %v5507_v46 = vpop.eup %5506 }
0x4f43   :  { %3060 = vrot.lane.b32.xlu0 %v5507_v46, %s5812_s24  ;;  %v4398_v46 = vld [vmem:[%s6908_s20] ss:$0 sm:$0xff] }
0x4fb5   :  { %v3061_v37 = vpop.permute.xlu0 %3060 }
0x4fb6   :  { %v3063_v7 = vmul.f32 %v3061_v37, %v3058_v10 }
0x4fb8   :  { %v3067_v39 = vadd.f32 %v3066_v51, %v3063_v7  ;;  %v4216_v7 = vld [vmem:[%s6911_s23] sm:$0xff]  ;;  %s5759_s23 = scalar_lea.vmem %s4307_s11, 32 }
0x4fb9   :  { %p5760_p4 = scmp.ne.s32.totalorder %s4307_s11, %s5759_s23  ;;  %p5765_p6 = scmp.lt.s32.totalorder %s5759_s23, %s5759_s23 }
0x4fba   :  { %4003 = vrot.lane.b32.xlu0 %v3067_v39, %s5812_s24  ;;  %v5301_v39 = vpack.c.bf16 %v4217_v0, %v4216_v7 }
0x4fbb   :  { %p5766_p7 = por %p5765_p6, %p5764_p5 }
0x4fbd   :  { %p5767_p8 = pnand %p5766_p7, %p5760_p4 }
0x5009   :  { %v3971_v29 = vpop.f32.mrb[36].mxu1 }
0x500a   :  { %v3972_v56 = vadd.f32 %v6700_v52, %v3971_v29  ;;  %v5012_v42 = vpop.f32.mrb[37].mxu1  ;;  %v4400_v29 = vld [vmem:[%s6910_s22] ss:$0 sm:$0xff] }
0x500c   :  { %3983 = vrot.lane.b32.xlu1 %v3972_v56, %s5811_s28  ;;  %v3975_v59 = vadd.f32 %v3972_v56, %v6662_v30 }
0x500e   :  { %v4395_v17 = vmul.f32 -1.442695, %v3975_v59 }
0x5010   :  { %5508 = vpow2.f32 %v4395_v17 }
0x501a   :  { %v5509_v21 = vpop.eup %5508 }
0x501b   :  { %v3979_v50 = vadd.f32 1.0, %v5509_v21 }
0x501d   :  { %5510 = vrcp.f32 %v3979_v50 }
0x5027   :  { %v5511_v35 = vpop.eup %5510 }
0x5028   :  { %v3993_v55 = vsub.f32 1.0, %v5511_v35  ;;  %v4000_v22 = vmul.f32 %v5511_v35, %v3900_v43 }
0x502c   :  { %v4004_v12 = vpop.permute.xlu0 %4003 }
0x507e   :  { %v3984_v16 = vpop.permute.xlu1 %3983 }
0x507f   :  { %v3986_v53 = vmul.f32 %v5511_v35, %v3984_v16 }
0x5081   :  { %3988 = vrot.lane.b32.xlu1 %v3986_v53, %s5811_s28 }
0x50f3   :  { %v3989_v24 = vpop.permute.xlu1 %3988 }
0x50f4   :  { %v3991_v54 = vadd.f32 %v3989_v24, %v6662_v30 }
0x50f6   :  { %5512 = vtanh.f32 %v3991_v54 }
0x5100   :  { %v5513_v52 = vpop.eup %5512 }
0x5101   :  { %3995 = vrot.lane.b32.xlu1 %v5513_v52, %s5812_s24 }
0x5173   :  { %v3996_v58 = vpop.permute.xlu1 %3995 }
0x5174   :  { %v3998_v62 = vmul.f32 %v3996_v58, %v3993_v55 }
0x5176   :  { %v4001_v2 = vadd.f32 %v4000_v22, %v3998_v62 }
0x5178   :  { %v4007_v4 = vrot.slane %v4001_v2, 2 }
0x517a   :  { %v4009_v6 = vsel %vm324_vm2, %v4004_v12, %v4007_v4 }
0x517b   :  { %v4011_v8 = vsel %vm4010_vm7, %v4009_v6, 0.0 }
0x517c   :  { %4012 = vadd.xlane.f32.xlu1 %v4011_v8 }
0x5209   :  { %v4013_v14 = vpop.xlane.xlu1 %4012 }
0x520a   :  { %v4015_v18 = vmul.f32 0.015625, %v4013_v14 }
0x520c   :  { %v4016_v5 = vsub.f32 %v4009_v6, %v4015_v18 }
0x520e   :  { %v4017_v30 = vmul.f32 %v4016_v5, %v4016_v5 }
0x5210   :  { %v4018_v19 = vsel %vm4010_vm7, %v4017_v30, 0.0 }
0x5211   :  { %4019 = vadd.xlane.f32.xlu0 %v4018_v19 }
0x529e   :  { %v4020_v60 = vpop.xlane.xlu0 %4019 }
0x529f   :  { %v4021_v36 = vmul.f32 0.015625, %v4020_v60 }
0x52a1   :  { %v4022_v13 = vadd.f32 1e-05, %v4021_v36 }
0x52a3   :  { %5514 = vrsqrt.f32 %v4022_v13 }
0x52ad   :  { %v5515_v47 = vpop.eup %5514 }
0x52ae   :  { %v4024_v41 = vmul.f32 %v5515_v47, %v4016_v5 }
0x52b0   :  { %v4032_v61 = vmul.f32 %v4396_v38, %v4024_v41 }
0x52b2   :  { %v4040_v43 = vadd.f32 %v4397_v63, %v4032_v61 }
0x52b4   :  { %v4057_v44 = vrot.slane %v4040_v43, 6 }
0x52b6   :  { %5030 = vmatmul.mubr.msk.f32.vlgmr.msra.gmra.mrb[34].mxu0 %vm2147_vm6, %v4057_v44 }
0x5389   :  { %v4126_v15 = vpop.f32.mrb[34].mxu0 }
0x538a   :  { %v4127_v10 = vadd.f32 %v4398_v46, %v4126_v15  ;;  %v5031_v37 = vpop.f32.mrb[35].mxu0 }
0x538c   :  { %v4130_v51 = vmax.f32 %v4127_v10, 0.0 }
0x538e   :  { %5041 = vmatmul.mubr.msk.f32.vlgmr.msra.gmra.mrb[38].mxu1 %vm324_vm2, %v4130_v51 }
0x538f   :  { %5047 = vmatprep.mubr.msk.f32.mxu1 %vm5809_vm0, %v5810_v1  ;;  %5302 = vmatpush3.bf16.msra.mxu1 %v5301_v39  ;;  %v4402_v1 = vld [vmem:[%s6952_s0] ss:$0 sm:$0xff] }
0x5461   :  { %v4211_v56 = vpop.f32.mrb[38].mxu1 }
0x5462   :  { %v4212_v42 = vadd.f32 %v4400_v29, %v4211_v56  ;;  %v5042_v59 = vpop.f32.mrb[39].mxu1 }
0x5464   :  { %v4215_v17 = vmax.f32 %v4212_v42, 0.0 }
0x5466   :  { %5048 = vmatmul.mubr.msk.f32.vlgmr.msra.gmra.mrb[40].mxu1 %vm236_vm1, %v4215_v17 }
0x5539   :  { %v4294_v21 = vpop.f32.mrb[40].mxu1 }
0x553a   :  { %v4295_v50 = vadd.f32 %v4402_v1, %v4294_v21  ;;  %v5049_v35 = vpop.f32.mrb[41].mxu1 }
0x553c   :  { %4299 = vst.msk [vmem:[#allocation20] sm:$0x3] %vm4298_vm8, %v4295_v50 }
0x553d   :  { %5770 = shalt.err (!%p5767_p8)
}
0x553e   :  { %s6953_s14 = sld [smem:[#allocation39_spill]] }
0x5544   :  { %s5771_s1 = scalar_lea.hbm %s6953_s14, 32 }
0x5545   :  { %p5772_p9 = scmp.ne.s32.totalorder %s6953_s14, %s5771_s1  ;;  %p5775_p10 = scmp.lt.u32.totalorder %s5771_s1, %s6953_s14 }
0x5547   :  { %p5777_p11 = pnand %p5775_p10, %p5772_p9 }
0x5549   :  { %5780 = shalt.err (!%p5777_p11)
}
0x554a   :  { %4309 = dma.vmem_to_hbm [thread:$0]  %s4307_s11, 32, %s6953_s14, [#allocation4]  }
0x554b   :  { %5793 = dma.done.wait [#allocation4], 32  }
0x554c   :  { %5794 = vsyncadd [#allocation4], 4294967264 }
0x554d   :  { %4313 = vsyncpa [#allocation3], 1 }
0x554e   :  { %4314 = vsyncpa [#allocation6], 1 }
0x554f   :  { %4315 = vsyncpa [#allocation9], 1 }
0x5550   :  { %4316 = vsyncpa [#allocation12], 1 }
0x5551   :  { %4317 = vsyncpa [#allocation15], 1 }
0x5552   :  { %4318 = vsyncpa [#allocation18], 1 }
0x5553   :  { %4319 = vsyncpa [#allocation4], 1 }

</bundles_post_ra>
